<compile_context>
chip_gen: v6e
topology: v6e:2x2x1
jax: 0.10.0
libtpu: 0.0.40
codegen_flags: <defaults>
</compile_context>

<pallas_src>
import functools

import jax
import jax.numpy as jnp
from jax.experimental import pallas as pl
from jax.experimental.pallas import tpu as pltpu

LANE = 128


def _round_up(x, m):
    return (x + m - 1) // m * m


# ----------------------------------------------------------------------------
# Pallas kernel: fused 3x3 conv (9 shifted MXU matmuls) + folded-BN bias
#                + optional residual add + optional ReLU.
# ----------------------------------------------------------------------------
def _conv3x3_bn_act_kernel(*refs, H, W, relu, add_residual):
    if add_residual:
        x_ref, w_ref, b_ref, res_ref, o_ref = refs
    else:
        x_ref, w_ref, b_ref, o_ref = refs
        res_ref = None

    cin = x_ref.shape[-1]
    tn = o_ref.shape[-1]

    xt = x_ref[0]                                   # (H+2, W+2, Cin) bf16, loaded once
    acc = jnp.zeros((H * W, tn), jnp.float32)
    # Unrolled 9-tap accumulation: each tap is one MXU matmul with K = Cin (128-aligned).
    for ky in range(3):
        for kx in range(3):
            xm = xt[ky:ky + H, kx:kx + W, :].reshape(H * W, cin)
            acc = acc + jnp.dot(xm, w_ref[ky * 3 + kx],
                                preferred_element_type=jnp.float32)

    y = acc + b_ref[...]                            # folded BatchNorm bias (f32 epilogue)
    if add_residual:
        y = y + res_ref[0].reshape(H * W, tn).astype(jnp.float32)
    if relu:
        y = jnp.maximum(y, 0.0)
    o_ref[0] = y.reshape(H, W, tn).astype(o_ref.dtype)


def conv3x3_bn_act(x_pad, w9, bias, residual=None, relu=True,
                   out_dtype=jnp.float32, tn=LANE):
    """Fused 3x3 conv + BN + (residual) + (ReLU).

    x_pad:    (B, H+2, W+2, Cin_p)  bf16, spatially zero-padded, Cin padded to 128.
    w9:       (9, Cin_p, Cout_p)    bf16, BN scale folded in.
    bias:     (1, Cout_p)           f32 folded BN bias.
    residual: optional (B, H, W, Cout_p), added before the final ReLU.
    returns   (B, H, W, Cout_p) in out_dtype.
    """
    B, Hp2, Wp2, cin_p = x_pad.shape
    H, W = Hp2 - 2, Wp2 - 2
    cout_p = w9.shape[-1]
    assert cin_p % LANE == 0 and cout_p % tn == 0
    n_blocks = cout_p // tn

    in_specs = [
        pl.BlockSpec((1, Hp2, Wp2, cin_p), lambda b, n: (b, 0, 0, 0)),
        pl.BlockSpec((9, cin_p, tn), lambda b, n: (0, 0, n)),
        pl.BlockSpec((1, tn), lambda b, n: (0, n)),
    ]
    args = [x_pad, w9, bias]
    if residual is not None:
        in_specs.append(pl.BlockSpec((1, H, W, tn), lambda b, n: (b, 0, 0, n)))
        args.append(residual)

    kernel = functools.partial(_conv3x3_bn_act_kernel, H=H, W=W, relu=relu,
                               add_residual=residual is not None)
    return pl.pallas_call(
        kernel,
        out_shape=jax.ShapeDtypeStruct((B, H, W, cout_p), out_dtype),
        grid=(B, n_blocks),
        in_specs=in_specs,
        out_specs=pl.BlockSpec((1, H, W, tn), lambda b, n: (b, 0, 0, n)),
        compiler_params=pltpu.CompilerParams(
            dimension_semantics=("parallel", "parallel"),
            vmem_limit_bytes=32 * 1024 * 1024),
    )(*args)


# ----------------------------------------------------------------------------
# Parameter prep (done ONCE, outside the forward): fold BN into conv weights,
# reorder to (tap, Cin, Cout), pad channel axes to 128 lanes, cast to bf16.
# ----------------------------------------------------------------------------
def _fold_bn(w, bn, eps=1e-5):
    # w: (Cout, Cin, 3, 3) torch OIHW, conv bias=False; BatchNorm in inference mode.
    s = bn['gamma'] / jnp.sqrt(bn['var'] + eps)
    w_f = w * s[:, None, None, None]
    bias = bn['beta'] - bn['mean'] * s
    return w_f, bias


def _prep_weight(w_f, cin_p, cout_p):
    cout, cin, _, _ = w_f.shape
    w9 = jnp.transpose(w_f, (2, 3, 1, 0)).reshape(9, cin, cout)   # (ky*3+kx, Cin, Cout)
    w9 = jnp.pad(w9, ((0, 0), (0, cin_p - cin), (0, cout_p - cout)))
    return w9.astype(jnp.bfloat16)


def prepare_basic_block(raw, eps=1e-5):
    cout, cin = raw['w1'].shape[0], raw['w1'].shape[1]
    cin_p = _round_up(cin, LANE)
    cout_p = _round_up(cout, LANE)
    w1f, b1 = _fold_bn(raw['w1'], raw['bn1'], eps)
    w2f, b2 = _fold_bn(raw['w2'], raw['bn2'], eps)
    return dict(
        cin=cin, cout=cout, cin_p=cin_p, cout_p=cout_p,
        w1=_prep_weight(w1f, cin_p, cout_p),
        w2=_prep_weight(w2f, cout_p, cout_p),
        b1=jnp.pad(b1, (0, cout_p - cout)).reshape(1, cout_p).astype(jnp.float32),
        b2=jnp.pad(b2, (0, cout_p - cout)).reshape(1, cout_p).astype(jnp.float32),
    )


# ----------------------------------------------------------------------------
# BasicBlock.forward: relu(bn2(conv2(relu(bn1(conv1(x))))) + x)
# ----------------------------------------------------------------------------
def basic_block_forward(x_nchw, p):
    # TODO(synk): stride>1 / downsample path not implemented (module default is
    #             stride=1, downsample=None, which is what this covers).
    B, cin, H, W = x_nchw.shape
    assert cin == p['cin'] and p['cin'] == p['cout'], 'identity residual needs cin == cout'

    # NCHW -> NHWC once at the module boundary; channels go on the lane axis.
    x_nhwc = jnp.transpose(x_nchw, (0, 2, 3, 1))
    x_cp = jnp.pad(x_nhwc, ((0, 0), (0, 0), (0, 0), (0, p['cin_p'] - cin)))

    # conv1 + bn1 + relu  (bf16 into the MXU, f32 accumulate/epilogue, bf16 out)
    x_sp = jnp.pad(x_cp, ((0, 0), (1, 1), (1, 1), (0, 0))).astype(jnp.bfloat16)
    y1 = conv3x3_bn_act(x_sp, p['w1'], p['b1'], residual=None, relu=True,
                        out_dtype=jnp.bfloat16)

    # conv2 + bn2 + residual add + relu, fused in one kernel, f32 output.
    res = jnp.pad(x_nhwc, ((0, 0), (0, 0), (0, 0), (0, p['cout_p'] - cin))).astype(jnp.float32)
    y1_sp = jnp.pad(y1, ((0, 0), (1, 1), (1, 1), (0, 0)))
    y2 = conv3x3_bn_act(y1_sp, p['w2'], p['b2'], residual=res, relu=True,
                        out_dtype=jnp.float32)

    out = y2[..., :p['cout']]
    return jnp.transpose(out, (0, 3, 1, 2))


# ----------------------------------------------------------------------------
# Pure-JAX f32 reference (for correctness check) and synthetic params.
# ----------------------------------------------------------------------------
def basic_block_ref(x, raw, eps=1e-5):
    def conv(a, w):
        return jax.lax.conv_general_dilated(
            a, w, window_strides=(1, 1), padding='SAME',
            dimension_numbers=('NCHW', 'OIHW', 'NCHW'))

    def bn(a, q):
        s = q['gamma'] / jnp.sqrt(q['var'] + eps)
        b = q['beta'] - q['mean'] * s
        return a * s[None, :, None, None] + b[None, :, None, None]

    out = jax.nn.relu(bn(conv(x, raw['w1']), raw['bn1']))
    out = bn(conv(out, raw['w2']), raw['bn2'])
    return jax.nn.relu(out + x)


def make_raw_params(key, inplanes, planes):
    ks = iter(jax.random.split(key, 12))

    def nrm(shape, std=0.05):
        return (std * jax.random.normal(next(ks), shape)).astype(jnp.float32)

    def bn(c):
        return dict(
            gamma=(1.0 + 0.1 * jax.random.normal(next(ks), (c,))).astype(jnp.float32),
            beta=(0.05 * jax.random.normal(next(ks), (c,))).astype(jnp.float32),
            mean=(0.05 * jax.random.normal(next(ks), (c,))).astype(jnp.float32),
            var=jnp.abs(1.0 + 0.1 * jax.random.normal(next(ks), (c,))).astype(jnp.float32),
        )

    return dict(w1=nrm((planes, inplanes, 3, 3)), bn1=bn(planes),
                w2=nrm((planes, planes, 3, 3)), bn2=bn(planes))


if __name__ == "__main__":
    B, C, H, W = 2, 64, 16, 16          # inplanes = planes = 64, stride=1, no downsample
    key = jax.random.PRNGKey(0)
    kx, kp = jax.random.split(key)
    x = jax.random.normal(kx, (B, C, H, W), dtype=jnp.float32)
    raw = make_raw_params(kp, C, C)
    prepped = prepare_basic_block(raw)

    fwd = jax.jit(lambda a: basic_block_forward(a, prepped))
    out = jax.block_until_ready(fwd(x))
    assert out.shape == (B, C, H, W), out.shape
    assert bool(jnp.all(jnp.isfinite(out)))

    # Correctness vs pure-JAX f32 reference (loose tolerance: bf16 MXU inputs).
    ref = jax.block_until_ready(basic_block_ref(x, raw))
    err = float(jnp.max(jnp.abs(out - ref)))
    scale = float(jnp.max(jnp.abs(ref))) + 1e-6
    assert err < 0.05 * scale, (err, scale)

    print("KERNEL_OK")
</pallas_src>

<mosaic_0001>
module attributes {stable_mosaic.version = 11 : i64} {
  func.func @_conv3x3_bn_act_kernel(%arg0: i32, %arg1: i32, %arg2: memref<1x18x18x128xbf16, #tpu.memory_space<vmem>>, %arg3: memref<9x128x128xbf16, #tpu.memory_space<vmem>>, %arg4: memref<1x128xf32, #tpu.memory_space<vmem>>, %arg5: memref<1x16x16x128xbf16, #tpu.memory_space<vmem>>) attributes {dimension_semantics = [#tpu.dimension_semantics<parallel>, #tpu.dimension_semantics<parallel>], iteration_bounds = array<i64: 2, 1>, scalar_prefetch = 0 : i64, scratch_operands = 0 : i64, tpu.core_type = #tpu.core_type<tc>, window_params = [{transform_indices = @transform_0, window_bounds = array<i64: 1, 18, 18, 128>}, {transform_indices = @transform_1, window_bounds = array<i64: 9, 128, 128>}, {transform_indices = @transform_2, window_bounds = array<i64: 1, 128>}, {transform_indices = @transform_3, window_bounds = array<i64: 1, 16, 16, 128>}]} {
    %c0 = arith.constant 0 : index
    %c0_0 = arith.constant 0 : index
    %c0_1 = arith.constant 0 : index
    %c0_2 = arith.constant 0 : index
    %0 = vector.load %arg2[%c0, %c0_0, %c0_1, %c0_2] : memref<1x18x18x128xbf16, #tpu.memory_space<vmem>>, vector<1x18x18x128xbf16>
    %1 = vector.shape_cast %0 : vector<1x18x18x128xbf16> to vector<18x18x128xbf16>
    %cst = arith.constant 0.000000e+00 : f32
    %2 = vector.broadcast %cst : f32 to vector<256x128xf32>
    %3 = vector.extract_strided_slice %1 {offsets = [0, 0, 0], sizes = [16, 16, 128], strides = [1, 1, 1]} : vector<18x18x128xbf16> to vector<16x16x128xbf16>
    %4 = vector.shape_cast %3 : vector<16x16x128xbf16> to vector<256x128xbf16>
    %c0_3 = arith.constant 0 : index
    %c0_4 = arith.constant 0 : index
    %c0_5 = arith.constant 0 : index
    %5 = vector.load %arg3[%c0_3, %c0_4, %c0_5] : memref<9x128x128xbf16, #tpu.memory_space<vmem>>, vector<1x128x128xbf16>
    %6 = vector.shape_cast %5 : vector<1x128x128xbf16> to vector<128x128xbf16>
    %cst_6 = arith.constant dense<0.000000e+00> : vector<256x128xf32>
    %7 = tpu.matmul %4, %6, %cst_6 {dimension_numbers = #tpu.dot_dimension_numbers<[1], [0], [0], [1], [0, 0, 1, 1], [], []>} : vector<256x128xbf16>, vector<128x128xbf16>, vector<256x128xf32> -> vector<256x128xf32>
    %8 = arith.addf %2, %7 : vector<256x128xf32>
    %9 = vector.extract_strided_slice %1 {offsets = [0, 1, 0], sizes = [16, 16, 128], strides = [1, 1, 1]} : vector<18x18x128xbf16> to vector<16x16x128xbf16>
    %10 = vector.shape_cast %9 : vector<16x16x128xbf16> to vector<256x128xbf16>
    %c1 = arith.constant 1 : index
    %c0_7 = arith.constant 0 : index
    %c0_8 = arith.constant 0 : index
    %11 = vector.load %arg3[%c1, %c0_7, %c0_8] : memref<9x128x128xbf16, #tpu.memory_space<vmem>>, vector<1x128x128xbf16>
    %12 = vector.shape_cast %11 : vector<1x128x128xbf16> to vector<128x128xbf16>
    %cst_9 = arith.constant dense<0.000000e+00> : vector<256x128xf32>
    %13 = tpu.matmul %10, %12, %cst_9 {dimension_numbers = #tpu.dot_dimension_numbers<[1], [0], [0], [1], [0, 0, 1, 1], [], []>} : vector<256x128xbf16>, vector<128x128xbf16>, vector<256x128xf32> -> vector<256x128xf32>
    %14 = arith.addf %8, %13 : vector<256x128xf32>
    %15 = vector.extract_strided_slice %1 {offsets = [0, 2, 0], sizes = [16, 16, 128], strides = [1, 1, 1]} : vector<18x18x128xbf16> to vector<16x16x128xbf16>
    %16 = vector.shape_cast %15 : vector<16x16x128xbf16> to vector<256x128xbf16>
    %c2 = arith.constant 2 : index
    %c0_10 = arith.constant 0 : index
    %c0_11 = arith.constant 0 : index
    %17 = vector.load %arg3[%c2, %c0_10, %c0_11] : memref<9x128x128xbf16, #tpu.memory_space<vmem>>, vector<1x128x128xbf16>
    %18 = vector.shape_cast %17 : vector<1x128x128xbf16> to vector<128x128xbf16>
    %cst_12 = arith.constant dense<0.000000e+00> : vector<256x128xf32>
    %19 = tpu.matmul %16, %18, %cst_12 {dimension_numbers = #tpu.dot_dimension_numbers<[1], [0], [0], [1], [0, 0, 1, 1], [], []>} : vector<256x128xbf16>, vector<128x128xbf16>, vector<256x128xf32> -> vector<256x128xf32>
    %20 = arith.addf %14, %19 : vector<256x128xf32>
    %21 = vector.extract_strided_slice %1 {offsets = [1, 0, 0], sizes = [16, 16, 128], strides = [1, 1, 1]} : vector<18x18x128xbf16> to vector<16x16x128xbf16>
    %22 = vector.shape_cast %21 : vector<16x16x128xbf16> to vector<256x128xbf16>
    %c3 = arith.constant 3 : index
    %c0_13 = arith.constant 0 : index
    %c0_14 = arith.constant 0 : index
    %23 = vector.load %arg3[%c3, %c0_13, %c0_14] : memref<9x128x128xbf16, #tpu.memory_space<vmem>>, vector<1x128x128xbf16>
    %24 = vector.shape_cast %23 : vector<1x128x128xbf16> to vector<128x128xbf16>
    %cst_15 = arith.constant dense<0.000000e+00> : vector<256x128xf32>
    %25 = tpu.matmul %22, %24, %cst_15 {dimension_numbers = #tpu.dot_dimension_numbers<[1], [0], [0], [1], [0, 0, 1, 1], [], []>} : vector<256x128xbf16>, vector<128x128xbf16>, vector<256x128xf32> -> vector<256x128xf32>
    %26 = arith.addf %20, %25 : vector<256x128xf32>
    %27 = vector.extract_strided_slice %1 {offsets = [1, 1, 0], sizes = [16, 16, 128], strides = [1, 1, 1]} : vector<18x18x128xbf16> to vector<16x16x128xbf16>
    %28 = vector.shape_cast %27 : vector<16x16x128xbf16> to vector<256x128xbf16>
    %c4 = arith.constant 4 : index
    %c0_16 = arith.constant 0 : index
    %c0_17 = arith.constant 0 : index
    %29 = vector.load %arg3[%c4, %c0_16, %c0_17] : memref<9x128x128xbf16, #tpu.memory_space<vmem>>, vector<1x128x128xbf16>
    %30 = vector.shape_cast %29 : vector<1x128x128xbf16> to vector<128x128xbf16>
    %cst_18 = arith.constant dense<0.000000e+00> : vector<256x128xf32>
    %31 = tpu.matmul %28, %30, %cst_18 {dimension_numbers = #tpu.dot_dimension_numbers<[1], [0], [0], [1], [0, 0, 1, 1], [], []>} : vector<256x128xbf16>, vector<128x128xbf16>, vector<256x128xf32> -> vector<256x128xf32>
    %32 = arith.addf %26, %31 : vector<256x128xf32>
    %33 = vector.extract_strided_slice %1 {offsets = [1, 2, 0], sizes = [16, 16, 128], strides = [1, 1, 1]} : vector<18x18x128xbf16> to vector<16x16x128xbf16>
    %34 = vector.shape_cast %33 : vector<16x16x128xbf16> to vector<256x128xbf16>
    %c5 = arith.constant 5 : index
    %c0_19 = arith.constant 0 : index
    %c0_20 = arith.constant 0 : index
    %35 = vector.load %arg3[%c5, %c0_19, %c0_20] : memref<9x128x128xbf16, #tpu.memory_space<vmem>>, vector<1x128x128xbf16>
    %36 = vector.shape_cast %35 : vector<1x128x128xbf16> to vector<128x128xbf16>
    %cst_21 = arith.constant dense<0.000000e+00> : vector<256x128xf32>
    %37 = tpu.matmul %34, %36, %cst_21 {dimension_numbers = #tpu.dot_dimension_numbers<[1], [0], [0], [1], [0, 0, 1, 1], [], []>} : vector<256x128xbf16>, vector<128x128xbf16>, vector<256x128xf32> -> vector<256x128xf32>
    %38 = arith.addf %32, %37 : vector<256x128xf32>
    %39 = vector.extract_strided_slice %1 {offsets = [2, 0, 0], sizes = [16, 16, 128], strides = [1, 1, 1]} : vector<18x18x128xbf16> to vector<16x16x128xbf16>
    %40 = vector.shape_cast %39 : vector<16x16x128xbf16> to vector<256x128xbf16>
    %c6 = arith.constant 6 : index
    %c0_22 = arith.constant 0 : index
    %c0_23 = arith.constant 0 : index
    %41 = vector.load %arg3[%c6, %c0_22, %c0_23] : memref<9x128x128xbf16, #tpu.memory_space<vmem>>, vector<1x128x128xbf16>
    %42 = vector.shape_cast %41 : vector<1x128x128xbf16> to vector<128x128xbf16>
    %cst_24 = arith.constant dense<0.000000e+00> : vector<256x128xf32>
    %43 = tpu.matmul %40, %42, %cst_24 {dimension_numbers = #tpu.dot_dimension_numbers<[1], [0], [0], [1], [0, 0, 1, 1], [], []>} : vector<256x128xbf16>, vector<128x128xbf16>, vector<256x128xf32> -> vector<256x128xf32>
    %44 = arith.addf %38, %43 : vector<256x128xf32>
    %45 = vector.extract_strided_slice %1 {offsets = [2, 1, 0], sizes = [16, 16, 128], strides = [1, 1, 1]} : vector<18x18x128xbf16> to vector<16x16x128xbf16>
    %46 = vector.shape_cast %45 : vector<16x16x128xbf16> to vector<256x128xbf16>
    %c7 = arith.constant 7 : index
    %c0_25 = arith.constant 0 : index
    %c0_26 = arith.constant 0 : index
    %47 = vector.load %arg3[%c7, %c0_25, %c0_26] : memref<9x128x128xbf16, #tpu.memory_space<vmem>>, vector<1x128x128xbf16>
    %48 = vector.shape_cast %47 : vector<1x128x128xbf16> to vector<128x128xbf16>
    %cst_27 = arith.constant dense<0.000000e+00> : vector<256x128xf32>
    %49 = tpu.matmul %46, %48, %cst_27 {dimension_numbers = #tpu.dot_dimension_numbers<[1], [0], [0], [1], [0, 0, 1, 1], [], []>} : vector<256x128xbf16>, vector<128x128xbf16>, vector<256x128xf32> -> vector<256x128xf32>
    %50 = arith.addf %44, %49 : vector<256x128xf32>
    %51 = vector.extract_strided_slice %1 {offsets = [2, 2, 0], sizes = [16, 16, 128], strides = [1, 1, 1]} : vector<18x18x128xbf16> to vector<16x16x128xbf16>
    %52 = vector.shape_cast %51 : vector<16x16x128xbf16> to vector<256x128xbf16>
    %c8 = arith.constant 8 : index
    %c0_28 = arith.constant 0 : index
    %c0_29 = arith.constant 0 : index
    %53 = vector.load %arg3[%c8, %c0_28, %c0_29] : memref<9x128x128xbf16, #tpu.memory_space<vmem>>, vector<1x128x128xbf16>
    %54 = vector.shape_cast %53 : vector<1x128x128xbf16> to vector<128x128xbf16>
    %cst_30 = arith.constant dense<0.000000e+00> : vector<256x128xf32>
    %55 = tpu.matmul %52, %54, %cst_30 {dimension_numbers = #tpu.dot_dimension_numbers<[1], [0], [0], [1], [0, 0, 1, 1], [], []>} : vector<256x128xbf16>, vector<128x128xbf16>, vector<256x128xf32> -> vector<256x128xf32>
    %56 = arith.addf %50, %55 : vector<256x128xf32>
    %c0_31 = arith.constant 0 : index
    %c0_32 = arith.constant 0 : index
    %57 = vector.load %arg4[%c0_31, %c0_32] : memref<1x128xf32, #tpu.memory_space<vmem>>, vector<1x128xf32>
    %58 = vector.broadcast %57 : vector<1x128xf32> to vector<256x128xf32>
    %59 = arith.addf %56, %58 : vector<256x128xf32>
    %cst_33 = arith.constant 0.000000e+00 : f32
    %60 = vector.broadcast %cst_33 : f32 to vector<256x128xf32>
    %61 = arith.maximumf %59, %60 : vector<256x128xf32>
    %62 = vector.shape_cast %61 : vector<256x128xf32> to vector<16x16x128xf32>
    %63 = arith.truncf %62 : vector<16x16x128xf32> to vector<16x16x128xbf16>
    %c0_34 = arith.constant 0 : index
    %c0_35 = arith.constant 0 : index
    %c0_36 = arith.constant 0 : index
    %c0_37 = arith.constant 0 : index
    %64 = vector.load %arg5[%c0_34, %c0_35, %c0_36, %c0_37] : memref<1x16x16x128xbf16, #tpu.memory_space<vmem>>, vector<1x16x16x128xbf16>
    %65 = vector.shape_cast %64 : vector<1x16x16x128xbf16> to vector<16x16x128xbf16>
    %66 = vector.shape_cast %63 : vector<16x16x128xbf16> to vector<1x16x16x128xbf16>
    tpu.vector_store %arg5[%c0_34, %c0_35, %c0_36, %c0_37], %66 {strides = array<i32>} : memref<1x16x16x128xbf16, #tpu.memory_space<vmem>>, vector<1x16x16x128xbf16>,
    return
  }
  func.func @transform_0(%arg0: i32, %arg1: i32) -> (i32, i32, i32, i32) {
    %c0_i32 = arith.constant 0 : i32
    %c0_i32_0 = arith.constant 0 : i32
    %c0_i32_1 = arith.constant 0 : i32
    %c0_i32_2 = arith.constant 0 : i32
    return %arg0, %c0_i32, %c0_i32_0, %c0_i32_1 : i32, i32, i32, i32
  }
  func.func @transform_1(%arg0: i32, %arg1: i32) -> (i32, i32, i32) {
    %c0_i32 = arith.constant 0 : i32
    %c0_i32_0 = arith.constant 0 : i32
    %c0_i32_1 = arith.constant 0 : i32
    return %c0_i32, %c0_i32_0, %arg1 : i32, i32, i32
  }
  func.func @transform_2(%arg0: i32, %arg1: i32) -> (i32, i32) {
    %c0_i32 = arith.constant 0 : i32
    %c0_i32_0 = arith.constant 0 : i32
    return %c0_i32, %arg1 : i32, i32
  }
  func.func @transform_3(%arg0: i32, %arg1: i32) -> (i32, i32, i32, i32) {
    %c0_i32 = arith.constant 0 : i32
    %c0_i32_0 = arith.constant 0 : i32
    %c0_i32_1 = arith.constant 0 : i32
    return %arg0, %c0_i32, %c0_i32_0, %arg1 : i32, i32, i32, i32
  }
}

module attributes {stable_mosaic.version = 11 : i64} {
  func.func @_conv3x3_bn_act_kernel(%arg0: i32, %arg1: i32, %arg2: memref<1x18x18x128xbf16, #tpu.memory_space<vmem>>, %arg3: memref<9x128x128xbf16, #tpu.memory_space<vmem>>, %arg4: memref<1x128xf32, #tpu.memory_space<vmem>>, %arg5: memref<1x16x16x128xf32, #tpu.memory_space<vmem>>, %arg6: memref<1x16x16x128xf32, #tpu.memory_space<vmem>>) attributes {dimension_semantics = [#tpu.dimension_semantics<parallel>, #tpu.dimension_semantics<parallel>], iteration_bounds = array<i64: 2, 1>, scalar_prefetch = 0 : i64, scratch_operands = 0 : i64, tpu.core_type = #tpu.core_type<tc>, window_params = [{transform_indices = @transform_0, window_bounds = array<i64: 1, 18, 18, 128>}, {transform_indices = @transform_1, window_bounds = array<i64: 9, 128, 128>}, {transform_indices = @transform_2, window_bounds = array<i64: 1, 128>}, {transform_indices = @transform_3, window_bounds = array<i64: 1, 16, 16, 128>}, {transform_indices = @transform_4, window_bounds = array<i64: 1, 16, 16, 128>}]} {
    %c0 = arith.constant 0 : index
    %c0_0 = arith.constant 0 : index
    %c0_1 = arith.constant 0 : index
    %c0_2 = arith.constant 0 : index
    %0 = vector.load %arg2[%c0, %c0_0, %c0_1, %c0_2] : memref<1x18x18x128xbf16, #tpu.memory_space<vmem>>, vector<1x18x18x128xbf16>
    %1 = vector.shape_cast %0 : vector<1x18x18x128xbf16> to vector<18x18x128xbf16>
    %cst = arith.constant 0.000000e+00 : f32
    %2 = vector.broadcast %cst : f32 to vector<256x128xf32>
    %3 = vector.extract_strided_slice %1 {offsets = [0, 0, 0], sizes = [16, 16, 128], strides = [1, 1, 1]} : vector<18x18x128xbf16> to vector<16x16x128xbf16>
    %4 = vector.shape_cast %3 : vector<16x16x128xbf16> to vector<256x128xbf16>
    %c0_3 = arith.constant 0 : index
    %c0_4 = arith.constant 0 : index
    %c0_5 = arith.constant 0 : index
    %5 = vector.load %arg3[%c0_3, %c0_4, %c0_5] : memref<9x128x128xbf16, #tpu.memory_space<vmem>>, vector<1x128x128xbf16>
    %6 = vector.shape_cast %5 : vector<1x128x128xbf16> to vector<128x128xbf16>
    %cst_6 = arith.constant dense<0.000000e+00> : vector<256x128xf32>
    %7 = tpu.matmul %4, %6, %cst_6 {dimension_numbers = #tpu.dot_dimension_numbers<[1], [0], [0], [1], [0, 0, 1, 1], [], []>} : vector<256x128xbf16>, vector<128x128xbf16>, vector<256x128xf32> -> vector<256x128xf32>
    %8 = arith.addf %2, %7 : vector<256x128xf32>
    %9 = vector.extract_strided_slice %1 {offsets = [0, 1, 0], sizes = [16, 16, 128], strides = [1, 1, 1]} : vector<18x18x128xbf16> to vector<16x16x128xbf16>
    %10 = vector.shape_cast %9 : vector<16x16x128xbf16> to vector<256x128xbf16>
    %c1 = arith.constant 1 : index
    %c0_7 = arith.constant 0 : index
    %c0_8 = arith.constant 0 : index
    %11 = vector.load %arg3[%c1, %c0_7, %c0_8] : memref<9x128x128xbf16, #tpu.memory_space<vmem>>, vector<1x128x128xbf16>
    %12 = vector.shape_cast %11 : vector<1x128x128xbf16> to vector<128x128xbf16>
    %cst_9 = arith.constant dense<0.000000e+00> : vector<256x128xf32>
    %13 = tpu.matmul %10, %12, %cst_9 {dimension_numbers = #tpu.dot_dimension_numbers<[1], [0], [0], [1], [0, 0, 1, 1], [], []>} : vector<256x128xbf16>, vector<128x128xbf16>, vector<256x128xf32> -> vector<256x128xf32>
    %14 = arith.addf %8, %13 : vector<256x128xf32>
    %15 = vector.extract_strided_slice %1 {offsets = [0, 2, 0], sizes = [16, 16, 128], strides = [1, 1, 1]} : vector<18x18x128xbf16> to vector<16x16x128xbf16>
    %16 = vector.shape_cast %15 : vector<16x16x128xbf16> to vector<256x128xbf16>
    %c2 = arith.constant 2 : index
    %c0_10 = arith.constant 0 : index
    %c0_11 = arith.constant 0 : index
    %17 = vector.load %arg3[%c2, %c0_10, %c0_11] : memref<9x128x128xbf16, #tpu.memory_space<vmem>>, vector<1x128x128xbf16>
    %18 = vector.shape_cast %17 : vector<1x128x128xbf16> to vector<128x128xbf16>
    %cst_12 = arith.constant dense<0.000000e+00> : vector<256x128xf32>
    %19 = tpu.matmul %16, %18, %cst_12 {dimension_numbers = #tpu.dot_dimension_numbers<[1], [0], [0], [1], [0, 0, 1, 1], [], []>} : vector<256x128xbf16>, vector<128x128xbf16>, vector<256x128xf32> -> vector<256x128xf32>
    %20 = arith.addf %14, %19 : vector<256x128xf32>
    %21 = vector.extract_strided_slice %1 {offsets = [1, 0, 0], sizes = [16, 16, 128], strides = [1, 1, 1]} : vector<18x18x128xbf16> to vector<16x16x128xbf16>
    %22 = vector.shape_cast %21 : vector<16x16x128xbf16> to vector<256x128xbf16>
    %c3 = arith.constant 3 : index
    %c0_13 = arith.constant 0 : index
    %c0_14 = arith.constant 0 : index
    %23 = vector.load %arg3[%c3, %c0_13, %c0_14] : memref<9x128x128xbf16, #tpu.memory_space<vmem>>, vector<1x128x128xbf16>
    %24 = vector.shape_cast %23 : vector<1x128x128xbf16> to vector<128x128xbf16>
    %cst_15 = arith.constant dense<0.000000e+00> : vector<256x128xf32>
    %25 = tpu.matmul %22, %24, %cst_15 {dimension_numbers = #tpu.dot_dimension_numbers<[1], [0], [0], [1], [0, 0, 1, 1], [], []>} : vector<256x128xbf16>, vector<128x128xbf16>, vector<256x128xf32> -> vector<256x128xf32>
    %26 = arith.addf %20, %25 : vector<256x128xf32>
    %27 = vector.extract_strided_slice %1 {offsets = [1, 1, 0], sizes = [16, 16, 128], strides = [1, 1, 1]} : vector<18x18x128xbf16> to vector<16x16x128xbf16>
    %28 = vector.shape_cast %27 : vector<16x16x128xbf16> to vector<256x128xbf16>
    %c4 = arith.constant 4 : index
    %c0_16 = arith.constant 0 : index
    %c0_17 = arith.constant 0 : index
    %29 = vector.load %arg3[%c4, %c0_16, %c0_17] : memref<9x128x128xbf16, #tpu.memory_space<vmem>>, vector<1x128x128xbf16>
    %30 = vector.shape_cast %29 : vector<1x128x128xbf16> to vector<128x128xbf16>
    %cst_18 = arith.constant dense<0.000000e+00> : vector<256x128xf32>
    %31 = tpu.matmul %28, %30, %cst_18 {dimension_numbers = #tpu.dot_dimension_numbers<[1], [0], [0], [1], [0, 0, 1, 1], [], []>} : vector<256x128xbf16>, vector<128x128xbf16>, vector<256x128xf32> -> vector<256x128xf32>
    %32 = arith.addf %26, %31 : vector<256x128xf32>
    %33 = vector.extract_strided_slice %1 {offsets = [1, 2, 0], sizes = [16, 16, 128], strides = [1, 1, 1]} : vector<18x18x128xbf16> to vector<16x16x128xbf16>
    %34 = vector.shape_cast %33 : vector<16x16x128xbf16> to vector<256x128xbf16>
    %c5 = arith.constant 5 : index
    %c0_19 = arith.constant 0 : index
    %c0_20 = arith.constant 0 : index
    %35 = vector.load %arg3[%c5, %c0_19, %c0_20] : memref<9x128x128xbf16, #tpu.memory_space<vmem>>, vector<1x128x128xbf16>
    %36 = vector.shape_cast %35 : vector<1x128x128xbf16> to vector<128x128xbf16>
    %cst_21 = arith.constant dense<0.000000e+00> : vector<256x128xf32>
    %37 = tpu.matmul %34, %36, %cst_21 {dimension_numbers = #tpu.dot_dimension_numbers<[1], [0], [0], [1], [0, 0, 1, 1], [], []>} : vector<256x128xbf16>, vector<128x128xbf16>, vector<256x128xf32> -> vector<256x128xf32>
    %38 = arith.addf %32, %37 : vector<256x128xf32>
    %39 = vector.extract_strided_slice %1 {offsets = [2, 0, 0], sizes = [16, 16, 128], strides = [1, 1, 1]} : vector<18x18x128xbf16> to vector<16x16x128xbf16>
    %40 = vector.shape_cast %39 : vector<16x16x128xbf16> to vector<256x128xbf16>
    %c6 = arith.constant 6 : index
    %c0_22 = arith.constant 0 : index
    %c0_23 = arith.constant 0 : index
    %41 = vector.load %arg3[%c6, %c0_22, %c0_23] : memref<9x128x128xbf16, #tpu.memory_space<vmem>>, vector<1x128x128xbf16>
    %42 = vector.shape_cast %41 : vector<1x128x128xbf16> to vector<128x128xbf16>
    %cst_24 = arith.constant dense<0.000000e+00> : vector<256x128xf32>
    %43 = tpu.matmul %40, %42, %cst_24 {dimension_numbers = #tpu.dot_dimension_numbers<[1], [0], [0], [1], [0, 0, 1, 1], [], []>} : vector<256x128xbf16>, vector<128x128xbf16>, vector<256x128xf32> -> vector<256x128xf32>
    %44 = arith.addf %38, %43 : vector<256x128xf32>
    %45 = vector.extract_strided_slice %1 {offsets = [2, 1, 0], sizes = [16, 16, 128], strides = [1, 1, 1]} : vector<18x18x128xbf16> to vector<16x16x128xbf16>
    %46 = vector.shape_cast %45 : vector<16x16x128xbf16> to vector<256x128xbf16>
    %c7 = arith.constant 7 : index
    %c0_25 = arith.constant 0 : index
    %c0_26 = arith.constant 0 : index
    %47 = vector.load %arg3[%c7, %c0_25, %c0_26] : memref<9x128x128xbf16, #tpu.memory_space<vmem>>, vector<1x128x128xbf16>
    %48 = vector.shape_cast %47 : vector<1x128x128xbf16> to vector<128x128xbf16>
    %cst_27 = arith.constant dense<0.000000e+00> : vector<256x128xf32>
    %49 = tpu.matmul %46, %48, %cst_27 {dimension_numbers = #tpu.dot_dimension_numbers<[1], [0], [0], [1], [0, 0, 1, 1], [], []>} : vector<256x128xbf16>, vector<128x128xbf16>, vector<256x128xf32> -> vector<256x128xf32>
    %50 = arith.addf %44, %49 : vector<256x128xf32>
    %51 = vector.extract_strided_slice %1 {offsets = [2, 2, 0], sizes = [16, 16, 128], strides = [1, 1, 1]} : vector<18x18x128xbf16> to vector<16x16x128xbf16>
    %52 = vector.shape_cast %51 : vector<16x16x128xbf16> to vector<256x128xbf16>
    %c8 = arith.constant 8 : index
    %c0_28 = arith.constant 0 : index
    %c0_29 = arith.constant 0 : index
    %53 = vector.load %arg3[%c8, %c0_28, %c0_29] : memref<9x128x128xbf16, #tpu.memory_space<vmem>>, vector<1x128x128xbf16>
    %54 = vector.shape_cast %53 : vector<1x128x128xbf16> to vector<128x128xbf16>
    %cst_30 = arith.constant dense<0.000000e+00> : vector<256x128xf32>
    %55 = tpu.matmul %52, %54, %cst_30 {dimension_numbers = #tpu.dot_dimension_numbers<[1], [0], [0], [1], [0, 0, 1, 1], [], []>} : vector<256x128xbf16>, vector<128x128xbf16>, vector<256x128xf32> -> vector<256x128xf32>
    %56 = arith.addf %50, %55 : vector<256x128xf32>
    %c0_31 = arith.constant 0 : index
    %c0_32 = arith.constant 0 : index
    %57 = vector.load %arg4[%c0_31, %c0_32] : memref<1x128xf32, #tpu.memory_space<vmem>>, vector<1x128xf32>
    %58 = vector.broadcast %57 : vector<1x128xf32> to vector<256x128xf32>
    %59 = arith.addf %56, %58 : vector<256x128xf32>
    %c0_33 = arith.constant 0 : index
    %c0_34 = arith.constant 0 : index
    %c0_35 = arith.constant 0 : index
    %c0_36 = arith.constant 0 : index
    %60 = vector.load %arg5[%c0_33, %c0_34, %c0_35, %c0_36] : memref<1x16x16x128xf32, #tpu.memory_space<vmem>>, vector<1x16x16x128xf32>
    %61 = vector.shape_cast %60 : vector<1x16x16x128xf32> to vector<16x16x128xf32>
    %62 = vector.shape_cast %61 : vector<16x16x128xf32> to vector<256x128xf32>
    %63 = arith.addf %59, %62 : vector<256x128xf32>
    %cst_37 = arith.constant 0.000000e+00 : f32
    %64 = vector.broadcast %cst_37 : f32 to vector<256x128xf32>
    %65 = arith.maximumf %63, %64 : vector<256x128xf32>
    %66 = vector.shape_cast %65 : vector<256x128xf32> to vector<16x16x128xf32>
    %c0_38 = arith.constant 0 : index
    %c0_39 = arith.constant 0 : index
    %c0_40 = arith.constant 0 : index
    %c0_41 = arith.constant 0 : index
    %67 = vector.load %arg6[%c0_38, %c0_39, %c0_40, %c0_41] : memref<1x16x16x128xf32, #tpu.memory_space<vmem>>, vector<1x16x16x128xf32>
    %68 = vector.shape_cast %67 : vector<1x16x16x128xf32> to vector<16x16x128xf32>
    %69 = vector.shape_cast %66 : vector<16x16x128xf32> to vector<1x16x16x128xf32>
    tpu.vector_store %arg6[%c0_38, %c0_39, %c0_40, %c0_41], %69 {strides = array<i32>} : memref<1x16x16x128xf32, #tpu.memory_space<vmem>>, vector<1x16x16x128xf32>,
    return
  }
  func.func @transform_0(%arg0: i32, %arg1: i32) -> (i32, i32, i32, i32) {
    %c0_i32 = arith.constant 0 : i32
    %c0_i32_0 = arith.constant 0 : i32
    %c0_i32_1 = arith.constant 0 : i32
    %c0_i32_2 = arith.constant 0 : i32
    return %arg0, %c0_i32, %c0_i32_0, %c0_i32_1 : i32, i32, i32, i32
  }
  func.func @transform_1(%arg0: i32, %arg1: i32) -> (i32, i32, i32) {
    %c0_i32 = arith.constant 0 : i32
    %c0_i32_0 = arith.constant 0 : i32
    %c0_i32_1 = arith.constant 0 : i32
    return %c0_i32, %c0_i32_0, %arg1 : i32, i32, i32
  }
  func.func @transform_2(%arg0: i32, %arg1: i32) -> (i32, i32) {
    %c0_i32 = arith.constant 0 : i32
    %c0_i32_0 = arith.constant 0 : i32
    return %c0_i32, %arg1 : i32, i32
  }
  func.func @transform_3(%arg0: i32, %arg1: i32) -> (i32, i32, i32, i32) {
    %c0_i32 = arith.constant 0 : i32
    %c0_i32_0 = arith.constant 0 : i32
    %c0_i32_1 = arith.constant 0 : i32
    return %arg0, %c0_i32, %c0_i32_0, %arg1 : i32, i32, i32, i32
  }
  func.func @transform_4(%arg0: i32, %arg1: i32) -> (i32, i32, i32, i32) {
    %c0_i32 = arith.constant 0 : i32
    %c0_i32_0 = arith.constant 0 : i32
    %c0_i32_1 = arith.constant 0 : i32
    return %arg0, %c0_i32, %c0_i32_0, %arg1 : i32, i32, i32, i32
  }
}

</mosaic_0001>

<bundles_post_ra>
// kernel: _lambda_.3
= control target key start
LH: loop header
LB: loop body
LE: loop exit
PB: predicated region body
PF: predicated region fallthrough
CT: control target
= control target key end

     0   :  { %s4842_s15 = smov 0   ;;  %s4844_s16 = smov 0   ;;  %s6412_s0 = inlined_call_operand.vmem [shape: bf16[2,18,18,128], index: 0, kind: input, shape index: {}]   ;;  %s6413_s1 = inlined_call_operand.vmem [shape: bf16[9,128,128], index: 1, kind: input, shape index: {}]   ;;  %s6414_s2 = inlined_call_operand.vmem [shape: f32[1,128], index: 2, kind: input, shape index: {}]   ;;  %s6415_s3 = inlined_call_operand.vmem [shape: f32[2,16,16,128], index: 3, kind: input, shape index: {}]   ;;  %s6416_s4 = inlined_call_operand.vmem [shape: f32[2,16,16,128], index: 4, kind: output, shape index: {}]  }
   0x1   :  { %s4846_s17 = smov 0  }
   0x2 LB: > { %s26_s18 = sadd.s32 1, %s4811_s16  ;;  %p3722_p0 = scmp.ge.s32.totalorder %s4815_s17, 1  ;;  %s4815_s17 = sphi %s4846_s17, %s14_s17   ;;  %s4811_s16 = sphi %s4844_s16, %s6602_s16   ;;  %s4807_s15 = sphi %s4842_s15, %s6601_s15  }
   0x3   : > { %p28_p1 = scmp.ge.s32.totalorder %s26_s18, 2  ;;  %p208_p2 = scmp.lt.s32.totalorder %s4815_s17, 3 }
   0x5   : > { %s6604_s18 = smov (%p28_p1, %s26_s18), 0  ;;  %p209_p3 = pnand %p3722_p0, %p208_p2 }
   0x7   : > { %212 = sbr.rel (%p209_p3) target bundleno = 560 (0x230), region = 36 }
   0xc   : > { %v4694_v0 = vld [vmem:[%s6413_s1 + $0x78] sm:$0xff]   ;;  %p252_p4 = scmp.lt.s32.totalorder %s4807_s15, 1  ;;  %v4695_v1 = vld [vmem:[%s6413_s1 + $0x70] sm:$0xff]   ;;  %v4696_v2 = vld [vmem:[%s6413_s1 + $0x68] sm:$0xff]   ;;  %vm351_vm0 = vsmask.f32 3328 }
   0xd   : > { %4221 = vmatprep.subr.bf16.mxu0 %v4694_v0  ;;  %4653 = vmatprep.subr.bf16.mxu1 %v4694_v0  ;;  %v4697_v3 = vld [vmem:[%s6413_s1 + $0x60] sm:$0xff]   ;;  %vm352_vm1 = vsmask.f32 7440  ;;  %v4698_v9 = vld [vmem:[%s6413_s1 + $0x58] sm:$0xff]   ;;  %v4699_v28 = vld [vmem:[%s6413_s1 + $0x50] sm:$0xff]   ;;  %v6453_v29 = vmov 0 }
   0xe   : > { %s6606_s15 = smov (!%p252_p4, %s4807_s15), 1  ;;  %4222 = vmatpush3.bf16.msra.mxu0 %v4694_v0  ;;  %4661 = vmatpush3.bf16.msra.mxu1 %v4694_v0  ;;  %vm4909_vm2 = vmor %vm351_vm0, %vm352_vm1  ;;  %v4700_v59 = vld [vmem:[%s6413_s1 + $0x48] sm:$0xff]   ;;  %vm1349_vm3 = vcmask 1042432   ;;  %vm1350_vm4 = vcmask 1046532  }
   0xf   : > { %4223 = vmatprep.subr.bf16.mxu0 %v4695_v1  ;;  %4654 = vmatprep.subr.bf16.mxu1 %v4695_v1  ;;  %s4669_s25 = smul.u32 216, %s6606_s15  ;;  %v6454_v29 = vsel %vm4909_vm2, 4294967295, %v6453_v29  ;;  %vm5255_vm5 = vmor %vm1349_vm3, %vm1350_vm4 }
  0x10   : > { %6455 = vst [vmem:[#allocation2_spill] sm:$0xff] %v6454_v29 }
  0x11   : > { %s4875_s28 = scalar_lea.vmem %s6412_s0, %s4669_s25 }
  0x12   : > { %4224 = vmatpush3.bf16.msra.mxu0 %v4695_v1  ;;  %4662 = vmatpush3.bf16.msra.mxu1 %v4695_v1  ;;  %v4881_v4 = vld [vmem:[%s4875_s28] sm:$0xf]  ;;  %v4884_v5 = vld [vmem:[%s4875_s28 + $0x4] sm:$0xf]  ;;  %v4887_v6 = vld [vmem:[%s4875_s28 + $0x8] sm:$0x1] }
  0x13   : > { %4225 = vmatprep.subr.bf16.mxu0 %v4696_v2  ;;  %4655 = vmatprep.subr.bf16.mxu1 %v4696_v2  ;;  %v355_v7 = vshrl.u32 %v4881_v4, 16  ;;  %v358_v8 = vshll.u32 %v4881_v4, 16  ;;  %v364_v10 = vshll.u32 %v4884_v5, 16  ;;  %v368_v11 = vshrl.u32 %v4884_v5, 16  ;;  %v305_v14 = vld [vmem:[%s4875_s28 + $0x60] sm:$0xf] }
  0x14   : > { %v374_v12 = vshll.u32 %v4887_v6, 16  ;;  %v306_v17 = vld [vmem:[%s4875_s28 + $0x64] sm:$0xf]  ;;  %v307_v18 = vld [vmem:[%s4875_s28 + $0x68] sm:$0x1]  ;;  %v547_v22 = vshrl.u32 %v305_v14, 16 }
  0x15   : > { %v357_v15 = vrot.slane %v355_v7, 4  ;;  %v360_v16 = vrot.slane %v358_v8, 5  ;;  %v366_v19 = vrot.slane %v364_v10, 5  ;;  %v370_v20 = vrot.slane %v368_v11, 4  ;;  %v4902_v23 = vld [vmem:[%s4875_s28 + $0xc] sm:$0xf] }
  0x16   : > { %4226 = vmatpush3.bf16.msra.mxu0 %v4696_v2  ;;  %4663 = vmatpush3.bf16.msra.mxu1 %v4696_v2  ;;  %v376_v21 = vrot.slane %v374_v12, 5  ;;  %v550_v25 = vshll.u32 %v305_v14, 16  ;;  %v556_v26 = vshll.u32 %v306_v17, 16  ;;  %v560_v27 = vshrl.u32 %v306_v17, 16  ;;  %v4914_v33 = vld [vmem:[%s4875_s28 + $0x10] sm:$0xf] }
  0x17   : > { %4227 = vmatprep.subr.bf16.mxu0 %v4697_v3  ;;  %4656 = vmatprep.subr.bf16.mxu1 %v4697_v3  ;;  %v361_v24 = vor.u32 %v360_v16, %v357_v15  ;;  %v371_v30 = vor.u32 %v370_v20, %v366_v19  ;;  %v549_v31 = vrot.slane %v547_v22, 4  ;;  %v566_v32 = vshll.u32 %v307_v18, 16  ;;  %v4918_v39 = vld [vmem:[%s4875_s28 + $0x14] sm:$0x1]  ;;  %v308_v44 = vld [vmem:[%s4875_s28 + $0x6c] sm:$0xf] }
  0x18   : > { %v379_v34 = vshrl.u32 %v4902_v23, 16  ;;  %v552_v36 = vrot.slane %v550_v25, 5  ;;  %v558_v37 = vrot.slane %v556_v26, 5  ;;  %v562_v38 = vrot.slane %v560_v27, 4  ;;  %v309_v49 = vld [vmem:[%s4875_s28 + $0x70] sm:$0xf] }
  0x19   : > { %v362_v35 = vrot.slane %v361_v24, 4  ;;  %v372_v40 = vrot.slane %v371_v30, 4  ;;  %v568_v41 = vrot.slane %v566_v32, 5  ;;  %v382_v43 = vshll.u32 %v4902_v23, 16  ;;  %v310_v54 = vld [vmem:[%s4875_s28 + $0x74] sm:$0x1] }
  0x1a   : > { %4228 = vmatpush3.bf16.msra.mxu0 %v4697_v3  ;;  %4664 = vmatpush3.bf16.msra.mxu1 %v4697_v3  ;;  %v381_v42 = vrot.slane %v379_v34, 4  ;;  %v553_v46 = vor.u32 %v552_v36, %v549_v31  ;;  %v563_v47 = vor.u32 %v562_v38, %v558_v37  ;;  %v388_v48 = vshll.u32 %v4914_v33, 16  ;;  %v4942_v16 = vld [vmem:[%s4875_s28 + $0x18] sm:$0xf]  ;;  %v4701_v17 = vld [vmem:[%s6413_s1 + $0x40] sm:$0xff]  }
  0x1b   : > { %4229 = vmatprep.subr.bf16.mxu0 %v4698_v9  ;;  %4657 = vmatprep.subr.bf16.mxu1 %v4698_v9  ;;  %v367_v45 = vsel %vm4909_vm2, %v362_v35, %v366_v19  ;;  %v377_v50 = vsel %vm4909_vm2, %v372_v40, %v376_v21  ;;  %v384_v51 = vrot.slane %v382_v43, 5  ;;  %v392_v52 = vshrl.u32 %v4914_v33, 16  ;;  %v4950_v21 = vld [vmem:[%s4875_s28 + $0x1c] sm:$0xf]  ;;  %v4958_v27 = vld [vmem:[%s4875_s28 + $0x20] sm:$0x1] }
  0x1c   : > { %v398_v53 = vshll.u32 %v4918_v39, 16  ;;  %v3744_v55 = vcombine.low %v367_v45, %v377_v50  ;;  %v554_v56 = vrot.slane %v553_v46, 4  ;;  %v564_v57 = vrot.slane %v563_v47, 4  ;;  %v311_v35 = vld [vmem:[%s4875_s28 + $0x78] sm:$0xf] }
  0x1d   : > { %v390_v58 = vrot.slane %v388_v48, 5  ;;  %v385_v60 = vor.u32 %v384_v51, %v381_v42  ;;  %v394_v61 = vrot.slane %v392_v52, 4  ;;  %v571_v2 = vshrl.u32 %v308_v44, 16  ;;  %v4702_v42 = vld [vmem:[%s6413_s1 + $0x38] sm:$0xff]  }
  0x1e   : > { %4230 = vmatpush3.bf16.msra.mxu0 %v4698_v9  ;;  %4665 = vmatpush3.bf16.msra.mxu1 %v4698_v9  ;;  %v400_v62 = vrot.slane %v398_v53, 5  ;;  %v559_v0 = vsel %vm4909_vm2, %v554_v56, %v558_v37  ;;  %v569_v1 = vsel %vm4909_vm2, %v564_v57, %v568_v41  ;;  %v574_v3 = vshll.u32 %v308_v44, 16  ;;  %v4970_v41 = vld [vmem:[%s4875_s28 + $0x7c] sm:$0xf]  ;;  %v4984_v57 = vld [vmem:[%s4875_s28 + $0x24] sm:$0xf] }
  0x1f   : > { %4231 = vmatprep.subr.bf16.mxu0 %v4699_v28  ;;  %4658 = vmatprep.subr.bf16.mxu1 %v4699_v28  ;;  %v4939_v7 = vcombine.low %v559_v0, %v569_v1  ;;  %v386_v8 = vrot.slane %v385_v60, 4  ;;  %v395_v9 = vor.u32 %v394_v61, %v390_v58  ;;  %v580_v10 = vshll.u32 %v309_v49, 16  ;;  %v4703_v43 = vld [vmem:[%s6413_s1 + $0xb8] sm:$0xff]   ;;  %v4993_v0 = vld [vmem:[%s4875_s28 + $0x28] sm:$0xf] }
  0x20   : > { %4237 = vmatprep.mubr.bf16.mxu0 %v3744_v55  ;;  %v573_v11 = vrot.slane %v571_v2, 4  ;;  %v576_v12 = vrot.slane %v574_v3, 5  ;;  %v584_v14 = vshrl.u32 %v309_v49, 16  ;;  %v590_v15 = vshll.u32 %v310_v54, 16  ;;  %v313_v55 = vld [vmem:[%s4875_s28 + $0x80] sm:$0x1] }
  0x21   : > { %6456 = vst [vmem:[#allocation3_spill] sm:$0xff] %v4939_v7  ;;  %v391_v18 = vsel %vm4909_vm2, %v386_v8, %v390_v58  ;;  %v396_v19 = vrot.slane %v395_v9, 4  ;;  %v582_v20 = vrot.slane %v580_v10, 5  ;;  %v4954_v22 = vcombine.low %v4902_v23, %v4914_v33  ;;  %4253 = vmatprep.mubr.bf16.mxu1 %v4939_v7  ;;  %v4705_v2 = vld [vmem:[%s6413_s1 + $0xb0] sm:$0xff]   ;;  %v5001_v10 = vld [vmem:[%s4875_s28 + $0x2c] sm:$0x1] }
  0x22   : > { %4232 = vmatpush3.bf16.msra.mxu0 %v4699_v28  ;;  %4666 = vmatpush3.bf16.msra.mxu1 %v4699_v28  ;;  %v577_v24 = vor.u32 %v576_v12, %v573_v11  ;;  %v586_v25 = vrot.slane %v584_v14, 4  ;;  %v592_v26 = vrot.slane %v590_v15, 5  ;;  %v403_v28 = vshrl.u32 %v4942_v16, 16  ;;  %v5004_v11 = vld [vmem:[%s4875_s28 + $0x84] sm:$0xf] }
  0x23   : > { %4233 = vmatprep.subr.bf16.mxu0 %v4700_v59  ;;  %4659 = vmatprep.subr.bf16.mxu1 %v4700_v59  ;;  %v401_v30 = vsel %vm4909_vm2, %v396_v19, %v400_v62  ;;  %v406_v31 = vshll.u32 %v4942_v16, 16  ;;  %v412_v32 = vshll.u32 %v4950_v21, 16  ;;  %v416_v34 = vshrl.u32 %v4950_v21, 16 }
  0x24   : > { %v4967_v36 = vcombine.low %v391_v18, %v401_v30  ;;  %v578_v37 = vrot.slane %v577_v24, 4  ;;  %v587_v38 = vor.u32 %v586_v25, %v582_v20  ;;  %v405_v40 = vrot.slane %v403_v28, 4  ;;  %v5008_v18 = vld [vmem:[%s4875_s28 + $0x88] sm:$0xf] }
  0x25   : > { %v408_v44 = vrot.slane %v406_v31, 5  ;;  %v414_v45 = vrot.slane %v412_v32, 5  ;;  %v418_v46 = vrot.slane %v416_v34, 4  ;;  %v422_v47 = vshll.u32 %v4958_v27, 16  ;;  %v4707_v28 = vld [vmem:[%s6413_s1 + $0xa8] sm:$0xff]  }
  0x26   : > { %4234 = vmatpush3.bf16.msra.mxu0 %v4700_v59  ;;  %4667 = vmatpush3.bf16.msra.mxu1 %v4700_v59  ;;  %6457 = vst [vmem:[#allocation4_spill] sm:$0xff] %v4967_v36  ;;  %v583_v48 = vsel %vm4909_vm2, %v578_v37, %v582_v20  ;;  %v588_v49 = vrot.slane %v587_v38, 4  ;;  %v595_v50 = vshrl.u32 %v311_v35, 16  ;;  %v598_v51 = vshll.u32 %v311_v35, 16  ;;  %v4704_v59 = vld [vmem:[%s6413_s1 + $0x30] sm:$0xff]  }
  0x27   : > { %4235 = vmatprep.subr.bf16.mxu0 %v4701_v17  ;;  %4660 = vmatprep.subr.bf16.mxu1 %v4701_v17  ;;  %v409_v52 = vor.u32 %v408_v44, %v405_v40  ;;  %v419_v53 = vor.u32 %v418_v46, %v414_v45  ;;  %v424_v54 = vrot.slane %v422_v47, 5  ;;  %v604_v56 = vshll.u32 %v4970_v41, 16  ;;  %v5028_v44 = vld [vmem:[%s4875_s28 + $0x8c] sm:$0x1] }
  0x28   : > { %v593_v58 = vsel %vm4909_vm2, %v588_v49, %v592_v26  ;;  %v597_v60 = vrot.slane %v595_v50, 4  ;;  %v600_v61 = vrot.slane %v598_v51, 5  ;;  %v608_v62 = vshrl.u32 %v4970_v41, 16  ;;  %v4706_v26 = vld [vmem:[%s6413_s1 + $0x28] sm:$0xff]   ;;  %v5038_v51 = vld [vmem:[%s4875_s28 + $0x30] sm:$0xf] }
  0x29   : > { %v4995_v1 = vcombine.low %v583_v48, %v593_v58  ;;  %v410_v3 = vrot.slane %v409_v52, 4  ;;  %v420_v8 = vrot.slane %v419_v53, 4  ;;  %v606_v9 = vrot.slane %v604_v56, 5 }
  0x2a   : > { %4236 = vmatpush3.bf16.msra.mxu0 %v4701_v17  ;;  %4668 = vmatpush3.bf16.msra.mxu1 %v4701_v17  ;;  %v601_v12 = vor.u32 %v600_v61, %v597_v60  ;;  %v610_v14 = vrot.slane %v608_v62, 4  ;;  %v614_v15 = vshll.u32 %v313_v55, 16  ;;  %v427_v17 = vshrl.u32 %v4984_v57, 16  ;;  %v4709_v62 = vld [vmem:[%s6413_s1 + $0xa0] sm:$0xff]  }
  0x2b   : > { %6458 = vst [vmem:[#allocation5_spill] sm:$0xff] %v4995_v1  ;;  %4269 = vmatprep.subr.bf16.mxu1 %v4702_v42  ;;  %4317 = vmatprep.subr.bf16.mxu0 %v4703_v43  ;;  %v415_v19 = vsel %vm4909_vm2, %v410_v3, %v414_v45  ;;  %v425_v20 = vsel %vm4909_vm2, %v420_v8, %v424_v54  ;;  %v430_v24 = vshll.u32 %v4984_v57, 16  ;;  %v436_v25 = vshll.u32 %v4993_v0, 16 }
  0x2c   : > { %v5024_v30 = vcombine.low %v415_v19, %v425_v20  ;;  %v602_v31 = vrot.slane %v601_v12, 4  ;;  %v611_v32 = vor.u32 %v610_v14, %v606_v9  ;;  %v616_v34 = vrot.slane %v614_v15, 5  ;;  %v5060_v19 = vld [vmem:[%s4875_s28 + $0x38] sm:$0x1] }
  0x2d   : > { %4238 = vmatmul.mubr.bf16.vlgmr.msra.gmra.mxu0 %v4967_v36  ;;  %4254 = vmatmul.mubr.bf16.vlgmr.msra.gmra.mxu1 %v4995_v1  ;;  %v429_v35 = vrot.slane %v427_v17, 4  ;;  %v432_v37 = vrot.slane %v430_v24, 5  ;;  %v438_v38 = vrot.slane %v436_v25, 5  ;;  %v440_v40 = vshrl.u32 %v4993_v0, 16  ;;  %v5206_v1 = vld [vmem:[%s4875_s28 + $0x58] sm:$0xf] }
  0x2e   : > { %4270 = vmatpush3.bf16.msra.mxu1 %v4702_v42  ;;  %4318 = vmatpush3.bf16.msra.mxu0 %v4703_v43  ;;  %6459 = vst [vmem:[#allocation6_spill] sm:$0xff] %v5024_v30  ;;  %v607_v42 = vsel %vm4909_vm2, %v602_v31, %v606_v9  ;;  %v612_v43 = vrot.slane %v611_v32, 4  ;;  %v446_v45 = vshll.u32 %v5001_v10, 16  ;;  %v619_v46 = vshrl.u32 %v5004_v11, 16 }
  0x2f   : > { %4271 = vmatprep.subr.bf16.mxu1 %v4704_v59  ;;  %4319 = vmatprep.subr.bf16.mxu0 %v4705_v2  ;;  %v433_v47 = vor.u32 %v432_v37, %v429_v35  ;;  %v442_v48 = vrot.slane %v440_v40, 4  ;;  %v622_v49 = vshll.u32 %v5004_v11, 16  ;;  %v628_v50 = vshll.u32 %v5008_v18, 16 }
  0x30   : > { %4241 = vmatprep.mubr.bf16.mxu0 %v5024_v30  ;;  %v617_v52 = vsel %vm4909_vm2, %v612_v43, %v616_v34  ;;  %v448_v53 = vrot.slane %v446_v45, 5  ;;  %v621_v54 = vrot.slane %v619_v46, 4  ;;  %v632_v55 = vshrl.u32 %v5008_v18, 16  ;;  %v5065_v34 = vld [vmem:[%s4875_s28 + $0x90] sm:$0xf] }
  0x31   : > { %v5043_v56 = vcombine.low %v607_v42, %v617_v52  ;;  %v434_v58 = vrot.slane %v433_v47, 4  ;;  %v443_v60 = vor.u32 %v442_v48, %v438_v38  ;;  %v624_v61 = vrot.slane %v622_v49, 5  ;;  %v5071_v42 = vld [vmem:[%s4875_s28 + $0x94] sm:$0xf]  ;;  %v5080_v47 = vld [vmem:[%s4875_s28 + $0x98] sm:$0x1] }
  0x32   : > { %4272 = vmatpush3.bf16.msra.mxu1 %v4704_v59  ;;  %4320 = vmatpush3.bf16.msra.mxu0 %v4705_v2  ;;  %v4708_v59 = vld [vmem:[%s6413_s1 + $0x20] sm:$0xff]   ;;  %v5052_v2 = vld [vmem:[%s4875_s28 + $0x34] sm:$0xf]  ;;  %v630_v3 = vrot.slane %v628_v50, 5  ;;  %v634_v8 = vrot.slane %v632_v55, 4  ;;  %v638_v9 = vshll.u32 %v5028_v44, 16 }
  0x33   : > { %6460 = vst [vmem:[#allocation7_spill] sm:$0xff] %v5043_v56  ;;  %4273 = vmatprep.subr.bf16.mxu1 %v4706_v26  ;;  %4321 = vmatprep.subr.bf16.mxu0 %v4707_v28  ;;  %v451_v12 = vshrl.u32 %v5038_v51, 16  ;;  %v439_v14 = vsel %vm4909_vm2, %v434_v58, %v438_v38  ;;  %v444_v15 = vrot.slane %v443_v60, 4  ;;  %v625_v17 = vor.u32 %v624_v61, %v621_v54  ;;  %v4711_v48 = vld [vmem:[%s6413_s1 + $0x98] sm:$0xff]   ;;  %v5092_v55 = vld [vmem:[%s4875_s28 + $0x40] sm:$0xf] }
  0x34   : > { %4257 = vmatprep.mubr.bf16.mxu1 %v5043_v56  ;;  %v454_v20 = vshll.u32 %v5038_v51, 16  ;;  %v635_v24 = vor.u32 %v634_v8, %v630_v3  ;;  %v640_v25 = vrot.slane %v638_v9, 5  ;;  %v460_v32 = vshll.u32 %v5052_v2, 16  ;;  %v5089_v54 = vld [vmem:[%s4875_s28 + $0x3c] sm:$0xf]  ;;  %v4712_v58 = vld [vmem:[%s6413_s1 + $0x10] sm:$0xff]  }
  0x35   : > { %v453_v31 = vrot.slane %v451_v12, 4  ;;  %v449_v35 = vsel %vm4909_vm2, %v444_v15, %v448_v53  ;;  %v626_v37 = vrot.slane %v625_v17, 4  ;;  %v464_v40 = vshrl.u32 %v5052_v2, 16  ;;  %v4713_v9 = vld [vmem:[%s6413_s1 + $0x90] sm:$0xff]  }
  0x36   : > { %4274 = vmatpush3.bf16.msra.mxu1 %v4706_v26  ;;  %4322 = vmatpush3.bf16.msra.mxu0 %v4707_v28  ;;  %v456_v38 = vrot.slane %v454_v20, 5  ;;  %v4710_v26 = vld [vmem:[%s6413_s1 + $0x18] sm:$0xff]   ;;  %v5076_v28 = vcombine.low %v439_v14, %v449_v35  ;;  %v636_v43 = vrot.slane %v635_v24, 4  ;;  %v462_v45 = vrot.slane %v460_v32, 5 }
  0x37   : > { %4275 = vmatprep.subr.bf16.mxu1 %v4708_v59  ;;  %4323 = vmatprep.subr.bf16.mxu0 %v4709_v62  ;;  %v470_v46 = vshll.u32 %v5060_v19, 16  ;;  %v631_v49 = vsel %vm4909_vm2, %v626_v37, %v630_v3  ;;  %v466_v52 = vrot.slane %v464_v40, 4  ;;  %v643_v53 = vshrl.u32 %v5065_v34, 16  ;;  %v5113_v32 = vld [vmem:[%s4875_s28 + $0x9c] sm:$0xf] }
  0x38   : > { %6461 = vst [vmem:[#allocation8_spill] sm:$0xff] %v5076_v28  ;;  %v457_v50 = vor.u32 %v456_v38, %v453_v31  ;;  %4242 = vmatmul.mubr.bf16.gmra.mxu0 %v5076_v28  ;;  %v641_v60 = vsel %vm4909_vm2, %v636_v43, %v640_v25  ;;  %v646_v3 = vshll.u32 %v5065_v34, 16  ;;  %v652_v8 = vshll.u32 %v5071_v42, 16  ;;  %v5110_v31 = vld [vmem:[%s4875_s28 + $0x44] sm:$0x1] }
  0x39   : > { %v472_v61 = vrot.slane %v470_v46, 5  ;;  %v5105_v12 = vcombine.low %v631_v49, %v641_v60  ;;  %v467_v15 = vor.u32 %v466_v52, %v462_v45  ;;  %v645_v17 = vrot.slane %v643_v53, 4  ;;  %v5121_v40 = vld [vmem:[%s4875_s28 + $0xa0] sm:$0xf] }
  0x3a   : > { %4276 = vmatpush3.bf16.msra.mxu1 %v4708_v59  ;;  %4324 = vmatpush3.bf16.msra.mxu0 %v4709_v62  ;;  %v458_v14 = vrot.slane %v457_v50, 4  ;;  %v648_v20 = vrot.slane %v646_v3, 5  ;;  %v654_v59 = vrot.slane %v652_v8, 5  ;;  %v656_v24 = vshrl.u32 %v5071_v42, 16  ;;  %v4714_v3 = vld [vmem:[%s6413_s1 + $0x8] sm:$0xff]  }
  0x3b   : > { %6462 = vst [vmem:[#allocation9_spill] sm:$0xff] %v5105_v12  ;;  %4277 = vmatprep.subr.bf16.mxu1 %v4710_v26  ;;  %v662_v25 = vshll.u32 %v5080_v47, 16  ;;  %4325 = vmatprep.subr.bf16.mxu0 %v4711_v48  ;;  %v468_v35 = vrot.slane %v467_v15, 4  ;;  %v475_v37 = vshrl.u32 %v5089_v54, 16  ;;  %v478_v38 = vshll.u32 %v5089_v54, 16 }
  0x3c   : > { %4258 = vmatmul.mubr.bf16.gmra.mxu1 %v5105_v12  ;;  %v463_v62 = vsel %vm4909_vm2, %v458_v14, %v462_v45  ;;  %v649_v43 = vor.u32 %v648_v20, %v645_v17  ;;  %v658_v46 = vrot.slane %v656_v24, 4  ;;  %v484_v50 = vshll.u32 %v5092_v55, 16 }
  0x3d   : > { %v664_v49 = vrot.slane %v662_v25, 5  ;;  %v473_v52 = vsel %vm4909_vm2, %v468_v35, %v472_v61  ;;  %v477_v53 = vrot.slane %v475_v37, 4  ;;  %v480_v60 = vrot.slane %v478_v38, 5  ;;  %v5141_v35 = vld [vmem:[%s4875_s28 + $0xa4] sm:$0x1] }
  0x3e   : > { %4278 = vmatpush3.bf16.msra.mxu1 %v4710_v26  ;;  %v488_v45 = vshrl.u32 %v5092_v55, 16  ;;  %4326 = vmatpush3.bf16.msra.mxu0 %v4711_v48  ;;  %v5130_v8 = vcombine.low %v463_v62, %v473_v52  ;;  %v650_v14 = vrot.slane %v649_v43, 4  ;;  %v659_v15 = vor.u32 %v658_v46, %v654_v59  ;;  %v4715_v26 = vld [vmem:[%s6413_s1 + $0x88] sm:$0xff]  }
  0x3f   : > { %4279 = vmatprep.subr.bf16.mxu1 %v4712_v58  ;;  %v486_v17 = vrot.slane %v484_v50, 5  ;;  %4327 = vmatprep.subr.bf16.mxu0 %v4713_v9  ;;  %v481_v61 = vor.u32 %v480_v60, %v477_v53  ;;  %v494_v48 = vshll.u32 %v5110_v31, 16  ;;  %v667_v24 = vshrl.u32 %v5113_v32, 16  ;;  %v5146_v53 = vld [vmem:[%s4875_s28 + $0x48] sm:$0xf] }
  0x40   : > { %6463 = vst [vmem:[#allocation10_spill] sm:$0xff] %v5130_v8  ;;  %v490_v20 = vrot.slane %v488_v45, 4  ;;  %4245 = vmatprep.mubr.bf16.mxu0 %v5130_v8  ;;  %v655_v25 = vsel %vm4909_vm2, %v650_v14, %v654_v59  ;;  %v660_v62 = vrot.slane %v659_v15, 4  ;;  %v670_v37 = vshll.u32 %v5113_v32, 16  ;;  %v4716_v59 = vld [vmem:[%s6413_s1] sm:$0xff]  }
  0x41   : > { %v676_v38 = vshll.u32 %v5121_v40, 16  ;;  %v482_v43 = vrot.slane %v481_v61, 4  ;;  %v496_v50 = vrot.slane %v494_v48, 5  ;;  %v669_v52 = vrot.slane %v667_v24, 4  ;;  %v5155_v15 = vld [vmem:[%s4875_s28 + $0x4c] sm:$0xf] }
  0x42   : > { %4280 = vmatpush3.bf16.msra.mxu1 %v4712_v58  ;;  %v491_v46 = vor.u32 %v490_v20, %v486_v17  ;;  %4328 = vmatpush3.bf16.msra.mxu0 %v4713_v9  ;;  %v665_v60 = vsel %vm4909_vm2, %v660_v62, %v664_v49  ;;  %v672_v45 = vrot.slane %v670_v37, 5  ;;  %v680_v58 = vshrl.u32 %v5121_v40, 16  ;;  %v4717_v9 = vld [vmem:[%s6413_s1 + $0x80] sm:$0xff]   ;;  %v5166_v37 = vld [vmem:[%s4875_s28 + $0x50] sm:$0x1] }
  0x43   : > { %4281 = vmatprep.subr.bf16.mxu1 %v4714_v3  ;;  %v678_v14 = vrot.slane %v676_v38, 5  ;;  %4329 = vmatprep.subr.bf16.mxu0 %v4715_v26  ;;  %v5160_v61 = vcombine.low %v655_v25, %v665_v60  ;;  %v487_v20 = vsel %vm4909_vm2, %v482_v43, %v486_v17  ;;  %v686_v49 = vshll.u32 %v5141_v35, 16 }
  0x44   : > { %v492_v48 = vrot.slane %v491_v46, 4  ;;  %v673_v24 = vor.u32 %v672_v45, %v669_v52  ;;  %v682_v62 = vrot.slane %v680_v58, 4  ;;  %v499_v38 = vshrl.u32 %v5146_v53, 16  ;;  %v5176_v46 = vld [vmem:[%s4875_s28 + $0xa8] sm:$0xf]  ;;  %v5181_v52 = vld [vmem:[%s6413_s1 + $0xf8] sm:$0xff]  }
  0x45   : > { %6464 = vst [vmem:[#allocation11_spill] sm:$0xff] %v5160_v61  ;;  %v502_v63 = vshll.u32 %v5146_v53, 16  ;;  %4261 = vmatprep.mubr.bf16.mxu1 %v5160_v61  ;;  %v688_v60 = vrot.slane %v686_v49, 5  ;;  %v508_v17 = vshll.u32 %v5155_v15, 16  ;;  %v512_v43 = vshrl.u32 %v5155_v15, 16  ;;  %6465 = vst [vmem:[#allocation12_spill] sm:$0xff] %v5176_v46 }
  0x46   : > { %4282 = vmatpush3.bf16.msra.mxu1 %v4714_v3  ;;  %v497_v25 = vsel %vm4909_vm2, %v492_v48, %v496_v50  ;;  %4330 = vmatpush3.bf16.msra.mxu0 %v4715_v26  ;;  %v674_v45 = vrot.slane %v673_v24, 4  ;;  %v683_v58 = vor.u32 %v682_v62, %v678_v14  ;;  %v501_v50 = vrot.slane %v499_v38, 4  ;;  %v5186_v48 = vld [vmem:[%s4875_s28 + $0xac] sm:$0xf]  ;;  %v5191_v49 = vld [vmem:[%s6413_s1 + $0x138] sm:$0xff]  }
  0x47   : > { %v5183_v3 = vcombine.low %v487_v20, %v497_v25  ;;  %6467 = vst [vmem:[#allocation14_spill] sm:$0xff] %v5186_v48  ;;  %4283 = vmatprep.subr.bf16.mxu1 %v4716_v59  ;;  %4331 = vmatprep.subr.bf16.mxu0 %v4717_v9  ;;  %v504_v26 = vrot.slane %v502_v63, 5  ;;  %v510_v13 = vrot.slane %v508_v17, 5  ;;  %v514_v61 = vrot.slane %v512_v43, 4  ;;  %v5195_v20 = vld [vmem:[%s4875_s28 + $0xb0] sm:$0x1] }
  0x48   : > { %v518_v12 = vshll.u32 %v5166_v37, 16  ;;  %6468 = vst [vmem:[#allocation15_spill] sm:$0xff] %v5195_v20  ;;  %v5198_v24 = vld [vmem:[%s4875_s28 + $0x54] sm:$0xf]  ;;  %v679_v62 = vsel %vm4909_vm2, %v674_v45, %v678_v14  ;;  %v684_v38 = vrot.slane %v683_v58, 4  ;;  %v691_v25 = vshrl.u32 %v5176_v46, 16 }
  0x49   : > { %6466 = vst [vmem:[#allocation13_spill] sm:$0xff] %v5183_v3  ;;  %4246 = vmatmul.mubr.bf16.gmra.mxu0 %v5183_v3  ;;  %v694_v56 = vshll.u32 %v5176_v46, 16  ;;  %v505_v63 = vor.u32 %v504_v26, %v501_v50  ;;  %v515_v17 = vor.u32 %v514_v61, %v510_v13  ;;  %v700_v7 = vshll.u32 %v5186_v48, 16  ;;  %v5220_v3 = vld [vmem:[%s4875_s28 + $0xb4] sm:$0xf] }
  0x4a   : > { %4284 = vmatpush3.bf16.msra.mxu1 %v4716_v59  ;;  %v520_v43 = vrot.slane %v518_v12, 5  ;;  %4332 = vmatpush3.bf16.msra.mxu0 %v4717_v9  ;;  %v689_v14 = vsel %vm4909_vm2, %v684_v38, %v688_v60  ;;  %v693_v45 = vrot.slane %v691_v25, 4  ;;  %v704_v59 = vshrl.u32 %v5186_v48, 16  ;;  %v5217_v9 = vld [vmem:[%s4875_s28 + $0x5c] sm:$0x1] }
  0x4b   : > { %4365 = vmatprep.subr.bf16.mxu1 %v5181_v52  ;;  %v696_v58 = vrot.slane %v694_v56, 5  ;;  %4413 = vmatprep.subr.bf16.mxu0 %v5191_v49  ;;  %v5214_v61 = vcombine.low %v679_v62, %v689_v14  ;;  %v506_v12 = vrot.slane %v505_v63, 4  ;;  %v516_v50 = vrot.slane %v515_v17, 4  ;;  %v5225_v60 = vld [vmem:[%s4875_s28 + $0xb8] sm:$0xf] }
  0x4c   : > { %v702_v26 = vrot.slane %v700_v7, 5  ;;  %v706_v28 = vrot.slane %v704_v59, 4  ;;  %v710_v30 = vshll.u32 %v5195_v20, 16  ;;  %v523_v56 = vshrl.u32 %v5198_v24, 16  ;;  %v5238_v20 = vld [vmem:[%s4875_s28 + $0xbc] sm:$0x1] }
  0x4d   : > { %6469 = vst [vmem:[#allocation16_spill] sm:$0xff] %v5214_v61  ;;  %v697_v8 = vor.u32 %v696_v58, %v693_v45  ;;  %4262 = vmatmul.mubr.bf16.gmra.mxu1 %v5214_v61  ;;  %v511_v62 = vsel %vm4909_vm2, %v506_v12, %v510_v13  ;;  %v521_v7 = vsel %vm4909_vm2, %v516_v50, %v520_v43  ;;  %v526_v38 = vshll.u32 %v5198_v24, 16 }
  0x4e   : > { %v532_v25 = vshll.u32 %v5206_v1, 16  ;;  %v5234_v63 = vcombine.low %v511_v62, %v521_v7  ;;  %v707_v14 = vor.u32 %v706_v28, %v702_v26  ;;  %v712_v45 = vrot.slane %v710_v30, 5  ;;  %6471 = vst [vmem:[#allocation18_spill] sm:$0xff] %v5238_v20 }
  0x4f   : > { %v698_v17 = vrot.slane %v697_v8, 4  ;;  %v525_v58 = vrot.slane %v523_v56, 4  ;;  %v528_v59 = vrot.slane %v526_v38, 5  ;;  %v536_v61 = vshrl.u32 %v5206_v1, 16 }
  0x50   : > { %6470 = vst [vmem:[#allocation17_spill] sm:$0xff] %v5234_v63  ;;  %v534_v36 = vrot.slane %v532_v25, 5  ;;  %4249 = vmatprep.mubr.bf16.mxu0 %v5234_v63  ;;  %v708_v43 = vrot.slane %v707_v14, 4  ;;  %v542_v12 = vshll.u32 %v5217_v9, 16  ;;  %v715_v50 = vshrl.u32 %v5220_v3, 16 }
  0x51   : > { %v703_v13 = vsel %vm4909_vm2, %v698_v17, %v702_v26  ;;  %v529_v8 = vor.u32 %v528_v59, %v525_v58  ;;  %v538_v28 = vrot.slane %v536_v61, 4  ;;  %v718_v30 = vshll.u32 %v5220_v3, 16 }
  0x52   : > { %v724_v56 = vshll.u32 %v5225_v60, 16  ;;  %v713_v62 = vsel %vm4909_vm2, %v708_v43, %v712_v45  ;;  %v544_v7 = vrot.slane %v542_v12, 5  ;;  %v717_v38 = vrot.slane %v715_v50, 4 }
  0x53   : > { %v728_v25 = vshrl.u32 %v5225_v60, 16  ;;  %v5250_v63 = vcombine.low %v703_v13, %v713_v62  ;;  %v530_v26 = vrot.slane %v529_v8, 4  ;;  %v539_v17 = vor.u32 %v538_v28, %v534_v36 }
  0x54   : > { %v720_v14 = vrot.slane %v718_v30, 5  ;;  %v726_v46 = vrot.slane %v724_v56, 5  ;;  %v734_v61 = vshll.u32 %v5238_v20, 16  ;;  %v6473_v58 = vmov 0 }
  0x55   : > { %6472 = vst [vmem:[#allocation19_spill] sm:$0xff] %v5250_v63  ;;  %v730_v48 = vrot.slane %v728_v25, 4  ;;  %v6474_v58 = vsel %vm5255_vm5, 4294967295, %v6473_v58  ;;  %v3792_v45 = vrot.slane %v4881_v4, 9  ;;  %4265 = vmatprep.mubr.bf16.mxu1 %v5250_v63  ;;  %v535_v59 = vsel %vm4909_vm2, %v530_v26, %v534_v36 }
  0x56   : > { %6475 = vst [vmem:[#allocation20_spill] sm:$0xff] %v6474_v58  ;;  %v540_v13 = vrot.slane %v539_v17, 4  ;;  %v721_v43 = vor.u32 %v720_v14, %v717_v38  ;;  %v1354_v12 = vrot.slane %v4884_v5, 5  ;;  %v736_v8 = vrot.slane %v734_v61, 5 }
  0x57   : > { %v731_v50 = vor.u32 %v730_v48, %v726_v46  ;;  %v3793_v28 = vrot.slane %v4902_v23, 9  ;;  %v1361_v30 = vrot.slane %v4914_v33, 5  ;;  %v6476_v26 = vrot.slane %v4887_v6, 5 }
  0x58   : > { %v545_v56 = vsel %vm4909_vm2, %v540_v13, %v544_v7  ;;  %v722_v62 = vrot.slane %v721_v43, 4  ;;  %v1355_v25 = vsel %vm5255_vm5, %v3792_v45, %v1354_v12  ;;  %v1356_v63 = vrot.slane %v1354_v12, 4 }
  0x59   : > { %v5270_v20 = vcombine.low %v535_v59, %v545_v56  ;;  %v732_v36 = vrot.slane %v731_v50, 4  ;;  %v1363_v38 = vrot.slane %v1361_v30, 4  ;;  %v5280_v33 = vcombine.low %v4942_v16, %v4950_v21 }
  0x5a   : > { %v727_v48 = vsel %vm4909_vm2, %v722_v62, %v726_v46  ;;  %v1358_v23 = vsel %vm5255_vm5, %v1356_v63, %v6476_v26  ;;  %v3794_v7 = vrot.slane %v4942_v16, 9  ;;  %v3768_v14 = vcombine.low %v4881_v4, %v4884_v5 }
  0x5b   : > { %4250 = vmatmul.mubr.bf16.gmra.mxu0 %v5270_v20  ;;  %v737_v17 = vsel %vm4909_vm2, %v732_v36, %v736_v8  ;;  %v3824_v46 = vcombine.low %v1355_v25, %v1358_v23  ;;  %v1368_v6 = vrot.slane %v4950_v21, 5  ;;  %v1362_v63 = vsel %vm5255_vm5, %v3793_v28, %v1361_v30  ;;  %v4724_v36 = vld [vmem:[%s6413_s1 + $0xf0] sm:$0xff]  }
  0x5c   : > { %v5289_v61 = vcombine.low %v727_v48, %v737_v17  ;;  %v6477_v45 = vrot.slane %v4918_v39, 5  ;;  %v1371_v59 = vrot.slane %v4958_v27, 5  ;;  %v1375_v5 = vrot.slane %v4993_v0, 5  ;;  %v6494_v58 = vld [vmem:[#allocation19_spill] sm:$0xff] }
  0x5d   : > { %4333 = vmatprep.mubr.bf16.mxu0 %v3824_v46  ;;  %v1369_v13 = vsel %vm5255_vm5, %v3794_v7, %v1368_v6  ;;  %v1370_v4 = vrot.slane %v1368_v6, 4  ;;  %v3795_v21 = vrot.slane %v4984_v57, 9  ;;  %v1378_v43 = vrot.slane %v5001_v10, 5  ;;  %v4725_v10 = vld [vmem:[%s6413_s1 + $0x130] sm:$0xff]  }
  0x5e   : > { %v1365_v16 = vsel %vm5255_vm5, %v1363_v38, %v6477_v45  ;;  %4266 = vmatmul.mubr.bf16.gmra.mxu1 %v5289_v61  ;;  %v1382_v39 = vrot.slane %v5052_v2, 5  ;;  %v1377_v50 = vrot.slane %v1375_v5, 4  ;;  %v3796_v8 = vrot.slane %v5038_v51, 9 }
  0x5f   : > { %4285 = vmatprep.mubr.bf16.mxu1 %v3768_v14  ;;  %v5305_v12 = vcombine.low %v1362_v63, %v1365_v16  ;;  %v1372_v27 = vsel %vm5255_vm5, %v1370_v4, %v1371_v59  ;;  %v1385_v56 = vrot.slane %v5060_v19, 5  ;;  %v1389_v62 = vrot.slane %v5092_v55, 5  ;;  %v4729_v14 = vld [vmem:[%s6413_s1 + $0x128] sm:$0xff]  }
  0x60   : > { %v5310_v28 = vcombine.low %v1369_v13, %v1372_v27  ;;  %v1384_v30 = vrot.slane %v1382_v39, 4  ;;  %v1376_v25 = vsel %vm5255_vm5, %v3795_v21, %v1375_v5  ;;  %v3797_v38 = vrot.slane %v5089_v54, 9  ;;  %v4728_v16 = vld [vmem:[%s6413_s1 + $0xe8] sm:$0xff]   ;;  %v5352_v13 = vld [vmem:[%s4875_s28 + $0x64] sm:$0xf] }
  0x61   : > { %v1379_v19 = vsel %vm5255_vm5, %v1377_v50, %v1378_v43  ;;  %v1383_v48 = vsel %vm5255_vm5, %v3796_v8, %v1382_v39  ;;  %v1392_v26 = vrot.slane %v5110_v31, 5  ;;  %v1396_v23 = vrot.slane %v5155_v15, 5 }
  0x62   : > { %v1386_v7 = vsel %vm5255_vm5, %v1384_v30, %v1385_v56  ;;  %v1391_v17 = vrot.slane %v1389_v62, 4  ;;  %v3798_v46 = vrot.slane %v5146_v53, 9  ;;  %v1403_v6 = vrot.slane %v5206_v1, 5  ;;  %v5387_v30 = vld [vmem:[%s4875_s28 + $0x60] sm:$0xf] }
  0x63   : > { %4334 = vmatmul.mubr.bf16.vlgmr.msra.gmra.mxu0 %v5305_v12  ;;  %v1398_v31 = vrot.slane %v1396_v23, 4  ;;  %v1399_v63 = vrot.slane %v5166_v37, 5  ;;  %v5345_v45 = vcombine.low %v1383_v48, %v1386_v7  ;;  %v3799_v59 = vrot.slane %v5198_v24, 9 }
  0x64   : > { %4414 = vmatpush3.bf16.msra.mxu0 %v5191_v49  ;;  %4337 = vmatprep.mubr.bf16.mxu0 %v5310_v28  ;;  %v5343_v49 = vcombine.low %v1376_v25, %v1379_v19  ;;  %v1410_v37 = vrot.slane %v5352_v13, 5  ;;  %v1393_v4 = vsel %vm5255_vm5, %v1391_v17, %v1392_v26  ;;  %v1405_v5 = vrot.slane %v1403_v6, 4 }
  0x65   : > { %4415 = vmatprep.subr.bf16.mxu0 %v4725_v10  ;;  %v1406_v21 = vrot.slane %v5217_v9, 5  ;;  %v5362_v43 = vcombine.low %v4984_v57, %v4993_v0  ;;  %v1397_v39 = vsel %vm5255_vm5, %v3798_v46, %v1396_v23  ;;  %v1400_v27 = vsel %vm5255_vm5, %v1398_v31, %v1399_v63  ;;  %v4732_v0 = vld [vmem:[%s6413_s1 + $0xe0] sm:$0xff]  }
  0x66   : > { %4286 = vmatmul.mubr.bf16.vlgmr.msra.gmra.mxu1 %v4954_v22  ;;  %v5370_v50 = vcombine.low %v5038_v51, %v5052_v2  ;;  %v5374_v8 = vcombine.low %v5089_v54, %v5092_v55  ;;  %v5378_v57 = vcombine.low %v5146_v53, %v5155_v15  ;;  %v4733_v9 = vld [vmem:[%s6413_s1 + $0x120] sm:$0xff]   ;;  %v3800_v51 = vrot.slane %v5387_v30, 9  ;;  %v4786_v53 = vld [vmem:[%s4875_s28 + $0x68] sm:$0x1] }
  0x67   : > { %4366 = vmatpush3.bf16.msra.mxu1 %v5181_v52  ;;  %4289 = vmatprep.mubr.bf16.mxu1 %v5280_v33  ;;  %v1390_v52 = vsel %vm5255_vm5, %v3797_v38, %v1389_v62  ;;  %v5395_v54 = vsel %vm5255_vm5, %v3799_v59, %v1403_v6  ;;  %v1412_v55 = vrot.slane %v1410_v37, 4  ;;  %v1413_v15 = vrot.slane %v4786_v53, 5  ;;  %v4737_v62 = vld [vmem:[%s6413_s1 + $0x118] sm:$0xff]   ;;  %v4740_v53 = vld [vmem:[%s6413_s1 + $0xd0] sm:$0xff]  }
  0x68   : > { %4367 = vmatprep.subr.bf16.mxu1 %v4724_v36  ;;  %4416 = vmatpush3.bf16.msra.mxu0 %v4725_v10  ;;  %v5391_v2 = vcombine.low %v1390_v52, %v1393_v4  ;;  %v5399_v56 = vcombine.low %v1397_v39, %v1400_v27  ;;  %v1407_v10 = vsel %vm5255_vm5, %v1405_v5, %v1406_v21  ;;  %v3803_v19 = vrot.slane %v5004_v11, 9  ;;  %v4736_v6 = vld [vmem:[%s6413_s1 + $0xd8] sm:$0xff]   ;;  %v4741_v4 = vld [vmem:[%s6413_s1 + $0x110] sm:$0xff]   ;;  %v6478_v5 = vld [vmem:[#allocation14_spill] sm:$0xff] }
  0x69   : > { %4417 = vmatprep.subr.bf16.mxu0 %v4729_v14  ;;  %v5408_v25 = vcombine.low %v5004_v11, %v5008_v18  ;;  %v1431_v48 = vrot.slane %v5008_v18, 5  ;;  %v1434_v26 = vrot.slane %v5028_v44, 5  ;;  %v1411_v23 = vsel %vm5255_vm5, %v3800_v51, %v1410_v37  ;;  %v6479_v21 = vld [vmem:[#allocation12_spill] sm:$0xff]  ;;  %v6480_v51 = vld [vmem:[#allocation15_spill] sm:$0xff] }
  0x6a   : > { %v1424_v7 = vrot.slane %v4970_v41, 5  ;;  %v5423_v17 = vcombine.low %v5065_v34, %v5071_v42  ;;  %v1414_v11 = vsel %vm5255_vm5, %v1412_v55, %v1413_v15  ;;  %v1438_v46 = vrot.slane %v5071_v42, 5 }
  0x6b   : > { %4338 = vmatmul.mubr.bf16.gmra.mxu0 %v5343_v49  ;;  %4368 = vmatpush3.bf16.msra.mxu1 %v4724_v36  ;;  %v5411_v36 = vld [vmem:[%s4875_s28 + $0x70] sm:$0xf]  ;;  %v1432_v18 = vsel %vm5255_vm5, %v3803_v19, %v1431_v48  ;;  %v1433_v44 = vrot.slane %v1431_v48, 4  ;;  %v1441_v31 = vrot.slane %v5080_v47, 5  ;;  %v3805_v63 = vrot.slane %v5113_v32, 9 }
  0x6c   : > { %4341 = vmatprep.mubr.bf16.mxu0 %v5345_v45  ;;  %4369 = vmatprep.subr.bf16.mxu1 %v4728_v16  ;;  %v1417_v38 = vrot.slane %v5411_v36, 5  ;;  %v1440_v37 = vrot.slane %v1438_v46, 4  ;;  %v1448_v52 = vrot.slane %v5141_v35, 5  ;;  %v5456_v39 = vcombine.low %v6479_v21, %v6478_v5 }
  0x6d   : > { %4418 = vmatpush3.bf16.msra.mxu0 %v4729_v14  ;;  %v3804_v14 = vrot.slane %v5065_v34, 9  ;;  %v5438_v34 = vcombine.low %v5113_v32, %v5121_v40  ;;  %v1435_v59 = vsel %vm5255_vm5, %v1433_v44, %v1434_v26  ;;  %v3806_v27 = vrot.slane %v6479_v21, 9 }
  0x6e   : > { %4290 = vmatmul.mubr.bf16.gmra.mxu1 %v5362_v43  ;;  %4419 = vmatprep.subr.bf16.mxu0 %v4733_v9  ;;  %v5447_v47 = vcombine.low %v1432_v18, %v1435_v59  ;;  %v1442_v35 = vsel %vm5255_vm5, %v1440_v37, %v1441_v31  ;;  %v1455_v55 = vrot.slane %v6480_v51, 5  ;;  %v5474_v19 = vcombine.low %v5220_v3, %v5225_v60  ;;  %v4788_v31 = vld [vmem:[%s4875_s28 + $0x6c] sm:$0xf]  ;;  %v4789_v59 = vld [vmem:[%s4875_s28 + $0x74] sm:$0x1]  ;;  %v4749_v51 = vld [vmem:[%s6413_s1 + $0x100] sm:$0xff]  }
  0x6f   : > { %4293 = vmatprep.mubr.bf16.mxu1 %v5370_v50  ;;  %4370 = vmatpush3.bf16.msra.mxu1 %v4728_v16  ;;  %v1445_v16 = vrot.slane %v5121_v40, 5  ;;  %v1439_v42 = vsel %vm5255_vm5, %v3804_v14, %v1438_v46  ;;  %v3807_v48 = vrot.slane %v5220_v3, 9  ;;  %v1459_v44 = vrot.slane %v5225_v60, 5  ;;  %v4745_v3 = vld [vmem:[%s6413_s1 + $0x108] sm:$0xff]  }
  0x70   : > { %4371 = vmatprep.subr.bf16.mxu1 %v4732_v0  ;;  %v5468_v15 = vcombine.low %v1439_v42, %v1442_v35  ;;  %v5484_v46 = vcombine.low %v5395_v54, %v1407_v10  ;;  %v1420_v60 = vrot.slane %v4789_v59, 5  ;;  %v5497_v37 = vcombine.low %v1411_v23, %v1414_v11  ;;  %v4791_v35 = vld [vmem:[%s4875_s28 + $0x80] sm:$0x1] }
  0x71   : > { %4420 = vmatpush3.bf16.msra.mxu0 %v4733_v9  ;;  %v1446_v32 = vsel %vm5255_vm5, %v3805_v63, %v1445_v16  ;;  %v1447_v40 = vrot.slane %v1445_v16, 4  ;;  %v1452_v9 = vrot.slane %v6478_v5, 5  ;;  %v3801_v63 = vrot.slane %v4788_v31, 9  ;;  %v4744_v5 = vld [vmem:[%s6413_s1 + $0xc8] sm:$0xff]  }
  0x72   : > { %4421 = vmatprep.subr.bf16.mxu0 %v4737_v62  ;;  %v1460_v54 = vsel %vm5255_vm5, %v3807_v48, %v1459_v44  ;;  %v1461_v10 = vrot.slane %v1459_v44, 4  ;;  %v1426_v21 = vrot.slane %v1424_v7, 4  ;;  %v5514_v11 = vcombine.low %v5198_v24, %v5206_v1  ;;  %v4792_v48 = vld [vmem:[%s4875_s28 + $0x7c] sm:$0xf]  ;;  %v5577_v44 = vld [vmem:[%s4875_s28 + $0xc0] sm:$0xf] }
  0x73   : > { %4342 = vmatmul.mubr.bf16.gmra.mxu0 %v5391_v2  ;;  %4372 = vmatpush3.bf16.msra.mxu1 %v4732_v0  ;;  %v1449_v0 = vsel %vm5255_vm5, %v1447_v40, %v1448_v52  ;;  %v1453_v14 = vsel %vm5255_vm5, %v3806_v27, %v1452_v9  ;;  %v1454_v18 = vrot.slane %v1452_v9, 4  ;;  %v1419_v52 = vrot.slane %v1417_v38, 4 }
  0x74   : > { %4345 = vmatprep.mubr.bf16.mxu0 %v5399_v56  ;;  %4373 = vmatprep.subr.bf16.mxu1 %v4736_v6  ;;  %v5477_v26 = vcombine.low %v1446_v32, %v1449_v0  ;;  %v4790_v32 = vld [vmem:[%s4875_s28 + $0x78] sm:$0xf]  ;;  %v1427_v27 = vrot.slane %v4791_v35, 5  ;;  %v1418_v1 = vsel %vm5255_vm5, %v3801_v63, %v1417_v38  ;;  %v5555_v0 = vcombine.low %v4788_v31, %v5411_v36  ;;  %v5572_v36 = vld [vmem:[%s4875_s28 + $0xc4] sm:$0xf] }
  0x75   : > { %4422 = vmatpush3.bf16.msra.mxu0 %v4737_v62  ;;  %v6481_v62 = vld [vmem:[#allocation18_spill] sm:$0xff]  ;;  %v1456_v42 = vsel %vm5255_vm5, %v1454_v18, %v1455_v55  ;;  %v3802_v40 = vrot.slane %v4790_v32, 9  ;;  %v5524_v55 = vcombine.low %v5387_v30, %v5352_v13  ;;  %v1421_v24 = vsel %vm5255_vm5, %v1419_v52, %v1420_v60  ;;  %v4751_v38 = vld [vmem:[%s6413_s1 + $0x1b8] sm:$0xff]   ;;  %v5580_v31 = vld [vmem:[%s4875_s28 + $0xc8] sm:$0x1] }
  0x76   : > { %4294 = vmatmul.mubr.bf16.gmra.mxu1 %v5374_v8  ;;  %4423 = vmatprep.subr.bf16.mxu0 %v4741_v4  ;;  %v1462_v16 = vrot.slane %v6481_v62, 5  ;;  %v1428_v30 = vsel %vm5255_vm5, %v1426_v21, %v1427_v27  ;;  %v2339_v18 = vrot.slane %v5572_v36, 5  ;;  %v3898_v63 = vrot.slane %v5577_v44, 9  ;;  %v6482_v60 = vld [vmem:[#allocation4_spill] sm:$0xff]  ;;  %v6485_v21 = vld [vmem:[#allocation10_spill] sm:$0xff]  ;;  %v6486_v35 = vld [vmem:[#allocation13_spill] sm:$0xff] }
  0x77   : > { %4297 = vmatprep.mubr.bf16.mxu1 %v5378_v57  ;;  %4374 = vmatpush3.bf16.msra.mxu1 %v4736_v6  ;;  %v5505_v6 = vcombine.low %v1453_v14, %v1456_v42  ;;  %v1425_v13 = vsel %vm5255_vm5, %v3802_v40, %v1424_v7  ;;  %v4750_v7 = vld [vmem:[%s6413_s1 + $0x178] sm:$0xff]   ;;  %v5559_v14 = vcombine.low %v4790_v32, %v4792_v48  ;;  %v2342_v62 = vrot.slane %v5580_v31, 5  ;;  %v6484_v52 = vld [vmem:[#allocation8_spill] sm:$0xff]  ;;  %v4755_v40 = vld [vmem:[%s6413_s1 + $0x1a8] sm:$0xff]  }
  0x78   : > { %4375 = vmatprep.subr.bf16.mxu1 %v4740_v53  ;;  %v1463_v23 = vsel %vm5255_vm5, %v1461_v10, %v1462_v16  ;;  %v5549_v41 = vcombine.low %v1425_v13, %v1428_v30  ;;  %v2340_v16 = vsel %vm5255_vm5, %v3898_v63, %v2339_v18  ;;  %v6483_v10 = vld [vmem:[#allocation6_spill] sm:$0xff]  ;;  %v4752_v32 = vld [vmem:[%s6413_s1 + $0x170] sm:$0xff]   ;;  %v4763_v13 = vld [vmem:[%s6413_s1 + $0x188] sm:$0xff]  }
  0x79   : > { %4424 = vmatpush3.bf16.msra.mxu0 %v4741_v4  ;;  %v5516_v9 = vcombine.low %v1460_v54, %v1463_v23  ;;  %v4748_v4 = vld [vmem:[%s6413_s1 + $0xc0] sm:$0xff]   ;;  %v4753_v54 = vld [vmem:[%s6413_s1 + $0x1b0] sm:$0xff]   ;;  %v4759_v23 = vld [vmem:[%s6413_s1 + $0x198] sm:$0xff]  }
  0x7a   : > { %4425 = vmatprep.subr.bf16.mxu0 %v4745_v3  ;;  %v4756_v27 = vld [vmem:[%s6413_s1 + $0x160] sm:$0xff]   ;;  %v4762_v30 = vld [vmem:[%s6413_s1 + $0x148] sm:$0xff]   ;;  %v6489_v48 = vld [vmem:[#allocation5_spill] sm:$0xff] }
  0x7b   : > { %4346 = vmatmul.mubr.bf16.gmra.mxu0 %v5484_v46  ;;  %4376 = vmatpush3.bf16.msra.mxu1 %v4740_v53  ;;  %v5547_v53 = vcombine.low %v1418_v1, %v1421_v24  ;;  %v4761_v1 = vld [vmem:[%s6413_s1 + $0x190] sm:$0xff]   ;;  %v6487_v24 = vld [vmem:[#allocation17_spill] sm:$0xff] }
  0x7c   : > { %4349 = vmatprep.mubr.bf16.mxu0 %v5497_v37  ;;  %4377 = vmatprep.subr.bf16.mxu1 %v4744_v5  ;;  %v4768_v63 = vld [vmem:[%s6413_s1 + $0x238] sm:$0xff]  }
  0x7d   : > { %4426 = vmatpush3.bf16.msra.mxu0 %v4745_v3  ;;  %v2341_v3 = vrot.slane %v2339_v18, 4  ;;  %v4765_v18 = vld [vmem:[%s6413_s1 + $0x140] sm:$0xff]  }
  0x7e   : > { %4298 = vmatmul.mubr.bf16.gmra.mxu1 %v5514_v11  ;;  %4427 = vmatprep.subr.bf16.mxu0 %v4749_v51 }
  0x7f   : > { %4301 = vmatprep.mubr.bf16.mxu1 %v5524_v55  ;;  %4378 = vmatpush3.bf16.msra.mxu1 %v4744_v5  ;;  %v2343_v59 = vsel %vm5255_vm5, %v2341_v3, %v2342_v62  ;;  %v4757_v5 = vld [vmem:[%s6413_s1 + $0x1a0] sm:$0xff]   ;;  %v4767_v3 = vld [vmem:[%s6413_s1 + $0x1f8] sm:$0xff]   ;;  %v6490_v62 = vld [vmem:[#allocation7_spill] sm:$0xff] }
  0x80   : > { %4379 = vmatprep.subr.bf16.mxu1 %v4748_v4  ;;  %v5590_v42 = vcombine.low %v2340_v16, %v2343_v59  ;;  %v6491_v16 = vld [vmem:[#allocation9_spill] sm:$0xff]  ;;  %v2051_v59 = vshrl.u32 %v5577_v44, 16 }
  0x81   : > { %4428 = vmatpush3.bf16.msra.mxu0 %v4749_v51  ;;  %v4758_v51 = vld [vmem:[%s6413_s1 + $0x158] sm:$0xff]  }
  0x82   : > { %4509 = vmatprep.subr.bf16.mxu0 %v4751_v38 }
  0x83   : > { %4350 = vmatmul.mubr.bf16.gmra.mxu0 %v5547_v53  ;;  %4380 = vmatpush3.bf16.msra.mxu1 %v4748_v4  ;;  %v4760_v4 = vld [vmem:[%s6413_s1 + $0x150] sm:$0xff]  }
  0x84   : > { %4353 = vmatprep.mubr.bf16.mxu0 %v5549_v41  ;;  %4461 = vmatprep.subr.bf16.mxu1 %v4750_v7 }
  0x86   : > { %4302 = vmatmul.mubr.bf16.gmra.mxu1 %v5555_v0 }
  0x87   : > { %4305 = vmatprep.mubr.bf16.mxu1 %v5559_v14 }
  0x8b   : > { %4354 = vmatmul.mubr.bf16.gmra.mxu0 %v5447_v47 }
  0x8c   : > { %4357 = vmatprep.mubr.bf16.mxu0 %v5468_v15 }
  0x8e   : > { %4306 = vmatmul.mubr.bf16.gmra.mxu1 %v5408_v25 }
  0x8f   : > { %4309 = vmatprep.mubr.bf16.mxu1 %v5423_v17 }
  0x93   : > { %4358 = vmatmul.mubr.bf16.gmra.mxu0 %v5477_v26 }
  0x94   : > { %4361 = vmatprep.mubr.bf16.mxu0 %v5505_v6 }
  0x96   : > { %4310 = vmatmul.mubr.bf16.gmra.mxu1 %v5438_v34 }
  0x97   : > { %4313 = vmatprep.mubr.bf16.mxu1 %v5456_v39 }
  0x9b   : > { %4362 = vmatmul.mubr.bf16.gmra.mxu0 %v5516_v9 }
  0x9c   : > { %4429 = vmatprep.mubr.bf16.mxu0 %v6482_v60  ;;  %v2054_v60 = vshll.u32 %v5577_v44, 16 }
  0x9e   : > { %4314 = vmatmul.mubr.bf16.gmra.mxu1 %v5474_v19 }
  0x9f   : > { %4381 = vmatprep.mubr.bf16.mxu1 %v4954_v22  ;;  %v4754_v22 = vld [vmem:[%s6413_s1 + $0x168] sm:$0xff]  }
  0xa3   : > { %4430 = vmatmul.mubr.bf16.vlgmr.msra.gmra.mxu0 %v6483_v10 }
  0xa4   : > { %4510 = vmatpush3.bf16.msra.mxu0 %v4751_v38  ;;  %4433 = vmatprep.mubr.bf16.mxu0 %v6484_v52  ;;  %v4766_v38 = vld [vmem:[%s6413_s1 + $0x180] sm:$0xff]  }
  0xa5   : > { %4511 = vmatprep.subr.bf16.mxu0 %v4753_v54 }
  0xa6   : > { %4382 = vmatmul.mubr.bf16.vlgmr.msra.gmra.mxu1 %v5280_v33 }
  0xa7   : > { %4462 = vmatpush3.bf16.msra.mxu1 %v4750_v7  ;;  %4385 = vmatprep.mubr.bf16.mxu1 %v5362_v43  ;;  %v6488_v7 = vld [vmem:[#allocation3_spill] sm:$0xff] }
  0xa8   : > { %4463 = vmatprep.subr.bf16.mxu1 %v4752_v32  ;;  %4512 = vmatpush3.bf16.msra.mxu0 %v4753_v54  ;;  %v2064_v54 = vshrl.u32 %v5572_v36, 16 }
  0xa9   : > { %4513 = vmatprep.subr.bf16.mxu0 %v4755_v40 }
  0xab   : > { %4434 = vmatmul.mubr.bf16.gmra.mxu0 %v6485_v21  ;;  %4464 = vmatpush3.bf16.msra.mxu1 %v4752_v32  ;;  %v2060_v32 = vshll.u32 %v5572_v36, 16 }
  0xac   : > { %4437 = vmatprep.mubr.bf16.mxu0 %v6486_v35  ;;  %4465 = vmatprep.subr.bf16.mxu1 %v4754_v22 }
  0xad   : > { %4514 = vmatpush3.bf16.msra.mxu0 %v4755_v40  ;;  %v2053_v40 = vrot.slane %v2051_v59, 4 }
  0xae   : > { %4386 = vmatmul.mubr.bf16.gmra.mxu1 %v5370_v50  ;;  %4515 = vmatprep.subr.bf16.mxu0 %v4757_v5 }
  0xaf   : > { %4389 = vmatprep.mubr.bf16.mxu1 %v5374_v8  ;;  %4466 = vmatpush3.bf16.msra.mxu1 %v4754_v22  ;;  %v2056_v22 = vrot.slane %v2054_v60, 5 }
  0xb0   : > { %4467 = vmatprep.subr.bf16.mxu1 %v4756_v27 }
  0xb1   : > { %4516 = vmatpush3.bf16.msra.mxu0 %v4757_v5  ;;  %v2062_v5 = vrot.slane %v2060_v32, 5  ;;  %v4770_v32 = vld [vmem:[%s6413_s1 + $0x230] sm:$0xff]  }
  0xb2   : > { %4517 = vmatprep.subr.bf16.mxu0 %v4759_v23 }
  0xb3   : > { %4438 = vmatmul.mubr.bf16.gmra.mxu0 %v6487_v24  ;;  %4468 = vmatpush3.bf16.msra.mxu1 %v4756_v27  ;;  %v2066_v27 = vrot.slane %v2064_v54, 4  ;;  %v5683_v54 = vcombine.low %v5577_v44, %v5572_v36  ;;  %v4769_v36 = vld [vmem:[%s6413_s1 + $0x1f0] sm:$0xff]  }
  0xb4   : > { %4441 = vmatprep.mubr.bf16.mxu0 %v5270_v20  ;;  %4469 = vmatprep.subr.bf16.mxu1 %v4758_v51 }
  0xb5   : > { %4518 = vmatpush3.bf16.msra.mxu0 %v4759_v23  ;;  %v6492_v23 = vld [vmem:[#allocation11_spill] sm:$0xff] }
  0xb6   : > { %4390 = vmatmul.mubr.bf16.gmra.mxu1 %v5378_v57  ;;  %4519 = vmatprep.subr.bf16.mxu0 %v4761_v1 }
  0xb7   : > { %4393 = vmatprep.mubr.bf16.mxu1 %v5514_v11  ;;  %4470 = vmatpush3.bf16.msra.mxu1 %v4758_v51  ;;  %v6493_v51 = vld [vmem:[#allocation16_spill] sm:$0xff] }
  0xb8   : > { %4471 = vmatprep.subr.bf16.mxu1 %v4760_v4 }
  0xb9   : > { %4520 = vmatpush3.bf16.msra.mxu0 %v4761_v1  ;;  %v2057_v1 = vor.u32 %v2056_v22, %v2053_v40  ;;  %v4778_v22 = vld [vmem:[%s6413_s1 + $0x210] sm:$0xff]  }
  0xba   : > { %4521 = vmatprep.subr.bf16.mxu0 %v4763_v13 }
  0xbb   : > { %4442 = vmatmul.mubr.bf16.gmra.mxu0 %v6488_v7  ;;  %4472 = vmatpush3.bf16.msra.mxu1 %v4760_v4  ;;  %v2067_v4 = vor.u32 %v2066_v27, %v2062_v5  ;;  %v4777_v27 = vld [vmem:[%s6413_s1 + $0x1d0] sm:$0xff]  }
  0xbc   : > { %4445 = vmatprep.mubr.bf16.mxu0 %v6489_v48  ;;  %4473 = vmatprep.subr.bf16.mxu1 %v4762_v30 }
  0xbd   : > { %4522 = vmatpush3.bf16.msra.mxu0 %v4763_v13  ;;  %v2070_v13 = vshll.u32 %v5580_v31, 16 }
  0xbe   : > { %4394 = vmatmul.mubr.bf16.gmra.mxu1 %v5524_v55  ;;  %4523 = vmatprep.subr.bf16.mxu0 %v4766_v38 }
  0xbf   : > { %4397 = vmatprep.mubr.bf16.mxu1 %v5555_v0  ;;  %4474 = vmatpush3.bf16.msra.mxu1 %v4762_v30  ;;  %v2058_v30 = vrot.slane %v2057_v1, 4 }
  0xc0   : > { %4475 = vmatprep.subr.bf16.mxu1 %v4765_v18 }
  0xc1   : > { %4524 = vmatpush3.bf16.msra.mxu0 %v4766_v38  ;;  %v2068_v38 = vrot.slane %v2067_v4, 4  ;;  %v2063_v59 = vsel %vm4909_vm2, %v2058_v30, %v2062_v5  ;;  %v4783_v30 = vld [vmem:[%s6413_s1 + $0x200] sm:$0xff]  }
  0xc2   : > { %4605 = vmatprep.subr.bf16.mxu0 %v4768_v63 }
  0xc3   : > { %4446 = vmatmul.mubr.bf16.gmra.mxu0 %v6490_v62  ;;  %4476 = vmatpush3.bf16.msra.mxu1 %v4765_v18  ;;  %v2072_v18 = vrot.slane %v2070_v13, 5 }
  0xc4   : > { %4449 = vmatprep.mubr.bf16.mxu0 %v6491_v16  ;;  %4557 = vmatprep.subr.bf16.mxu1 %v4767_v3 }
  0xc5   : > { %v2073_v60 = vsel %vm4909_vm2, %v2068_v38, %v2072_v18  ;;  %v4782_v18 = vld [vmem:[%s6413_s1 + $0x1c0] sm:$0xff]  }
  0xc6   : > { %4398 = vmatmul.mubr.bf16.gmra.mxu1 %v5559_v14  ;;  %v5679_v31 = vcombine.low %v2063_v59, %v2073_v60 }
  0xc7   : > { %4401 = vmatprep.mubr.bf16.mxu1 %v5408_v25 }
  0xc8   : > { %6495 = vst [vmem:[#allocation14_spill] sm:$0xff] %v5679_v31 }
  0xcb   : > { %4450 = vmatmul.mubr.bf16.gmra.mxu0 %v6492_v23 }
  0xcc   : > { %4453 = vmatprep.mubr.bf16.mxu0 %v6493_v51 }
  0xce   : > { %4402 = vmatmul.mubr.bf16.gmra.mxu1 %v5423_v17 }
  0xcf   : > { %4405 = vmatprep.mubr.bf16.mxu1 %v5438_v34 }
  0xd3   : > { %4454 = vmatmul.mubr.bf16.gmra.mxu0 %v6494_v58 }
  0xd4   : > { %4457 = vmatprep.mubr.bf16.mxu0 %v5289_v61 }
  0xd6   : > { %4406 = vmatmul.mubr.bf16.gmra.mxu1 %v5456_v39 }
  0xd7   : > { %4409 = vmatprep.mubr.bf16.mxu1 %v5474_v19 }
  0xdb   : > { %4458 = vmatmul.mubr.bf16.gmra.mxu0 %v5679_v31 }
  0xdc   : > { %4525 = vmatprep.mubr.bf16.mxu0 %v5280_v33  ;;  %v4772_v33 = vld [vmem:[%s6413_s1 + $0x228] sm:$0xff]  }
  0xde   : > { %4410 = vmatmul.mubr.bf16.gmra.mxu1 %v5683_v54 }
  0xdf   : > { %4477 = vmatprep.mubr.bf16.mxu1 %v5305_v12  ;;  %v4771_v12 = vld [vmem:[%s6413_s1 + $0x1e8] sm:$0xff]  }
  0xe3   : > { %4526 = vmatmul.mubr.bf16.vlgmr.msra.gmra.mxu0 %v5362_v43  ;;  %v4774_v43 = vld [vmem:[%s6413_s1 + $0x220] sm:$0xff]  }
  0xe4   : > { %4606 = vmatpush3.bf16.msra.mxu0 %v4768_v63  ;;  %4529 = vmatprep.mubr.bf16.mxu0 %v5370_v50  ;;  %v4773_v50 = vld [vmem:[%s6413_s1 + $0x1e0] sm:$0xff]  }
  0xe5   : > { %4607 = vmatprep.subr.bf16.mxu0 %v4770_v32 }
  0xe6   : > { %4478 = vmatmul.mubr.bf16.vlgmr.msra.gmra.mxu1 %v5310_v28 }
  0xe7   : > { %4558 = vmatpush3.bf16.msra.mxu1 %v4767_v3  ;;  %4481 = vmatprep.mubr.bf16.mxu1 %v5343_v49  ;;  %v4775_v3 = vld [vmem:[%s6413_s1 + $0x1d8] sm:$0xff]  }
  0xe8   : > { %4559 = vmatprep.subr.bf16.mxu1 %v4769_v36  ;;  %4608 = vmatpush3.bf16.msra.mxu0 %v4770_v32 }
  0xe9   : > { %4609 = vmatprep.subr.bf16.mxu0 %v4772_v33 }
  0xeb   : > { %4530 = vmatmul.mubr.bf16.gmra.mxu0 %v5374_v8  ;;  %4560 = vmatpush3.bf16.msra.mxu1 %v4769_v36  ;;  %v4776_v8 = vld [vmem:[%s6413_s1 + $0x218] sm:$0xff]  }
  0xec   : > { %4533 = vmatprep.mubr.bf16.mxu0 %v5378_v57  ;;  %4561 = vmatprep.subr.bf16.mxu1 %v4771_v12 }
  0xed   : > { %v5713_v44 = vpop.f32.mrf.mxu0  ;;  %4610 = vmatpush3.bf16.msra.mxu0 %v4772_v33  ;;  %v5716_v63 = vpop.f32.mrf.mxu1 }
  0xee   : > { %4482 = vmatmul.mubr.bf16.gmra.mxu1 %v5345_v45  ;;  %4611 = vmatprep.subr.bf16.mxu0 %v4774_v43 }
  0xef   : > { %4485 = vmatprep.mubr.bf16.mxu1 %v5391_v2  ;;  %4562 = vmatpush3.bf16.msra.mxu1 %v4771_v12  ;;  %v5722_v57 = vpop.f32.mrf.mxu0  ;;  %v5727_v40 = vpop.f32.mrf.mxu1 }
  0xf0   : > { %4563 = vmatprep.subr.bf16.mxu1 %v4773_v50 }
  0xf1   : > { %4612 = vmatpush3.bf16.msra.mxu0 %v4774_v43  ;;  %v5733_v5 = vpop.f32.mrf.mxu0  ;;  %v5740_v1 = vpop.f32.mrf.mxu1 }
  0xf2   : > { %4613 = vmatprep.subr.bf16.mxu0 %v4776_v8 }
  0xf3   : > { %4534 = vmatmul.mubr.bf16.gmra.mxu0 %v5514_v11  ;;  %4564 = vmatpush3.bf16.msra.mxu1 %v4773_v50  ;;  %v4780_v11 = vld [vmem:[%s6413_s1 + $0x208] sm:$0xff]   ;;  %v5746_v4 = vpop.f32.mrf.mxu0  ;;  %v5751_v13 = vpop.f32.mrf.mxu1 }
  0xf4   : > { %4537 = vmatprep.mubr.bf16.mxu0 %v5524_v55  ;;  %4565 = vmatprep.subr.bf16.mxu1 %v4775_v3  ;;  %v4779_v55 = vld [vmem:[%s6413_s1 + $0x1c8] sm:$0xff]  }
  0xf5   : > { %4614 = vmatpush3.bf16.msra.mxu0 %v4776_v8  ;;  %v5803_v8 = vld [vmem:[%s4875_s28 + $0xd0] sm:$0xf] }
  0xf6   : > { %4486 = vmatmul.mubr.bf16.gmra.mxu1 %v5399_v56  ;;  %4615 = vmatprep.subr.bf16.mxu0 %v4778_v22 }
  0xf7   : > { %4489 = vmatprep.mubr.bf16.mxu1 %v5484_v46  ;;  %4566 = vmatpush3.bf16.msra.mxu1 %v4775_v3 }
  0xf8   : > { %4567 = vmatprep.subr.bf16.mxu1 %v4777_v27  ;;  %v5757_v38 = vpop.f32.mrf.mxu0 }
  0xf9   : > { %4616 = vmatpush3.bf16.msra.mxu0 %v4778_v22 }
  0xfa   : > { %4617 = vmatprep.subr.bf16.mxu0 %v4780_v11  ;;  %v5767_v60 = vpop.f32.mrf.mxu0 }
  0xfb   : > { %4538 = vmatmul.mubr.bf16.gmra.mxu0 %v5555_v0  ;;  %4568 = vmatpush3.bf16.msra.mxu1 %v4777_v27 }
  0xfc   : > { %4541 = vmatprep.mubr.bf16.mxu0 %v5559_v14  ;;  %4569 = vmatprep.subr.bf16.mxu1 %v4779_v55  ;;  %v5764_v59 = vpop.f32.mrf.mxu1  ;;  %v5772_v14 = vpop.f32.mrf.mxu0 }
  0xfd   : > { %4618 = vmatpush3.bf16.msra.mxu0 %v4780_v11 }
  0xfe   : > { %4490 = vmatmul.mubr.bf16.gmra.mxu1 %v5497_v37  ;;  %4619 = vmatprep.subr.bf16.mxu0 %v4783_v30  ;;  %v5769_v0 = vpop.f32.mrf.mxu1  ;;  %v5779_v36 = vpop.f32.mrf.mxu0 }
  0xff   : > { %4493 = vmatprep.mubr.bf16.mxu1 %v5547_v53  ;;  %4570 = vmatpush3.bf16.msra.mxu1 %v4779_v55 }
 0x100   : > { %4571 = vmatprep.subr.bf16.mxu1 %v4782_v18  ;;  %v5776_v32 = vpop.f32.mrf.mxu1 }
 0x101   : > { %4620 = vmatpush3.bf16.msra.mxu0 %v4783_v30 }
 0x102   : > { %v5781_v33 = vpop.f32.mrf.mxu1 }
 0x103   : > { %4542 = vmatmul.mubr.bf16.gmra.mxu0 %v5408_v25  ;;  %4572 = vmatpush3.bf16.msra.mxu1 %v4782_v18 }
 0x104   : > { %4545 = vmatprep.mubr.bf16.mxu0 %v5423_v17 }
 0x106   : > { %4494 = vmatmul.mubr.bf16.gmra.mxu1 %v5549_v41 }
 0x107   : > { %4497 = vmatprep.mubr.bf16.mxu1 %v5447_v47 }
 0x109   : > { %v5784_v25 = vpop.f32.mrf.mxu0 }
 0x10b   : > { %4546 = vmatmul.mubr.bf16.gmra.mxu0 %v5438_v34  ;;  %v5791_v12 = vpop.f32.mrf.mxu0  ;;  %v5800_v34 = vld [vmem:[%s4875_s28 + $0xcc] sm:$0xf] }
 0x10c   : > { %4549 = vmatprep.mubr.bf16.mxu0 %v5456_v39  ;;  %v3940_v22 = vcombine.low %v5800_v34, %v5803_v8 }
 0x10d   : > { %v5788_v17 = vpop.f32.mrf.mxu1  ;;  %v5796_v50 = vpop.f32.mrf.mxu0 }
 0x10e   : > { %4498 = vmatmul.mubr.bf16.gmra.mxu1 %v5468_v15  ;;  %6496 = vst [vmem:[#allocation12_spill] sm:$0xff] %v5788_v17 }
 0x10f   : > { %4501 = vmatprep.mubr.bf16.mxu1 %v5477_v26  ;;  %v5793_v43 = vpop.f32.mrf.mxu1  ;;  %v5808_v3 = vpop.f32.mrf.mxu0 }
 0x110   : > { %6497 = vst [vmem:[#allocation15_spill] sm:$0xff] %v5793_v43 }
 0x111   : > { %v5806_v39 = vpop.f32.mrf.mxu1 }
 0x112   : > { %6498 = vst [vmem:[#allocation18_spill] sm:$0xff] %v5806_v39 }
 0x113   : > { %4550 = vmatmul.mubr.bf16.gmra.mxu0 %v5474_v19  ;;  %v5813_v19 = vpop.f32.mrf.mxu1 }
 0x114   : > { %4553 = vmatprep.mubr.bf16.mxu0 %v5683_v54  ;;  %6499 = vst [vmem:[#allocation4_spill] sm:$0xff] %v5813_v19 }
 0x116   : > { %4502 = vmatmul.mubr.bf16.gmra.mxu1 %v5505_v6 }
 0x117   : > { %4505 = vmatprep.mubr.bf16.mxu1 %v5516_v9 }
 0x11b   : > { %v5815_v27 = vpop.f32.mrf.mxu0  ;;  %4554 = vmatmul.mubr.bf16.gmra.mxu0 %v3940_v22 }
 0x11c   : > { %4621 = vmatprep.mubr.bf16.mxu0 %v5310_v28 }
 0x11d   : > { %v5818_v54 = vpop.f32.mrf.mxu0 }
 0x11e   : > { %v5820_v11 = vpop.f32.mrf.mxu1  ;;  %4506 = vmatmul.mubr.bf16.gmra.mxu1 %v5590_v42 }
 0x11f   : > { %6500 = vst [vmem:[#allocation6_spill] sm:$0xff] %v5820_v11  ;;  %v5823_v55 = vpop.f32.mrf.mxu0  ;;  %4573 = vmatprep.mubr.bf16.mxu1 %v6483_v10 }
 0x120   : > { %v5826_v30 = vpop.f32.mrf.mxu1 }
 0x121   : > { %6501 = vst [vmem:[#allocation8_spill] sm:$0xff] %v5826_v30  ;;  %v5828_v18 = vpop.f32.mrf.mxu0 }
 0x122   : > { %v5830_v19 = vpop.f32.mrf.mxu1 }
 0x123   : > { %6502 = vst [vmem:[#allocation10_spill] sm:$0xff] %v5830_v19  ;;  %v4335_v39 = vpop.f32.mrf.mxu0  ;;  %4622 = vmatmul.mubr.bf16.vlgmr.msra.gmra.mxu0 %v5343_v49 }
 0x124   : > { %v5833_v28 = vpop.f32.mrf.mxu1  ;;  %4625 = vmatprep.mubr.bf16.mxu0 %v5345_v45 }
 0x125   : > { %6503 = vst [vmem:[#allocation13_spill] sm:$0xff] %v5833_v28  ;;  %v1627_v22 = vpop.f32.mrf.mxu0 }
 0x126   : > { %v4287_v11 = vpop.f32.mrf.mxu1  ;;  %4574 = vmatmul.mubr.bf16.vlgmr.msra.gmra.mxu1 %v6484_v52 }
 0x127   : > { %v1215_v43 = vadd.f32 %v4287_v11, %v5713_v44  ;;  %v4336_v10 = vpop.f32.mrf.mxu0  ;;  %4577 = vmatprep.mubr.bf16.mxu1 %v6485_v21 }
 0x128   : > { %v1206_v30 = vpop.f32.mrf.mxu1 }
 0x129   : > { %v5839_v31 = vadd.f32 %v4335_v39, %v1215_v43  ;;  %v1207_v19 = vadd.f32 %v1206_v30, %v5722_v57  ;;  %v1630_v17 = vpop.f32.mrf.mxu0 }
 0x12a   : > { %v4288_v49 = vpop.f32.mrf.mxu1 }
 0x12b   : > { %v5842_v29 = vadd.f32 %v1627_v22, %v1207_v19  ;;  %v1218_v45 = vadd.f32 %v4288_v49, %v5733_v5  ;;  %v4339_v28 = vpop.f32.mrf.mxu0  ;;  %4626 = vmatmul.mubr.bf16.gmra.mxu0 %v5391_v2 }
 0x12c   : > { %v1209_v52 = vpop.f32.mrf.mxu1  ;;  %4629 = vmatprep.mubr.bf16.mxu0 %v5399_v56 }
 0x12d   : > { %v5847_v44 = vadd.f32 %v4336_v10, %v1218_v45  ;;  %v1210_v21 = vadd.f32 %v1209_v52, %v5746_v4  ;;  %v1643_v43 = vpop.f32.mrf.mxu0 }
 0x12e   : > { %v4291_v39 = vpop.f32.mrf.mxu1  ;;  %4578 = vmatmul.mubr.bf16.gmra.mxu1 %v6486_v35 }
 0x12f   : > { %v5851_v57 = vadd.f32 %v1630_v17, %v1210_v21  ;;  %v1231_v19 = vadd.f32 %v4291_v39, %v5757_v38  ;;  %v4340_v11 = vpop.f32.mrf.mxu0  ;;  %4581 = vmatprep.mubr.bf16.mxu1 %v6487_v24 }
 0x130   : > { %v1222_v5 = vpop.f32.mrf.mxu1 }
 0x131   : > { %v5855_v2 = vadd.f32 %v4339_v28, %v1231_v19  ;;  %v1223_v56 = vadd.f32 %v1222_v5, %v5767_v60  ;;  %v1646_v30 = vpop.f32.mrf.mxu0 }
 0x132   : > { %v4292_v22 = vpop.f32.mrf.mxu1 }
 0x133   : > { %v5858_v10 = vadd.f32 %v1643_v43, %v1223_v56  ;;  %v1234_v4 = vadd.f32 %v4292_v22, %v5772_v14  ;;  %v4343_v49 = vpop.f32.mrf.mxu0  ;;  %4630 = vmatmul.mubr.bf16.gmra.mxu0 %v5484_v46 }
 0x134   : > { %v1225_v35 = vpop.f32.mrf.mxu1  ;;  %4633 = vmatprep.mubr.bf16.mxu0 %v5497_v37 }
 0x135   : > { %v5863_v38 = vadd.f32 %v4340_v11, %v1234_v4  ;;  %v1226_v24 = vadd.f32 %v1225_v35, %v5779_v36  ;;  %v1659_v17 = vpop.f32.mrf.mxu0 }
 0x136   : > { %v4295_v28 = vpop.f32.mrf.mxu1  ;;  %4582 = vmatmul.mubr.bf16.gmra.mxu1 %v5270_v20 }
 0x137   : > { %v5867_v60 = vadd.f32 %v1646_v30, %v1226_v24  ;;  %v1247_v45 = vadd.f32 %v4295_v28, %v5784_v25  ;;  %v4344_v52 = vpop.f32.mrf.mxu0  ;;  %4585 = vmatprep.mubr.bf16.mxu1 %v6488_v7 }
 0x138   : > { %v1238_v14 = vpop.f32.mrf.mxu1 }
 0x139   : > { %v5871_v46 = vadd.f32 %v4343_v49, %v1247_v45  ;;  %v1239_v37 = vadd.f32 %v1238_v14, %v5791_v12  ;;  %v1662_v21 = vpop.f32.mrf.mxu0  ;;  %v2884_v45 = vshrl.u32 %v5803_v8, 16 }
 0x13a   : > { %v4296_v43 = vpop.f32.mrf.mxu1 }
 0x13b   : > { %v5874_v39 = vadd.f32 %v1659_v17, %v1239_v37  ;;  %v1250_v36 = vadd.f32 %v4296_v43, %v5796_v50  ;;  %v4347_v19 = vpop.f32.mrf.mxu0  ;;  %4634 = vmatmul.mubr.bf16.gmra.mxu0 %v5547_v53  ;;  %v2871_v17 = vshrl.u32 %v5800_v34, 16 }
 0x13c   : > { %v1241_v20 = vpop.f32.mrf.mxu1  ;;  %4637 = vmatprep.mubr.bf16.mxu0 %v5549_v41 }
 0x13d   : > { %v5879_v25 = vadd.f32 %v4344_v52, %v1250_v36  ;;  %v1242_v7 = vadd.f32 %v1241_v20, %v5808_v3  ;;  %v1675_v11 = vpop.f32.mrf.mxu0  ;;  %v2873_v43 = vrot.slane %v2871_v17, 4  ;;  %v2886_v20 = vrot.slane %v2884_v45, 4 }
 0x13e   : > { %v4299_v5 = vpop.f32.mrf.mxu1  ;;  %4586 = vmatmul.mubr.bf16.gmra.mxu1 %v6489_v48 }
 0x13f   : > { %v5883_v12 = vadd.f32 %v1662_v21, %v1242_v7  ;;  %v1263_v56 = vadd.f32 %v4299_v5, %v5815_v27  ;;  %v4348_v30 = vpop.f32.mrf.mxu0  ;;  %4589 = vmatprep.mubr.bf16.mxu1 %v6490_v62 }
 0x140   : > { %v1254_v50 = vpop.f32.mrf.mxu1 }
 0x141   : > { %v5887_v53 = vadd.f32 %v4347_v19, %v1263_v56  ;;  %v1255_v41 = vadd.f32 %v1254_v50, %v5818_v54  ;;  %v1678_v22 = vpop.f32.mrf.mxu0  ;;  %v2874_v54 = vshll.u32 %v5800_v34, 16  ;;  %v334_v56 = vld [vmem:[%s4875_s28 + $0xd4] sm:$0x1]  ;;  %s4003_s28 = sshll.u32 %s6606_s15, 8 }
 0x142   : > { %v4300_v4 = vpop.f32.mrf.mxu1  ;;  %s6207_s21 = scalar_lea.vmem %s6415_s3, %s4003_s28  ;;  %s6235_s26 = scalar_lea.vmem %s6416_s4, %s4003_s28 }
 0x143   : > { %v5890_v49 = vadd.f32 %v1675_v11, %v1255_v41  ;;  %v1266_v3 = vadd.f32 %v4300_v4, %v5823_v55  ;;  %v4351_v35 = vpop.f32.mrf.mxu0  ;;  %4638 = vmatmul.mubr.bf16.gmra.mxu0 %v5447_v47  ;;  %v2880_v55 = vshll.u32 %v5803_v8, 16 }
 0x144   : > { %v1257_v48 = vpop.f32.mrf.mxu1  ;;  %4641 = vmatprep.mubr.bf16.mxu0 %v5468_v15 }
 0x145   : > { %v5895_v27 = vadd.f32 %v4348_v30, %v1266_v3  ;;  %v1258_v62 = vadd.f32 %v1257_v48, %v5828_v18  ;;  %v1691_v24 = vpop.f32.mrf.mxu0  ;;  %v2882_v19 = vrot.slane %v2880_v55, 5  ;;  %v2890_v3 = vshll.u32 %v334_v56, 16 }
 0x146   : > { %v4303_v28 = vpop.f32.mrf.mxu1  ;;  %4590 = vmatmul.mubr.bf16.gmra.mxu1 %v6491_v16  ;;  %v2876_v16 = vrot.slane %v2874_v54, 5 }
 0x147   : > { %v5903_v47 = vadd.f32 %v1678_v22, %v1258_v62  ;;  %v1279_v15 = vadd.f32 %v4303_v28, %v5716_v63  ;;  %v4352_v52 = vpop.f32.mrf.mxu0  ;;  %4593 = vmatprep.mubr.bf16.mxu1 %v6492_v23  ;;  %v3159_v23 = vrot.slane %v5803_v8, 5  ;;  %v2887_v8 = vor.u32 %v2886_v20, %v2882_v19 }
 0x148   : > { %v1270_v18 = vpop.f32.mrf.mxu1  ;;  %v2877_v22 = vor.u32 %v2876_v16, %v2873_v43  ;;  %v3162_v62 = vrot.slane %v334_v56, 5  ;;  %v2892_v45 = vrot.slane %v2890_v3, 5  ;;  %v6508_v56 = vld [vmem:[#allocation15_spill] sm:$0xff] }
 0x149   : > { %v5907_v14 = vadd.f32 %v4351_v35, %v1279_v15  ;;  %v1271_v37 = vadd.f32 %v1270_v18, %v5727_v40  ;;  %v1694_v21 = vpop.f32.mrf.mxu0  ;;  %v3161_v48 = vrot.slane %v3159_v23, 4 }
 0x14a   : > { %v4304_v36 = vpop.f32.mrf.mxu1  ;;  %v2878_v54 = vrot.slane %v2877_v22, 4  ;;  %v6509_v22 = vld [vmem:[#allocation18_spill] sm:$0xff] }
 0x14b   : > { %v5910_v7 = vadd.f32 %v1691_v24, %v1271_v37  ;;  %v1282_v11 = vadd.f32 %v4304_v36, %v5740_v1  ;;  %v4355_v63 = vpop.f32.mrf.mxu0  ;;  %4642 = vmatmul.mubr.bf16.gmra.mxu0 %v5477_v26 }
 0x14c   : > { %v1273_v5 = vpop.f32.mrf.mxu1  ;;  %4645 = vmatprep.mubr.bf16.mxu0 %v5505_v6  ;;  %v3974_v6 = vrot.slane %v5800_v34, 9  ;;  %v2883_v43 = vsel %vm4909_vm2, %v2878_v54, %v2882_v19 }
 0x14d   : > { %v5917_v40 = vadd.f32 %v4352_v52, %v1282_v11  ;;  %v1274_v30 = vadd.f32 %v1273_v5, %v5751_v13  ;;  %v1707_v50 = vpop.f32.mrf.mxu0  ;;  %v6507_v11 = vld [vmem:[#allocation14_spill] sm:$0xff] }
 0x14e   : > { %v4307_v41 = vpop.f32.mrf.mxu1  ;;  %4594 = vmatmul.mubr.bf16.gmra.mxu1 %v6493_v51  ;;  %v3160_v52 = vsel %vm5255_vm5, %v3974_v6, %v3159_v23  ;;  %v6510_v6 = vld [vmem:[#allocation4_spill] sm:$0xff] }
 0x14f   : > { %v5921_v4 = vadd.f32 %v1694_v21, %v1274_v30  ;;  %v1295_v1 = vadd.f32 %v4307_v41, %v5764_v59  ;;  %v4356_v26 = vpop.f32.mrf.mxu0  ;;  %4597 = vmatprep.mubr.bf16.mxu1 %v6494_v58  ;;  %v2888_v58 = vrot.slane %v2887_v8, 4 }
 0x150   : > { %v1286_v35 = vpop.f32.mrf.mxu1 }
 0x151   : > { %v5926_v13 = vadd.f32 %v4355_v63, %v1295_v1  ;;  %v1287_v24 = vadd.f32 %v1286_v35, %v5769_v0  ;;  %v1710_v51 = vpop.f32.mrf.mxu0  ;;  %v3163_v0 = vsel %vm5255_vm5, %v3161_v48, %v3162_v62  ;;  %v2893_v63 = vsel %vm4909_vm2, %v2888_v58, %v2892_v45  ;;  %v6512_v58 = vld [vmem:[#allocation8_spill] sm:$0xff] }
 0x152   : > { %v4308_v17 = vpop.f32.mrf.mxu1  ;;  %v3991_v23 = vcombine.low %v3160_v52, %v3163_v0  ;;  %v3965_v41 = vcombine.low %v2883_v43, %v2893_v63  ;;  %v6513_v0 = vld [vmem:[#allocation10_spill] sm:$0xff]  ;;  %v6514_v43 = vld [vmem:[#allocation13_spill] sm:$0xff] }
 0x153   : > { %v5929_v28 = vadd.f32 %v1707_v50, %v1287_v24  ;;  %v1298_v59 = vadd.f32 %v4308_v17, %v5776_v32  ;;  %v4359_v55 = vpop.f32.mrf.mxu0  ;;  %4646 = vmatmul.mubr.bf16.gmra.mxu0 %v5516_v9 }
 0x154   : > { %v1289_v34 = vpop.f32.mrf.mxu1  ;;  %4649 = vmatprep.mubr.bf16.mxu0 %v5590_v42  ;;  %v6506_v42 = vld [vmem:[#allocation12_spill] sm:$0xff] }
 0x155   : > { %v5938_v18 = vadd.f32 %v4356_v26, %v1298_v59  ;;  %v1290_v37 = vadd.f32 %v1289_v34, %v5781_v33  ;;  %v1723_v21 = vpop.f32.mrf.mxu0 }
 0x156   : > { %v4311_v32 = vpop.f32.mrf.mxu1  ;;  %4598 = vmatmul.mubr.bf16.gmra.mxu1 %v5289_v61 }
 0x157   : > { %v5944_v16 = vadd.f32 %v1710_v51, %v1290_v37  ;;  %v1311_v36 = vadd.f32 %v4311_v32, %v6506_v42  ;;  %v4360_v20 = vpop.f32.mrf.mxu0  ;;  %4601 = vmatprep.mubr.bf16.mxu1 %v6507_v11  ;;  %v6511_v51 = vld [vmem:[#allocation6_spill] sm:$0xff] }
 0x158   : > { %v1302_v5 = vpop.f32.mrf.mxu1 }
 0x159   : > { %v5950_v33 = vadd.f32 %v4359_v55, %v1311_v36  ;;  %v1303_v30 = vadd.f32 %v1302_v5, %v6508_v56  ;;  %v1726_v61 = vpop.f32.mrf.mxu0 }
 0x15a   : > { %v4312_v50 = vpop.f32.mrf.mxu1 }
 0x15b   : > { %v5953_v19 = vadd.f32 %v1723_v21, %v1303_v30  ;;  %v1314_v1 = vadd.f32 %v4312_v50, %v6509_v22  ;;  %v4363_v26 = vpop.f32.mrf.mxu0  ;;  %4650 = vmatmul.mubr.bf16.gmra.mxu0 %v3991_v23 }
 0x15c   : > { %v1305_v8 = vpop.f32.mrf.mxu1 }
 0x15d   : > { %v5956_v3 = vadd.f32 %v4360_v20, %v1314_v1  ;;  %v1306_v35 = vadd.f32 %v1305_v8, %v6510_v6  ;;  %v1739_v48 = vpop.f32.mrf.mxu0 }
 0x15e   : > { %v4315_v62 = vpop.f32.mrf.mxu1  ;;  %4602 = vmatmul.mubr.bf16.gmra.mxu1 %v3965_v41 }
 0x15f   : > { %v5959_v24 = vadd.f32 %v1726_v61, %v1306_v35  ;;  %v1327_v17 = vadd.f32 %v4315_v62, %v6511_v51  ;;  %v4364_v54 = vpop.f32.mrf.mxu0 }
 0x160   : > { %v1318_v59 = vpop.f32.mrf.mxu1 }
 0x161   : > { %v5962_v55 = vadd.f32 %v4363_v26, %v1327_v17  ;;  %v1319_v45 = vadd.f32 %v1318_v59, %v6512_v58  ;;  %v1742_v34 = vpop.f32.mrf.mxu0 }
 0x162   : > { %v4316_v15 = vpop.f32.mrf.mxu1 }
 0x163   : > { %v5965_v52 = vadd.f32 %v1739_v48, %v1319_v45  ;;  %v1330_v37 = vadd.f32 %v4316_v15, %v6513_v0  ;;  %v4431_v21 = vpop.f32.mrf.mxu0 }
 0x164   : > { %v1321_v32 = vpop.f32.mrf.mxu1 }
 0x165   : > { %v5968_v9 = vadd.f32 %v4364_v54, %v1330_v37  ;;  %v1322_v42 = vadd.f32 %v1321_v32, %v6514_v43  ;;  %v2177_v36 = vpop.f32.mrf.mxu0 }
 0x166   : > { %v4383_v20 = vpop.f32.mrf.mxu1 }
 0x167   : > { %v5971_v11 = vadd.f32 %v1742_v34, %v1322_v42  ;;  %v2020_v63 = vadd.f32 %v4383_v20, %v5839_v31  ;;  %v4432_v23 = vpop.f32.mrf.mxu0 }
 0x168   : > { %v1891_v5 = vpop.f32.mrf.mxu1 }
 0x169   : > { %v5974_v56 = vadd.f32 %v4431_v21, %v2020_v63  ;;  %v2018_v30 = vadd.f32 %v1891_v5, %v5842_v29  ;;  %v2180_v61 = vpop.f32.mrf.mxu0 }
 0x16a   : > { %v4384_v50 = vpop.f32.mrf.mxu1 }
 0x16b   : > { %v5977_v41 = vadd.f32 %v2177_v36, %v2018_v30  ;;  %v2021_v22 = vadd.f32 %v4384_v50, %v5847_v44  ;;  %v4435_v1 = vpop.f32.mrf.mxu0 }
 0x16c   : > { %v1894_v26 = vpop.f32.mrf.mxu1 }
 0x16d   : > { %v5980_v8 = vadd.f32 %v4432_v23, %v2021_v22  ;;  %v2019_v6 = vadd.f32 %v1894_v26, %v5851_v57  ;;  %v2193_v35 = vpop.f32.mrf.mxu0 }
 0x16e   : > { %v4387_v31 = vpop.f32.mrf.mxu1 }
 0x16f   : > { %v5983_v48 = vadd.f32 %v2180_v61, %v2019_v6  ;;  %v2024_v62 = vadd.f32 %v4387_v31, %v5855_v2  ;;  %v4436_v51 = vpop.f32.mrf.mxu0 }
 0x170   : > { %v1907_v29 = vpop.f32.mrf.mxu1 }
 0x171   : > { %v5986_v17 = vadd.f32 %v4435_v1, %v2024_v62  ;;  %v2022_v54 = vadd.f32 %v1907_v29, %v5858_v10  ;;  %v2196_v59 = vpop.f32.mrf.mxu0 }
 0x172   : > { %v4388_v44 = vpop.f32.mrf.mxu1 }
 0x173   : > { %v5989_v58 = vadd.f32 %v2193_v35, %v2022_v54  ;;  %v2025_v45 = vadd.f32 %v4388_v44, %v5863_v38  ;;  %v4439_v34 = vpop.f32.mrf.mxu0 }
 0x174   : > { %v1910_v57 = vpop.f32.mrf.mxu1 }
 0x175   : > { %v5992_v15 = vadd.f32 %v4436_v51, %v2025_v45  ;;  %v2023_v0 = vadd.f32 %v1910_v57, %v5867_v60  ;;  %v2209_v37 = vpop.f32.mrf.mxu0 }
 0x176   : > { %v4391_v2 = vpop.f32.mrf.mxu1 }
 0x177   : > { %v5995_v21 = vadd.f32 %v2196_v59, %v2023_v0  ;;  %v2028_v32 = vadd.f32 %v4391_v2, %v5871_v46  ;;  %v4440_v43 = vpop.f32.mrf.mxu0 }
 0x178   : > { %v1923_v10 = vpop.f32.mrf.mxu1 }
 0x179   : > { %v5998_v42 = vadd.f32 %v4439_v34, %v2028_v32  ;;  %v2026_v36 = vadd.f32 %v1923_v10, %v5874_v39  ;;  %v2212_v20 = vpop.f32.mrf.mxu0 }
 0x17a   : > { %v4392_v38 = vpop.f32.mrf.mxu1 }
 0x17b   : > { %v6001_v63 = vadd.f32 %v2209_v37, %v2026_v36  ;;  %v2029_v23 = vadd.f32 %v4392_v38, %v5879_v25  ;;  %v4443_v5 = vpop.f32.mrf.mxu0 }
 0x17c   : > { %v1926_v60 = vpop.f32.mrf.mxu1 }
 0x17d   : > { %v6004_v30 = vadd.f32 %v4440_v43, %v2029_v23  ;;  %v2027_v61 = vadd.f32 %v1926_v60, %v5883_v12  ;;  %v2225_v50 = vpop.f32.mrf.mxu0 }
 0x17e   : > { %v4395_v46 = vpop.f32.mrf.mxu1 }
 0x17f   : > { %v6007_v22 = vadd.f32 %v2212_v20, %v2027_v61  ;;  %v2032_v1 = vadd.f32 %v4395_v46, %v5887_v53  ;;  %v4444_v26 = vpop.f32.mrf.mxu0 }
 0x180   : > { %v1939_v39 = vpop.f32.mrf.mxu1 }
 0x181   : > { %v6010_v6 = vadd.f32 %v4443_v5, %v2032_v1  ;;  %v2030_v35 = vadd.f32 %v1939_v39, %v5890_v49  ;;  %v2228_v31 = vpop.f32.mrf.mxu0 }
 0x182   : > { %v4396_v25 = vpop.f32.mrf.mxu1 }
 0x183   : > { %v6013_v62 = vadd.f32 %v2225_v50, %v2030_v35  ;;  %v2033_v51 = vadd.f32 %v4396_v25, %v5895_v27  ;;  %v4447_v29 = vpop.f32.mrf.mxu0 }
 0x184   : > { %v1942_v12 = vpop.f32.mrf.mxu1 }
 0x185   : > { %v6016_v54 = vadd.f32 %v4444_v26, %v2033_v51  ;;  %v2031_v59 = vadd.f32 %v1942_v12, %v5903_v47  ;;  %v2241_v44 = vpop.f32.mrf.mxu0 }
 0x186   : > { %v4399_v53 = vpop.f32.mrf.mxu1 }
 0x187   : > { %v6019_v45 = vadd.f32 %v2228_v31, %v2031_v59  ;;  %v2036_v34 = vadd.f32 %v4399_v53, %v5907_v14  ;;  %v4448_v57 = vpop.f32.mrf.mxu0 }
 0x188   : > { %v1955_v49 = vpop.f32.mrf.mxu1 }
 0x189   : > { %v6022_v0 = vadd.f32 %v4447_v29, %v2036_v34  ;;  %v2034_v37 = vadd.f32 %v1955_v49, %v5910_v7  ;;  %v2244_v2 = vpop.f32.mrf.mxu0 }
 0x18a   : > { %v4400_v27 = vpop.f32.mrf.mxu1 }
 0x18b   : > { %v6025_v32 = vadd.f32 %v2241_v44, %v2034_v37  ;;  %v2037_v43 = vadd.f32 %v4400_v27, %v5917_v40  ;;  %v4451_v10 = vpop.f32.mrf.mxu0 }
 0x18c   : > { %v1958_v47 = vpop.f32.mrf.mxu1 }
 0x18d   : > { %v6028_v36 = vadd.f32 %v4448_v57, %v2037_v43  ;;  %v2035_v20 = vadd.f32 %v1958_v47, %v5921_v4  ;;  %v2257_v38 = vpop.f32.mrf.mxu0 }
 0x18e   : > { %v4403_v14 = vpop.f32.mrf.mxu1 }
 0x18f   : > { %6515 = vst [vmem:[#allocation17_spill] sm:$0xff] %v6028_v36  ;;  %v6031_v23 = vadd.f32 %v2244_v2, %v2035_v20  ;;  %v2040_v5 = vadd.f32 %v4403_v14, %v5926_v13  ;;  %v4452_v60 = vpop.f32.mrf.mxu0 }
 0x190   : > { %v1971_v7 = vpop.f32.mrf.mxu1 }
 0x191   : > { %6516 = vst [vmem:[#allocation3_spill] sm:$0xff] %v6031_v23  ;;  %v6034_v61 = vadd.f32 %v4451_v10, %v2040_v5  ;;  %v2038_v50 = vadd.f32 %v1971_v7, %v5929_v28  ;;  %v2260_v46 = vpop.f32.mrf.mxu0 }
 0x192   : > { %v4404_v40 = vpop.f32.mrf.mxu1 }
 0x193   : > { %6517 = vst [vmem:[#allocation5_spill] sm:$0xff] %v6034_v61  ;;  %v6037_v1 = vadd.f32 %v2257_v38, %v2038_v50  ;;  %v2041_v26 = vadd.f32 %v4404_v40, %v5938_v18  ;;  %v4455_v39 = vpop.f32.mrf.mxu0 }
 0x194   : > { %v1974_v4 = vpop.f32.mrf.mxu1 }
 0x195   : > { %6518 = vst [vmem:[#allocation7_spill] sm:$0xff] %v6037_v1  ;;  %v6040_v35 = vadd.f32 %v4452_v60, %v2041_v26  ;;  %v2039_v31 = vadd.f32 %v1974_v4, %v5944_v16  ;;  %v2273_v25 = vpop.f32.mrf.mxu0 }
 0x196   : > { %v4407_v13 = vpop.f32.mrf.mxu1 }
 0x197   : > { %6519 = vst [vmem:[#allocation9_spill] sm:$0xff] %v6040_v35  ;;  %v6043_v51 = vadd.f32 %v2260_v46, %v2039_v31  ;;  %v2044_v29 = vadd.f32 %v4407_v13, %v5950_v33  ;;  %v4456_v12 = vpop.f32.mrf.mxu0 }
 0x198   : > { %v1987_v28 = vpop.f32.mrf.mxu1 }
 0x199   : > { %6520 = vst [vmem:[#allocation11_spill] sm:$0xff] %v6043_v51  ;;  %v6046_v59 = vadd.f32 %v4455_v39, %v2044_v29  ;;  %v2042_v44 = vadd.f32 %v1987_v28, %v5953_v19  ;;  %v2276_v53 = vpop.f32.mrf.mxu0 }
 0x19a   : > { %v4408_v18 = vpop.f32.mrf.mxu1 }
 0x19b   : > { %6521 = vst [vmem:[#allocation16_spill] sm:$0xff] %v6046_v59  ;;  %v6049_v34 = vadd.f32 %v2273_v25, %v2042_v44  ;;  %v2045_v57 = vadd.f32 %v4408_v18, %v5956_v3  ;;  %v4459_v49 = vpop.f32.mrf.mxu0 }
 0x19c   : > { %v1990_v16 = vpop.f32.mrf.mxu1 }
 0x19d   : > { %6522 = vst [vmem:[#allocation19_spill] sm:$0xff] %v6049_v34  ;;  %v6052_v37 = vadd.f32 %v4456_v12, %v2045_v57  ;;  %v2043_v2 = vadd.f32 %v1990_v16, %v5959_v24  ;;  %v2289_v27 = vpop.f32.mrf.mxu0 }
 0x19e   : > { %v4411_v33 = vpop.f32.mrf.mxu1 }
 0x19f   : > { %6523 = vst [vmem:[#allocation20_spill] sm:$0xff] %v6052_v37  ;;  %v6055_v43 = vadd.f32 %v2276_v53, %v2043_v2  ;;  %v2048_v10 = vadd.f32 %v4411_v33, %v5962_v55  ;;  %v4460_v47 = vpop.f32.mrf.mxu0 }
 0x1a0   : > { %v2003_v19 = vpop.f32.mrf.mxu1 }
 0x1a1   : > { %6524 = vst [vmem:[#allocation2_spill] sm:$0xff] %v6055_v43  ;;  %v6058_v20 = vadd.f32 %v4459_v49, %v2048_v10  ;;  %v2046_v38 = vadd.f32 %v2003_v19, %v5965_v52  ;;  %v2292_v14 = vpop.f32.mrf.mxu0 }
 0x1a2   : > { %v4412_v3 = vpop.f32.mrf.mxu1 }
 0x1a3   : > { %6525 = vst [vmem:[#allocation12_spill] sm:$0xff] %v6058_v20  ;;  %v6061_v5 = vadd.f32 %v2289_v27, %v2046_v38  ;;  %v2049_v60 = vadd.f32 %v4412_v3, %v5968_v9  ;;  %v6064_v7 = vpop.f32.mrf.mxu0 }
 0x1a4   : > { %v2006_v24 = vpop.f32.mrf.mxu1 }
 0x1a5   : > { %6526 = vst [vmem:[#allocation14_spill] sm:$0xff] %v6061_v5  ;;  %v6066_v50 = vadd.f32 %v4460_v47, %v2049_v60  ;;  %v2047_v46 = vadd.f32 %v2006_v24, %v5971_v11  ;;  %v6069_v55 = vpop.f32.mrf.mxu0 }
 0x1a6   : > { %v4479_v40 = vpop.f32.mrf.mxu1 }
 0x1a7   : > { %6527 = vst [vmem:[#allocation15_spill] sm:$0xff] %v6066_v50  ;;  %v6071_v26 = vadd.f32 %v2292_v14, %v2047_v46  ;;  %v6073_v39 = vpop.f32.mrf.mxu0 }
 0x1a8   : > { %v2447_v52 = vpop.f32.mrf.mxu1 }
 0x1a9   : > { %6528 = vst [vmem:[#allocation18_spill] sm:$0xff] %v6071_v26  ;;  %v6075_v4 = vpop.f32.mrf.mxu0 }
 0x1aa   : > { %v6077_v31 = vpop.f32.mrf.mxu1 }
 0x1ab   : > { %v6079_v9 = vpop.f32.mrf.mxu0 }
 0x1ac   : > { %v6081_v25 = vpop.f32.mrf.mxu1 }
 0x1ad   : > { %v6083_v13 = vpop.f32.mrf.mxu0 }
 0x1ae   : > { %v6085_v29 = vpop.f32.mrf.mxu1 }
 0x1af   : > { %v6087_v11 = vpop.f32.mrf.mxu0 }
 0x1b0   : > { %v6089_v12 = vpop.f32.mrf.mxu1 }
 0x1b1   : > { %v6091_v28 = vpop.f32.mrf.mxu0 }
 0x1b2   : > { %v6093_v44 = vpop.f32.mrf.mxu1 }
 0x1b3   : > { %v6095_v53 = vpop.f32.mrf.mxu0 }
 0x1b4   : > { %v6097_v18 = vpop.f32.mrf.mxu1 }
 0x1b5   : > { %v6099_v57 = vpop.f32.mrf.mxu0 }
 0x1b6   : > { %v6101_v49 = vpop.f32.mrf.mxu1 }
 0x1b7   : > { %v6103_v16 = vpop.f32.mrf.mxu0 }
 0x1b8   : > { %v6105_v2 = vpop.f32.mrf.mxu1 }
 0x1b9   : > { %v6107_v27 = vpop.f32.mrf.mxu0 }
 0x1ba   : > { %v6109_v33 = vpop.f32.mrf.mxu1 }
 0x1bb   : > { %v6111_v10 = vpop.f32.mrf.mxu0 }
 0x1bc   : > { %v6113_v47 = vpop.f32.mrf.mxu1 }
 0x1bd   : > { %v6115_v19 = vpop.f32.mrf.mxu0 }
 0x1be   : > { %v6117_v38 = vpop.f32.mrf.mxu1 }
 0x1bf   : > { %v6119_v14 = vpop.f32.mrf.mxu0 }
 0x1c0   : > { %v6121_v3 = vpop.f32.mrf.mxu1 }
 0x1c1   : > { %v6123_v60 = vpop.f32.mrf.mxu0 }
 0x1c2   : > { %v6125_v24 = vpop.f32.mrf.mxu1 }
 0x1c3   : > { %v6127_v46 = vpop.f32.mrf.mxu0 }
 0x1c4   : > { %v6129_v26 = vpop.f32.mrf.mxu1 }
 0x1c5   : > { %v6131_v50 = vpop.f32.mrf.mxu0 }
 0x1c6   : > { %6529 = vst [vmem:[#allocation4_spill] sm:$0xff] %v6131_v50  ;;  %v6133_v5 = vpop.f32.mrf.mxu1 }
 0x1c7   : > { %v6135_v20 = vpop.f32.mrf.mxu0 }
 0x1c8   : > { %6530 = vst [vmem:[#allocation6_spill] sm:$0xff] %v6135_v20  ;;  %v6137_v43 = vpop.f32.mrf.mxu1 }
 0x1c9   : > { %v6139_v37 = vpop.f32.mrf.mxu0 }
 0x1ca   : > { %6531 = vst [vmem:[#allocation8_spill] sm:$0xff] %v6139_v37  ;;  %v6141_v34 = vpop.f32.mrf.mxu1 }
 0x1cb   : > { %6532 = vst [vmem:[#allocation10_spill] sm:$0xff] %v6141_v34  ;;  %v6143_v59 = vpop.f32.mrf.mxu0 }
 0x1cc   : > { %6533 = vst [vmem:[#allocation13_spill] sm:$0xff] %v6143_v59  ;;  %v6145_v51 = vpop.f32.mrf.mxu1 }
 0x1cd   : > { %6534 = vst [vmem:[#allocation21_spill] sm:$0xff] %v6145_v51  ;;  %v6147_v35 = vpop.f32.mrf.mxu0 }
 0x1ce   : > { %6535 = vst [vmem:[#allocation22_spill] sm:$0xff] %v6147_v35  ;;  %v6149_v1 = vpop.f32.mrf.mxu1 }
 0x1cf   : > { %6536 = vst [vmem:[#allocation23_spill] sm:$0xff] %v6149_v1  ;;  %v6151_v61 = vpop.f32.mrf.mxu0 }
 0x1d0   : > { %6537 = vst [vmem:[#allocation24_spill] sm:$0xff] %v6151_v61  ;;  %v6153_v23 = vpop.f32.mrf.mxu1 }
 0x1d1   : > { %6538 = vst [vmem:[#allocation25_spill] sm:$0xff] %v6153_v23  ;;  %v6155_v50 = vpop.f32.mrf.mxu0 }
 0x1d2   : > { %6539 = vst [vmem:[#allocation26_spill] sm:$0xff] %v6155_v50  ;;  %v6157_v20 = vpop.f32.mrf.mxu1 }
 0x1d3   : > { %6540 = vst [vmem:[#allocation27_spill] sm:$0xff] %v6157_v20  ;;  %v6159_v36 = vpop.f32.mrf.mxu0 }
 0x1d4   : > { %6541 = vst [vmem:[#allocation28_spill] sm:$0xff] %v6159_v36  ;;  %v6161_v37 = vpop.f32.mrf.mxu1 }
 0x1d5   : > { %6542 = vst [vmem:[#allocation29_spill] sm:$0xff] %v6161_v37  ;;  %v6163_v34 = vpop.f32.mrf.mxu0 }
 0x1d6   : > { %6543 = vst [vmem:[#allocation30_spill] sm:$0xff] %v6163_v34  ;;  %v6165_v59 = vpop.f32.mrf.mxu1 }
 0x1d7   : > { %6544 = vst [vmem:[#allocation31_spill] sm:$0xff] %v6165_v59  ;;  %v6167_v51 = vpop.f32.mrf.mxu0 }
 0x1d8   : > { %6545 = vst [vmem:[#allocation32_spill] sm:$0xff] %v6167_v51  ;;  %v6169_v35 = vpop.f32.mrf.mxu1  ;;  %v2576_v51 = vadd.f32 %v4479_v40, %v5974_v56  ;;  %v2575_v56 = vadd.f32 %v6081_v25, %v5983_v48 }
 0x1d9   : > { %6546 = vst [vmem:[#allocation33_spill] sm:$0xff] %v6169_v35  ;;  %v6171_v61 = vpop.f32.mrf.mxu0 }
 0x1da   : > { %6547 = vst [vmem:[#allocation34_spill] sm:$0xff] %v6171_v61  ;;  %v6173_v23 = vpop.f32.mrf.mxu1  ;;  %v2839_v25 = vadd.f32 %v6075_v4, %v2575_v56 }
 0x1db   : > { %6548 = vst [vmem:[#allocation35_spill] sm:$0xff] %v6173_v23  ;;  %v6175_v50 = vpop.f32.mrf.mxu0  ;;  %v2574_v23 = vadd.f32 %v2447_v52, %v5977_v41  ;;  %v3467_v52 = vld [vmem:[%s6207_s21 + $0x10] sm:$0xff] }
 0x1dc   : > { %6549 = vst [vmem:[#allocation36_spill] sm:$0xff] %v6175_v50  ;;  %v6177_v20 = vpop.f32.mrf.mxu1 }
 0x1dd   : > { %6550 = vst [vmem:[#allocation37_spill] sm:$0xff] %v6177_v20  ;;  %v6179_v36 = vpop.f32.mrf.mxu0 }
 0x1de   : > { %6551 = vst [vmem:[#allocation38_spill] sm:$0xff] %v6179_v36  ;;  %v6181_v37 = vpop.f32.mrf.mxu1  ;;  %v2840_v36 = vadd.f32 %v6064_v7, %v2576_v51 }
 0x1df   : > { %6552 = vst [vmem:[#allocation39_spill] sm:$0xff] %v6181_v37  ;;  %v6183_v34 = vpop.f32.mrf.mxu0 }
 0x1e0   : > { %6553 = vst [vmem:[#allocation40_spill] sm:$0xff] %v6183_v34  ;;  %v6185_v59 = vpop.f32.mrf.mxu1  ;;  %v2577_v34 = vadd.f32 %v6077_v31, %v5980_v8  ;;  %v6212_v8 = vld [vmem:[%s6414_s2] ss:$0 sm:$0xff] }
 0x1e1   : > { %6554 = vst [vmem:[#allocation41_spill] sm:$0xff] %v6185_v59  ;;  %v6188_v35 = vpop.f32.mrf.mxu0  ;;  %v2838_v59 = vadd.f32 %v6069_v55, %v2574_v23  ;;  %v2578_v55 = vadd.f32 %v6089_v12, %v5989_v58 }
 0x1e2   : > { %6555 = vst [vmem:[#allocation42_spill] sm:$0xff] %v6188_v35  ;;  %v6190_v61 = vpop.f32.mrf.mxu1  ;;  %v2841_v23 = vadd.f32 %v6073_v39, %v2577_v34 }
 0x1e3   : > { %6556 = vst [vmem:[#allocation43_spill] sm:$0xff] %v6190_v61  ;;  %v4623_v50 = vpop.f32.mrf.mxu0  ;;  %v2842_v56 = vadd.f32 %v6083_v13, %v2578_v55 }
 0x1e4   : > { %v6193_v1 = vpop.f32.mrf.mxu1 }
 0x1e5   : > { %6557 = vst [vmem:[#allocation44_spill] sm:$0xff] %v6193_v1  ;;  %v3267_v37 = vpop.f32.mrf.mxu0 }
 0x1e6   : > { %v4575_v20 = vpop.f32.mrf.mxu1 }
 0x1e7   : > { %v3126_v40 = vadd.f32 %v4575_v20, %v2840_v36  ;;  %v4624_v41 = vpop.f32.mrf.mxu0  ;;  %v2580_v20 = vadd.f32 %v6085_v29, %v5986_v17 }
 0x1e8   : > { %v2997_v51 = vpop.f32.mrf.mxu1 }
 0x1e9   : > { %v3396_v7 = vadd.f32 %v4623_v50, %v3126_v40  ;;  %v3124_v48 = vadd.f32 %v2997_v51, %v2838_v59  ;;  %v3270_v36 = vpop.f32.mrf.mxu0  ;;  %v2581_v59 = vadd.f32 %v6093_v44, %v5992_v15  ;;  %v3465_v50 = vld [vmem:[%s6207_s21] sm:$0xff]  ;;  %v2844_v4 = vadd.f32 %v6079_v9, %v2580_v20  ;;  %v3468_v15 = vld [vmem:[%s6207_s21 + $0x18] sm:$0xff] }
 0x1ea   : > { %v4576_v31 = vpop.f32.mrf.mxu1 }
 0x1eb   : > { %v3435_v35 = vadd.f32 %v6212_v8, %v3396_v7  ;;  %v3394_v1 = vadd.f32 %v3267_v37, %v3124_v48  ;;  %v3127_v61 = vadd.f32 %v4576_v31, %v2841_v23  ;;  %v4627_v34 = vpop.f32.mrf.mxu0  ;;  %v2579_v37 = vadd.f32 %v6097_v18, %v5995_v21  ;;  %v3466_v18 = vld [vmem:[%s6207_s21 + $0x8] sm:$0xff] }
 0x1ec   : > { %v3000_v39 = vpop.f32.mrf.mxu1  ;;  %v2845_v13 = vadd.f32 %v6087_v11, %v2581_v59  ;;  %v2584_v21 = vadd.f32 %v6101_v49, %v5998_v42  ;;  %v3471_v49 = vld [vmem:[%s6207_s21 + $0x30] sm:$0xff] }
 0x1ed   : > { %v3499_v17 = vadd.f32 %v3467_v52, %v3435_v35  ;;  %v3433_v29 = vadd.f32 %v6212_v8, %v3394_v1  ;;  %v3397_v58 = vadd.f32 %v4624_v41, %v3127_v61  ;;  %v3125_v12 = vadd.f32 %v3000_v39, %v2839_v25  ;;  %v3283_v40 = vpop.f32.mrf.mxu0 }
 0x1ee   : > { %v4579_v1 = vpop.f32.mrf.mxu1 }
 0x1ef   : > { %v3531_v61 = vmax.f32 %v3499_v17, 0.0  ;;  %v3497_v35 = vadd.f32 %v3465_v50, %v3433_v29  ;;  %v3436_v44 = vadd.f32 %v6212_v8, %v3397_v58  ;;  %v3395_v41 = vadd.f32 %v3270_v36, %v3125_v12  ;;  %v4628_v9 = vpop.f32.mrf.mxu0  ;;  %v3469_v58 = vld [vmem:[%s6207_s21 + $0x20] sm:$0xff] }
 0x1f0   : > { %v3130_v51 = vadd.f32 %v4579_v1, %v2844_v4  ;;  %v3013_v23 = vpop.f32.mrf.mxu1  ;;  %v2843_v36 = vadd.f32 %v6091_v28, %v2579_v37  ;;  %v2848_v17 = vadd.f32 %v6095_v53, %v2584_v21  ;;  %v2582_v29 = vadd.f32 %v6105_v2, %v6001_v63  ;;  %v3472_v63 = vld [vmem:[%s6207_s21 + $0x38] sm:$0xff] }
 0x1f1   : > { %3563 = vst [vmem:[%s6235_s26 + $0x10] sm:$0xff] %v3531_v61  ;;  %v3529_v7 = vmax.f32 %v3497_v35, 0.0  ;;  %v3500_v48 = vadd.f32 %v3468_v15, %v3436_v44  ;;  %v3434_v20 = vadd.f32 %v6212_v8, %v3395_v41  ;;  %v3128_v55 = vadd.f32 %v3013_v23, %v2842_v56  ;;  %v3286_v52 = vpop.f32.mrf.mxu0 }
 0x1f2   : > { %v3400_v31 = vadd.f32 %v4627_v34, %v3130_v51  ;;  %v4580_v11 = vpop.f32.mrf.mxu1  ;;  %v2585_v28 = vadd.f32 %v6109_v33, %v6004_v30  ;;  %v2583_v53 = vadd.f32 %v6113_v47, %v6007_v22  ;;  %v2846_v41 = vadd.f32 %v6099_v57, %v2582_v29 }
 0x1f3   : > { %3561 = vst [vmem:[%s6235_s26] sm:$0xff] %v3529_v7  ;;  %v3532_v25 = vmax.f32 %v3500_v48, 0.0  ;;  %v3498_v42 = vadd.f32 %v3466_v18, %v3434_v20  ;;  %v3398_v59 = vadd.f32 %v3283_v40, %v3128_v55  ;;  %v3131_v50 = vadd.f32 %v4580_v11, %v2845_v13  ;;  %v4631_v39 = vpop.f32.mrf.mxu0  ;;  %v3470_v13 = vld [vmem:[%s6207_s21 + $0x28] sm:$0xff] }
 0x1f4   : > { %v3439_v34 = vadd.f32 %v6212_v8, %v3400_v31  ;;  %v3016_v12 = vpop.f32.mrf.mxu1  ;;  %v2588_v22 = vadd.f32 %v6117_v38, %v6010_v6  ;;  %v2847_v20 = vadd.f32 %v6107_v27, %v2583_v53  ;;  %v2586_v57 = vadd.f32 %v6121_v3, %v6013_v62 }
 0x1f5   : > { %3564 = vst [vmem:[%s6235_s26 + $0x18] sm:$0xff] %v3532_v25  ;;  %v3530_v4 = vmax.f32 %v3498_v42, 0.0  ;;  %v3437_v40 = vadd.f32 %v6212_v8, %v3398_v59  ;;  %v3401_v56 = vadd.f32 %v4628_v9, %v3131_v50  ;;  %v3129_v37 = vadd.f32 %v3016_v12, %v2843_v36  ;;  %v3299_v15 = vpop.f32.mrf.mxu0 }
 0x1f6   : > { %v3503_v1 = vadd.f32 %v3471_v49, %v3439_v34  ;;  %v4583_v2 = vpop.f32.mrf.mxu1  ;;  %v2849_v9 = vadd.f32 %v6103_v16, %v2585_v28  ;;  %v3475_v16 = vld [vmem:[%s6207_s21 + $0x50] sm:$0xff]  ;;  %v2852_v25 = vadd.f32 %v6111_v10, %v2588_v22  ;;  %v3473_v49 = vld [vmem:[%s6207_s21 + $0x40] sm:$0xff]  ;;  %v2589_v29 = vadd.f32 %v6125_v24, %v6016_v54  ;;  %v3476_v34 = vld [vmem:[%s6207_s21 + $0x58] sm:$0xff] }
 0x1f7   : > { %3562 = vst [vmem:[%s6235_s26 + $0x8] sm:$0xff] %v3530_v4  ;;  %v3501_v30 = vadd.f32 %v3469_v58, %v3437_v40  ;;  %v3440_v33 = vadd.f32 %v6212_v8, %v3401_v56  ;;  %v3399_v61 = vadd.f32 %v3286_v52, %v3129_v37  ;;  %v3134_v35 = vadd.f32 %v4583_v2, %v2848_v17  ;;  %v4632_v44 = vpop.f32.mrf.mxu0  ;;  %v3474_v54 = vld [vmem:[%s6207_s21 + $0x48] sm:$0xff] }
 0x1f8   : > { %v3535_v47 = vmax.f32 %v3503_v1, 0.0  ;;  %v3029_v21 = vpop.f32.mrf.mxu1  ;;  %v2850_v17 = vadd.f32 %v6115_v19, %v2586_v57  ;;  %v2587_v10 = vadd.f32 %v6129_v26, %v6019_v45  ;;  %v2592_v19 = vadd.f32 %v6133_v5, %v6022_v0 }
 0x1f9   : > { %v3533_v18 = vmax.f32 %v3501_v30, 0.0  ;;  %v3504_v51 = vadd.f32 %v3472_v63, %v3440_v33  ;;  %v3438_v23 = vadd.f32 %v6212_v8, %v3399_v61  ;;  %v3404_v7 = vadd.f32 %v4631_v39, %v3134_v35  ;;  %v3302_v48 = vpop.f32.mrf.mxu0  ;;  %v3479_v33 = vld [vmem:[%s6207_s21 + $0x70] sm:$0xff] }
 0x1fa   : > { %3567 = vst [vmem:[%s6235_s26 + $0x30] sm:$0xff] %v3535_v47  ;;  %v3132_v55 = vadd.f32 %v3029_v21, %v2846_v41  ;;  %v4584_v6 = vpop.f32.mrf.mxu1  ;;  %v2853_v2 = vadd.f32 %v6119_v14, %v2589_v29  ;;  %v2851_v30 = vadd.f32 %v6123_v60, %v2587_v10  ;;  %v2590_v0 = vadd.f32 %v6137_v43, %v6025_v32  ;;  %v6559_v14 = vld [vmem:[#allocation10_spill] sm:$0xff] }
 0x1fb   : > { %3565 = vst [vmem:[%s6235_s26 + $0x20] sm:$0xff] %v3533_v18  ;;  %v3536_v38 = vmax.f32 %v3504_v51, 0.0  ;;  %v3502_v52 = vadd.f32 %v3470_v13, %v3438_v23  ;;  %v3443_v36 = vadd.f32 %v6212_v8, %v3404_v7  ;;  %v3135_v31 = vadd.f32 %v4584_v6, %v2849_v9  ;;  %v4635_v11 = vpop.f32.mrf.mxu0  ;;  %v6558_v13 = vld [vmem:[#allocation17_spill] sm:$0xff]  ;;  %v3477_v60 = vld [vmem:[%s6207_s21 + $0x60] sm:$0xff] }
 0x1fc   : > { %v3402_v27 = vadd.f32 %v3299_v15, %v3132_v55  ;;  %v3032_v42 = vpop.f32.mrf.mxu1  ;;  %v2856_v47 = vadd.f32 %v6127_v46, %v2592_v19  ;;  %v2593_v21 = vadd.f32 %v6559_v14, %v6558_v13  ;;  %v6572_v13 = vld [vmem:[#allocation22_spill] sm:$0xff] }
 0x1fd   : > { %3568 = vst [vmem:[%s6235_s26 + $0x38] sm:$0xff] %v3536_v38  ;;  %v3534_v62 = vmax.f32 %v3502_v52, 0.0  ;;  %v3507_v3 = vadd.f32 %v3475_v16, %v3443_v36  ;;  %v3405_v59 = vadd.f32 %v4632_v44, %v3135_v31  ;;  %v3133_v50 = vadd.f32 %v3032_v42, %v2847_v20  ;;  %v3315_v39 = vpop.f32.mrf.mxu0  ;;  %v6560_v20 = vld [vmem:[#allocation4_spill] sm:$0xff]  ;;  %v3480_v38 = vld [vmem:[%s6207_s21 + $0x78] sm:$0xff] }
 0x1fe   : > { %v3441_v28 = vadd.f32 %v6212_v8, %v3402_v27  ;;  %v4587_v58 = vpop.f32.mrf.mxu1  ;;  %v2854_v57 = vadd.f32 %v6560_v20, %v2590_v0  ;;  %v6562_v27 = vld [vmem:[#allocation3_spill] sm:$0xff]  ;;  %v6563_v42 = vld [vmem:[#allocation21_spill] sm:$0xff] }
 0x1ff   : > { %3566 = vst [vmem:[%s6235_s26 + $0x28] sm:$0xff] %v3534_v62  ;;  %v3539_v12 = vmax.f32 %v3507_v3, 0.0  ;;  %v3444_v4 = vadd.f32 %v6212_v8, %v3405_v59  ;;  %v3403_v40 = vadd.f32 %v3302_v48, %v3133_v50  ;;  %v3138_v56 = vadd.f32 %v4587_v58, %v2852_v25  ;;  %v4636_v37 = vpop.f32.mrf.mxu0  ;;  %v6564_v3 = vld [vmem:[#allocation5_spill] sm:$0xff]  ;;  %v6571_v0 = vld [vmem:[#allocation27_spill] sm:$0xff] }
 0x200   : > { %v3505_v15 = vadd.f32 %v3473_v49, %v3441_v28  ;;  %v3045_v24 = vpop.f32.mrf.mxu1  ;;  %v2591_v62 = vadd.f32 %v6563_v42, %v6562_v27  ;;  %v6565_v49 = vld [vmem:[#allocation23_spill] sm:$0xff]  ;;  %v6576_v27 = vld [vmem:[#allocation26_spill] sm:$0xff] }
 0x201   : > { %3571 = vst [vmem:[%s6235_s26 + $0x50] sm:$0xff] %v3539_v12  ;;  %v3508_v45 = vadd.f32 %v3476_v34, %v3444_v4  ;;  %v3442_v26 = vadd.f32 %v6212_v8, %v3403_v40  ;;  %v3408_v53 = vadd.f32 %v4635_v11, %v3138_v56  ;;  %v3136_v1 = vadd.f32 %v3045_v24, %v2850_v17  ;;  %v3318_v63 = vpop.f32.mrf.mxu0  ;;  %v6561_v11 = vld [vmem:[#allocation6_spill] sm:$0xff]  ;;  %v6566_v12 = vld [vmem:[#allocation7_spill] sm:$0xff]  ;;  %v6567_v4 = vld [vmem:[#allocation25_spill] sm:$0xff] }
 0x202   : > { %v3537_v5 = vmax.f32 %v3505_v15, 0.0  ;;  %v4588_v61 = vpop.f32.mrf.mxu1  ;;  %v2857_v25 = vadd.f32 %v6561_v11, %v2593_v21  ;;  %v2596_v59 = vadd.f32 %v6565_v49, %v6564_v3  ;;  %v2594_v40 = vadd.f32 %v6567_v4, %v6566_v12  ;;  %v6573_v21 = vld [vmem:[#allocation11_spill] sm:$0xff] }
 0x203   : > { %v3540_v35 = vmax.f32 %v3508_v45, 0.0  ;;  %v3506_v44 = vadd.f32 %v3474_v54, %v3442_v26  ;;  %v3447_v41 = vadd.f32 %v6212_v8, %v3408_v53  ;;  %v3406_v9 = vadd.f32 %v3315_v39, %v3136_v1  ;;  %v4639_v22 = vpop.f32.mrf.mxu0  ;;  %v3478_v39 = vld [vmem:[%s6207_s21 + $0x68] sm:$0xff]  ;;  %v6568_v53 = vld [vmem:[#allocation8_spill] sm:$0xff] }
 0x204   : > { %3569 = vst [vmem:[%s6235_s26 + $0x40] sm:$0xff] %v3537_v5  ;;  %v3139_v18 = vadd.f32 %v4588_v61, %v2853_v2  ;;  %v3048_v32 = vpop.f32.mrf.mxu1  ;;  %v2855_v1 = vadd.f32 %v6568_v53, %v2591_v62  ;;  %v3481_v61 = vld [vmem:[%s6207_s21 + $0x80] sm:$0xff]  ;;  %v2858_v14 = vadd.f32 %v6572_v13, %v2594_v40  ;;  %v6577_v62 = vld [vmem:[#allocation16_spill] sm:$0xff]  ;;  %v6578_v3 = vld [vmem:[#allocation31_spill] sm:$0xff] }
 0x205   : > { %3572 = vst [vmem:[%s6235_s26 + $0x58] sm:$0xff] %v3540_v35  ;;  %v3538_v43 = vmax.f32 %v3506_v44, 0.0  ;;  %v3511_v51 = vadd.f32 %v3479_v33, %v3447_v41  ;;  %v3445_v23 = vadd.f32 %v6212_v8, %v3406_v9  ;;  %v3137_v7 = vadd.f32 %v3048_v32, %v2851_v30  ;;  %v3331_v48 = vpop.f32.mrf.mxu0  ;;  %v6570_v30 = vld [vmem:[#allocation9_spill] sm:$0xff]  ;;  %v6581_v40 = vld [vmem:[#allocation20_spill] sm:$0xff] }
 0x206   : > { %v3409_v46 = vadd.f32 %v4636_v37, %v3139_v18  ;;  %v4591_v16 = vpop.f32.mrf.mxu1  ;;  %v3483_v37 = vld [vmem:[%s6207_s21 + $0x90] sm:$0xff]  ;;  %v2597_v5 = vadd.f32 %v6571_v0, %v6570_v30  ;;  %v3484_v32 = vld [vmem:[%s6207_s21 + $0x98] sm:$0xff]  ;;  %v2600_v49 = vadd.f32 %v6578_v3, %v6577_v62  ;;  %v6584_v30 = vld [vmem:[#allocation30_spill] sm:$0xff] }
 0x207   : > { %3570 = vst [vmem:[%s6235_s26 + $0x48] sm:$0xff] %v3538_v43  ;;  %v3543_v55 = vmax.f32 %v3511_v51, 0.0  ;;  %v3509_v6 = vadd.f32 %v3477_v60, %v3445_v23  ;;  %v3407_v52 = vadd.f32 %v3318_v63, %v3137_v7  ;;  %v3142_v36 = vadd.f32 %v4591_v16, %v2856_v47  ;;  %v4640_v31 = vpop.f32.mrf.mxu0  ;;  %v6569_v63 = vld [vmem:[#allocation13_spill] sm:$0xff]  ;;  %v6591_v62 = vld [vmem:[#allocation36_spill] sm:$0xff] }
 0x208   : > { %v3448_v50 = vadd.f32 %v6212_v8, %v3409_v46  ;;  %v3061_v17 = vpop.f32.mrf.mxu1  ;;  %v2860_v2 = vadd.f32 %v6569_v63, %v2596_v59  ;;  %v6574_v60 = vld [vmem:[#allocation29_spill] sm:$0xff]  ;;  %v6575_v46 = vld [vmem:[#allocation24_spill] sm:$0xff]  ;;  %v6579_v59 = vld [vmem:[#allocation19_spill] sm:$0xff] }
 0x209   : > { %3575 = vst [vmem:[%s6235_s26 + $0x70] sm:$0xff] %v3543_v55  ;;  %v3541_v29 = vmax.f32 %v3509_v6, 0.0  ;;  %v3446_v10 = vadd.f32 %v6212_v8, %v3407_v52  ;;  %v3412_v28 = vadd.f32 %v4639_v22, %v3142_v36  ;;  %v3140_v34 = vadd.f32 %v3061_v17, %v2854_v57  ;;  %v3334_v58 = vpop.f32.mrf.mxu0  ;;  %v3482_v36 = vld [vmem:[%s6207_s21 + $0x88] sm:$0xff]  ;;  %v6583_v63 = vld [vmem:[#allocation28_spill] sm:$0xff] }
 0x20a   : > { %v3512_v56 = vadd.f32 %v3480_v38, %v3448_v50  ;;  %v4592_v19 = vpop.f32.mrf.mxu1  ;;  %v2595_v18 = vadd.f32 %v6574_v60, %v6573_v21  ;;  %v2861_v16 = vadd.f32 %v6575_v46, %v2597_v5  ;;  %v6580_v50 = vld [vmem:[#allocation33_spill] sm:$0xff]  ;;  %v6585_v5 = vld [vmem:[#allocation2_spill] sm:$0xff]  ;;  %v6587_v21 = vld [vmem:[#allocation32_spill] sm:$0xff] }
 0x20b   : > { %3573 = vst [vmem:[%s6235_s26 + $0x60] sm:$0xff] %v3541_v29  ;;  %v3510_v15 = vadd.f32 %v3478_v39, %v3446_v10  ;;  %v3451_v54 = vadd.f32 %v6212_v8, %v3412_v28  ;;  %v3410_v24 = vadd.f32 %v3331_v48, %v3140_v34  ;;  %v3143_v45 = vadd.f32 %v4592_v19, %v2857_v25  ;;  %v4643_v26 = vpop.f32.mrf.mxu0  ;;  %v3487_v29 = vld [vmem:[%s6207_s21 + $0xb0] sm:$0xff] }
 0x20c   : > { %v3544_v33 = vmax.f32 %v3512_v56, 0.0  ;;  %v3064_v35 = vpop.f32.mrf.mxu1  ;;  %v2859_v42 = vadd.f32 %v6576_v27, %v2595_v18  ;;  %v2598_v39 = vadd.f32 %v6580_v50, %v6579_v59  ;;  %v6582_v56 = vld [vmem:[#allocation35_spill] sm:$0xff]  ;;  %v6588_v18 = vld [vmem:[#allocation12_spill] sm:$0xff]  ;;  %v6593_v59 = vld [vmem:[#allocation41_spill] sm:$0xff] }
 0x20d   : > { %v3542_v44 = vmax.f32 %v3510_v15, 0.0  ;;  %v3515_v41 = vadd.f32 %v3483_v37, %v3451_v54  ;;  %v3449_v9 = vadd.f32 %v6212_v8, %v3410_v24  ;;  %v3413_v22 = vadd.f32 %v4640_v31, %v3143_v45  ;;  %v3347_v47 = vpop.f32.mrf.mxu0  ;;  %v3485_v15 = vld [vmem:[%s6207_s21 + $0xa0] sm:$0xff] }
 0x20e   : > { %3576 = vst [vmem:[%s6235_s26 + $0x78] sm:$0xff] %v3544_v33  ;;  %v3141_v43 = vadd.f32 %v3064_v35, %v2855_v1  ;;  %v4595_v51 = vpop.f32.mrf.mxu1  ;;  %v2601_v37 = vadd.f32 %v6582_v56, %v6581_v40  ;;  %v2862_v0 = vadd.f32 %v6584_v30, %v2598_v39  ;;  %v6586_v33 = vld [vmem:[#allocation37_spill] sm:$0xff]  ;;  %v6594_v39 = vld [vmem:[#allocation15_spill] sm:$0xff]  ;;  %v6596_v56 = vld [vmem:[#allocation18_spill] sm:$0xff] }
 0x20f   : > { %3574 = vst [vmem:[%s6235_s26 + $0x68] sm:$0xff] %v3542_v44  ;;  %v3547_v23 = vmax.f32 %v3515_v41, 0.0  ;;  %v3513_v7 = vadd.f32 %v3481_v61, %v3449_v9  ;;  %v3452_v48 = vadd.f32 %v6212_v8, %v3413_v22  ;;  %v3146_v20 = vadd.f32 %v4595_v51, %v2860_v2  ;;  %v4644_v57 = vpop.f32.mrf.mxu0  ;;  %v3488_v44 = vld [vmem:[%s6207_s21 + $0xb8] sm:$0xff]  ;;  %v3486_v51 = vld [vmem:[%s6207_s21 + $0xa8] sm:$0xff] }
 0x210   : > { %v3411_v55 = vadd.f32 %v3334_v58, %v3141_v43  ;;  %v3077_v6 = vpop.f32.mrf.mxu1  ;;  %v2864_v2 = vadd.f32 %v6583_v63, %v2600_v49  ;;  %v2599_v61 = vadd.f32 %v6586_v33, %v6585_v5  ;;  %v2865_v60 = vadd.f32 %v6587_v21, %v2601_v37  ;;  %v6592_v49 = vld [vmem:[#allocation14_spill] sm:$0xff]  ;;  %v6597_v37 = vld [vmem:[#allocation44_spill] sm:$0xff] }
 0x211   : > { %3579 = vst [vmem:[%s6235_s26 + $0x90] sm:$0xff] %v3547_v23  ;;  %v3545_v38 = vmax.f32 %v3513_v7, 0.0  ;;  %v3516_v52 = vadd.f32 %v3484_v32, %v3452_v48  ;;  %v3416_v31 = vadd.f32 %v4643_v26, %v3146_v20  ;;  %v3144_v11 = vadd.f32 %v3077_v6, %v2858_v14  ;;  %v3350_v25 = vpop.f32.mrf.mxu0  ;;  %v6589_v32 = vld [vmem:[#allocation39_spill] sm:$0xff] }
 0x212   : > { %v3450_v17 = vadd.f32 %v6212_v8, %v3411_v55  ;;  %v4596_v10 = vpop.f32.mrf.mxu1  ;;  %v2604_v43 = vadd.f32 %v6589_v32, %v6588_v18  ;;  %v6590_v55 = vld [vmem:[#allocation34_spill] sm:$0xff]  ;;  %v2602_v50 = vadd.f32 %v6593_v59, %v6592_v49 }
 0x213   : > { %3577 = vst [vmem:[%s6235_s26 + $0x80] sm:$0xff] %v3545_v38  ;;  %v3548_v28 = vmax.f32 %v3516_v52, 0.0  ;;  %v3455_v34 = vadd.f32 %v6212_v8, %v3416_v31  ;;  %v3414_v58 = vadd.f32 %v3347_v47, %v3144_v11  ;;  %v3147_v12 = vadd.f32 %v4596_v10, %v2861_v16  ;;  %v4647_v4 = vpop.f32.mrf.mxu0  ;;  %v3491_v11 = vld [vmem:[%s6207_s21 + $0xd0] sm:$0xff] }
 0x214   : > { %v3514_v19 = vadd.f32 %v3482_v36, %v3450_v17  ;;  %v3080_v54 = vpop.f32.mrf.mxu1  ;;  %v2863_v6 = vadd.f32 %v6590_v55, %v2599_v61  ;;  %v2868_v3 = vadd.f32 %v6591_v62, %v2604_v43  ;;  %v6595_v17 = vld [vmem:[#allocation43_spill] sm:$0xff] }
 0x215   : > { %3580 = vst [vmem:[%s6235_s26 + $0x98] sm:$0xff] %v3548_v28  ;;  %v3519_v24 = vadd.f32 %v3487_v29, %v3455_v34  ;;  %v3453_v45 = vadd.f32 %v6212_v8, %v3414_v58  ;;  %v3417_v26 = vadd.f32 %v4644_v57, %v3147_v12  ;;  %v3145_v53 = vadd.f32 %v3080_v54, %v2859_v42  ;;  %v3363_v1 = vpop.f32.mrf.mxu0  ;;  %v3489_v28 = vld [vmem:[%s6207_s21 + $0xc0] sm:$0xff]  ;;  %v3492_v54 = vld [vmem:[%s6207_s21 + $0xd8] sm:$0xff]  ;;  %v3490_v61 = vld [vmem:[%s6207_s21 + $0xc8] sm:$0xff] }
 0x216   : > { %v3546_v35 = vmax.f32 %v3514_v19, 0.0  ;;  %v4599_v41 = vpop.f32.mrf.mxu1  ;;  %v2605_v29 = vadd.f32 %v6595_v17, %v6594_v39  ;;  %v2603_v19 = vadd.f32 %v6597_v37, %v6596_v56 }
 0x217   : > { %v3551_v9 = vmax.f32 %v3519_v24, 0.0  ;;  %v3517_v22 = vadd.f32 %v3485_v15, %v3453_v45  ;;  %v3456_v47 = vadd.f32 %v6212_v8, %v3417_v26  ;;  %v3415_v13 = vadd.f32 %v3350_v25, %v3145_v53  ;;  %v4648_v14 = vpop.f32.mrf.mxu0 }
 0x218   : > { %3578 = vst [vmem:[%s6235_s26 + $0x88] sm:$0xff] %v3546_v35  ;;  %v3150_v23 = vadd.f32 %v4599_v41, %v2864_v2  ;;  %v3093_v7 = vpop.f32.mrf.mxu1  ;;  %v6598_v2 = vld [vmem:[#allocation38_spill] sm:$0xff] }
 0x219   : > { %3583 = vst [vmem:[%s6235_s26 + $0xb0] sm:$0xff] %v3551_v9  ;;  %v3549_v48 = vmax.f32 %v3517_v22, 0.0  ;;  %v3520_v20 = vadd.f32 %v3488_v44, %v3456_v47  ;;  %v3454_v57 = vadd.f32 %v6212_v8, %v3415_v13  ;;  %v3148_v46 = vadd.f32 %v3093_v7, %v2862_v0  ;;  %v3366_v16 = vpop.f32.mrf.mxu0  ;;  %v6599_v0 = vld [vmem:[#allocation40_spill] sm:$0xff]  ;;  %v6600_v47 = vld [vmem:[#allocation42_spill] sm:$0xff] }
 0x21a   : > { %v3420_v38 = vadd.f32 %v4647_v4, %v3150_v23  ;;  %v4600_v52 = vpop.f32.mrf.mxu1  ;;  %v2866_v30 = vadd.f32 %v6598_v2, %v2602_v50  ;;  %v2869_v5 = vadd.f32 %v6599_v0, %v2605_v29  ;;  %v2867_v13 = vadd.f32 %v6600_v47, %v2603_v19 }
 0x21b   : > { %3581 = vst [vmem:[%s6235_s26 + $0xa0] sm:$0xff] %v3549_v48  ;;  %v3552_v36 = vmax.f32 %v3520_v20, 0.0  ;;  %v3518_v31 = vadd.f32 %v3486_v51, %v3454_v57  ;;  %v3418_v25 = vadd.f32 %v3363_v1, %v3148_v46  ;;  %v3151_v27 = vadd.f32 %v4600_v52, %v2865_v60  ;;  %v4651_v42 = vpop.f32.mrf.mxu0  ;;  %v3493_v46 = vld [vmem:[%s6207_s21 + $0xe0] sm:$0xff] }
 0x21c   : > { %v3459_v10 = vadd.f32 %v6212_v8, %v3420_v38  ;;  %v3096_v34 = vpop.f32.mrf.mxu1  ;;  %v3496_v38 = vld [vmem:[%s6207_s21 + $0xf8] sm:$0xff] }
 0x21d   : > { %3584 = vst [vmem:[%s6235_s26 + $0xb8] sm:$0xff] %v3552_v36  ;;  %v3550_v58 = vmax.f32 %v3518_v31, 0.0  ;;  %v3457_v12 = vadd.f32 %v6212_v8, %v3418_v25  ;;  %v3421_v4 = vadd.f32 %v4648_v14, %v3151_v27  ;;  %v3149_v40 = vadd.f32 %v3096_v34, %v2863_v6  ;;  %v3379_v45 = vpop.f32.mrf.mxu0  ;;  %v3495_v14 = vld [vmem:[%s6207_s21 + $0xf0] sm:$0xff]  ;;  %v3494_v27 = vld [vmem:[%s6207_s21 + $0xe8] sm:$0xff] }
 0x21e   : > { %v3523_v15 = vadd.f32 %v3491_v11, %v3459_v10  ;;  %v4603_v24 = vpop.f32.mrf.mxu1 }
 0x21f   : > { %3582 = vst [vmem:[%s6235_s26 + $0xa8] sm:$0xff] %v3550_v58  ;;  %v3521_v26 = vadd.f32 %v3489_v28, %v3457_v12  ;;  %v3460_v53 = vadd.f32 %v6212_v8, %v3421_v4  ;;  %v3419_v1 = vadd.f32 %v3366_v16, %v3149_v40  ;;  %v3154_v63 = vadd.f32 %v4603_v24, %v2868_v3  ;;  %v4652_v18 = vpop.f32.mrf.mxu0 }
 0x220   : > { %v3555_v33 = vmax.f32 %v3523_v15, 0.0  ;;  %v3109_v35 = vpop.f32.mrf.mxu1 }
 0x221   : > { %v3553_v44 = vmax.f32 %v3521_v26, 0.0  ;;  %v3524_v41 = vadd.f32 %v3492_v54, %v3460_v53  ;;  %v3458_v9 = vadd.f32 %v6212_v8, %v3419_v1  ;;  %v3424_v22 = vadd.f32 %v4651_v42, %v3154_v63  ;;  %v3382_v52 = vpop.f32.mrf.mxu0 }
 0x222   : > { %3587 = vst [vmem:[%s6235_s26 + $0xd0] sm:$0xff] %v3555_v33  ;;  %v3152_v21 = vadd.f32 %v3109_v35, %v2866_v30  ;;  %v4604_v60 = vpop.f32.mrf.mxu1 }
 0x223   : > { %3585 = vst [vmem:[%s6235_s26 + $0xc0] sm:$0xff] %v3553_v44  ;;  %v3556_v32 = vmax.f32 %v3524_v41, 0.0  ;;  %v3522_v43 = vadd.f32 %v3490_v61, %v3458_v9  ;;  %v3463_v51 = vadd.f32 %v6212_v8, %v3424_v22  ;;  %v3155_v23 = vadd.f32 %v4604_v60, %v2869_v5 }
 0x224   : > { %v3422_v7 = vadd.f32 %v3379_v45, %v3152_v21  ;;  %v3112_v48 = vpop.f32.mrf.mxu1 }
 0x225   : > { %3588 = vst [vmem:[%s6235_s26 + $0xd8] sm:$0xff] %v3556_v32  ;;  %v3554_v20 = vmax.f32 %v3522_v43, 0.0  ;;  %v3527_v57 = vadd.f32 %v3495_v14, %v3463_v51  ;;  %v3425_v16 = vadd.f32 %v4652_v18, %v3155_v23  ;;  %v3153_v55 = vadd.f32 %v3112_v48, %v2867_v13 }
 0x226   : > { %v3461_v6 = vadd.f32 %v6212_v8, %v3422_v7 }
 0x227   : > { %3586 = vst [vmem:[%s6235_s26 + $0xc8] sm:$0xff] %v3554_v20  ;;  %v3559_v36 = vmax.f32 %v3527_v57, 0.0  ;;  %v3464_v31 = vadd.f32 %v6212_v8, %v3425_v16  ;;  %v3423_v11 = vadd.f32 %v3382_v52, %v3153_v55 }
 0x228   : > { %v3525_v25 = vadd.f32 %v3493_v46, %v3461_v6 }
 0x229   : > { %3591 = vst [vmem:[%s6235_s26 + $0xf0] sm:$0xff] %v3559_v36  ;;  %v3528_v42 = vadd.f32 %v3496_v38, %v3464_v31  ;;  %v3462_v62 = vadd.f32 %v6212_v8, %v3423_v11 }
 0x22a   : > { %v3557_v3 = vmax.f32 %v3525_v25, 0.0 }
 0x22b   : > { %v3560_v49 = vmax.f32 %v3528_v42, 0.0  ;;  %v3526_v59 = vadd.f32 %v3494_v27, %v3462_v62 }
 0x22c   : > { %3589 = vst [vmem:[%s6235_s26 + $0xe0] sm:$0xff] %v3557_v3 }
 0x22d   : > { %3592 = vst [vmem:[%s6235_s26 + $0xf8] sm:$0xff] %v3560_v49  ;;  %v3558_v50 = vmax.f32 %v3526_v59, 0.0 }
 0x22f   : > { %3590 = vst [vmem:[%s6235_s26 + $0xe8] sm:$0xff] %v3558_v50 }
 0x230 PF: > { %s14_s17 = sadd.s32 1, %s4815_s17   ;;  %s6601_s15 = smov %s4811_s16 }
 0x231   : > { %p11_p5 = scmp.ge.s32.totalorder %s14_s17, 4   ;;  %s6602_s16 = smov %s6604_s18 }
 0x233   :  { %13 = sbr.rel (!%p11_p5) target bundleno = 2 (0x2), region = 83 }

// kernel: _lambda_.2
= control target key start
LH: loop header
LB: loop body
LE: loop exit
PB: predicated region body
PF: predicated region fallthrough
CT: control target
= control target key end

     0   :  { %s4981_s12 = smov 0   ;;  %s4983_s13 = smov 0   ;;  %s6452_s0 = inlined_call_operand.vmem [shape: bf16[2,18,18,128], index: 0, kind: input, shape index: {}]   ;;  %s6453_s1 = inlined_call_operand.vmem [shape: bf16[9,128,128], index: 1, kind: input, shape index: {}]   ;;  %s6454_s2 = inlined_call_operand.vmem [shape: f32[1,128], index: 2, kind: input, shape index: {}]   ;;  %s6455_s3 = inlined_call_operand.vmem [shape: bf16[2,16,16,128], index: 3, kind: output, shape index: {}]  }
   0x1   :  { %s4985_s14 = smov 0  }
   0x2 LB: > { %s25_s15 = sadd.s32 1, %s4955_s13  ;;  %p3710_p0 = scmp.ge.s32.totalorder %s4959_s14, 1  ;;  %s4959_s14 = sphi %s4985_s14, %s13_s14   ;;  %s4955_s13 = sphi %s4983_s13, %s6585_s13   ;;  %s4951_s12 = sphi %s4981_s12, %s6584_s12  }
   0x3   : > { %p27_p1 = scmp.ge.s32.totalorder %s25_s15, 2  ;;  %p168_p2 = scmp.lt.s32.totalorder %s4959_s14, 3 }
   0x5   : > { %s6587_s15 = smov (%p27_p1, %s25_s15), 0  ;;  %p169_p3 = pnand %p3710_p0, %p168_p2 }
   0x7   : > { %172 = sbr.rel (%p169_p3) target bundleno = 560 (0x230), region = 32 }
   0xc   : > { %v4838_v0 = vld [vmem:[%s6453_s1 + $0x78] sm:$0xff]   ;;  %p202_p4 = scmp.lt.s32.totalorder %s4951_s12, 1  ;;  %v4839_v1 = vld [vmem:[%s6453_s1 + $0x70] sm:$0xff]   ;;  %v4840_v2 = vld [vmem:[%s6453_s1 + $0x68] sm:$0xff]   ;;  %vm293_vm0 = vsmask.f32 3328 }
   0xd   : > { %4365 = vmatprep.subr.bf16.mxu0 %v4838_v0  ;;  %4797 = vmatprep.subr.bf16.mxu1 %v4838_v0  ;;  %v4841_v3 = vld [vmem:[%s6453_s1 + $0x60] sm:$0xff]   ;;  %vm294_vm1 = vsmask.f32 7440  ;;  %v4842_v9 = vld [vmem:[%s6453_s1 + $0x58] sm:$0xff]   ;;  %v4843_v28 = vld [vmem:[%s6453_s1 + $0x50] sm:$0xff]   ;;  %v6492_v29 = vmov 0 }
   0xe   : > { %s6589_s12 = smov (!%p202_p4, %s4951_s12), 1  ;;  %4366 = vmatpush3.bf16.msra.mxu0 %v4838_v0  ;;  %4805 = vmatpush3.bf16.msra.mxu1 %v4838_v0  ;;  %vm5048_vm2 = vmor %vm293_vm0, %vm294_vm1  ;;  %v4844_v59 = vld [vmem:[%s6453_s1 + $0x48] sm:$0xff]   ;;  %vm1291_vm3 = vcmask 1042432   ;;  %vm1292_vm4 = vcmask 1046532  }
   0xf   : > { %4367 = vmatprep.subr.bf16.mxu0 %v4839_v1  ;;  %4798 = vmatprep.subr.bf16.mxu1 %v4839_v1  ;;  %s4813_s22 = smul.u32 216, %s6589_s12  ;;  %v6493_v29 = vsel %vm5048_vm2, 4294967295, %v6492_v29  ;;  %vm5394_vm5 = vmor %vm1291_vm3, %vm1292_vm4  ;;  %s4021_s6 = sshll.u32 %s6589_s12, 7 }
  0x10   : > { %6494 = vst [vmem:[#allocation2_spill] sm:$0xff] %v6493_v29  ;;  %s6349_s8 = scalar_lea.vmem %s6455_s3, %s4021_s6 }
  0x11   : > { %s5014_s25 = scalar_lea.vmem %s6452_s0, %s4813_s22 }
  0x12   : > { %4368 = vmatpush3.bf16.msra.mxu0 %v4839_v1  ;;  %4806 = vmatpush3.bf16.msra.mxu1 %v4839_v1  ;;  %v5020_v4 = vld [vmem:[%s5014_s25] sm:$0xf]  ;;  %v5023_v5 = vld [vmem:[%s5014_s25 + $0x4] sm:$0xf]  ;;  %v5026_v6 = vld [vmem:[%s5014_s25 + $0x8] sm:$0x1] }
  0x13   : > { %4369 = vmatprep.subr.bf16.mxu0 %v4840_v2  ;;  %4799 = vmatprep.subr.bf16.mxu1 %v4840_v2  ;;  %v297_v7 = vshrl.u32 %v5020_v4, 16  ;;  %v300_v8 = vshll.u32 %v5020_v4, 16  ;;  %v306_v10 = vshll.u32 %v5023_v5, 16  ;;  %v310_v11 = vshrl.u32 %v5023_v5, 16  ;;  %v247_v14 = vld [vmem:[%s5014_s25 + $0x60] sm:$0xf] }
  0x14   : > { %v316_v12 = vshll.u32 %v5026_v6, 16  ;;  %v248_v17 = vld [vmem:[%s5014_s25 + $0x64] sm:$0xf]  ;;  %v249_v18 = vld [vmem:[%s5014_s25 + $0x68] sm:$0x1]  ;;  %v489_v22 = vshrl.u32 %v247_v14, 16 }
  0x15   : > { %v299_v15 = vrot.slane %v297_v7, 4  ;;  %v302_v16 = vrot.slane %v300_v8, 5  ;;  %v308_v19 = vrot.slane %v306_v10, 5  ;;  %v312_v20 = vrot.slane %v310_v11, 4  ;;  %v5041_v23 = vld [vmem:[%s5014_s25 + $0xc] sm:$0xf] }
  0x16   : > { %4370 = vmatpush3.bf16.msra.mxu0 %v4840_v2  ;;  %4807 = vmatpush3.bf16.msra.mxu1 %v4840_v2  ;;  %v318_v21 = vrot.slane %v316_v12, 5  ;;  %v492_v25 = vshll.u32 %v247_v14, 16  ;;  %v498_v26 = vshll.u32 %v248_v17, 16  ;;  %v502_v27 = vshrl.u32 %v248_v17, 16  ;;  %v5053_v33 = vld [vmem:[%s5014_s25 + $0x10] sm:$0xf] }
  0x17   : > { %4371 = vmatprep.subr.bf16.mxu0 %v4841_v3  ;;  %4800 = vmatprep.subr.bf16.mxu1 %v4841_v3  ;;  %v303_v24 = vor.u32 %v302_v16, %v299_v15  ;;  %v313_v30 = vor.u32 %v312_v20, %v308_v19  ;;  %v491_v31 = vrot.slane %v489_v22, 4  ;;  %v508_v32 = vshll.u32 %v249_v18, 16  ;;  %v5057_v39 = vld [vmem:[%s5014_s25 + $0x14] sm:$0x1]  ;;  %v250_v44 = vld [vmem:[%s5014_s25 + $0x6c] sm:$0xf] }
  0x18   : > { %v321_v34 = vshrl.u32 %v5041_v23, 16  ;;  %v494_v36 = vrot.slane %v492_v25, 5  ;;  %v500_v37 = vrot.slane %v498_v26, 5  ;;  %v504_v38 = vrot.slane %v502_v27, 4  ;;  %v251_v49 = vld [vmem:[%s5014_s25 + $0x70] sm:$0xf] }
  0x19   : > { %v304_v35 = vrot.slane %v303_v24, 4  ;;  %v314_v40 = vrot.slane %v313_v30, 4  ;;  %v510_v41 = vrot.slane %v508_v32, 5  ;;  %v324_v43 = vshll.u32 %v5041_v23, 16  ;;  %v252_v54 = vld [vmem:[%s5014_s25 + $0x74] sm:$0x1] }
  0x1a   : > { %4372 = vmatpush3.bf16.msra.mxu0 %v4841_v3  ;;  %4808 = vmatpush3.bf16.msra.mxu1 %v4841_v3  ;;  %v323_v42 = vrot.slane %v321_v34, 4  ;;  %v495_v46 = vor.u32 %v494_v36, %v491_v31  ;;  %v505_v47 = vor.u32 %v504_v38, %v500_v37  ;;  %v330_v48 = vshll.u32 %v5053_v33, 16  ;;  %v5081_v16 = vld [vmem:[%s5014_s25 + $0x18] sm:$0xf]  ;;  %v4845_v17 = vld [vmem:[%s6453_s1 + $0x40] sm:$0xff]  }
  0x1b   : > { %4373 = vmatprep.subr.bf16.mxu0 %v4842_v9  ;;  %4801 = vmatprep.subr.bf16.mxu1 %v4842_v9  ;;  %v309_v45 = vsel %vm5048_vm2, %v304_v35, %v308_v19  ;;  %v319_v50 = vsel %vm5048_vm2, %v314_v40, %v318_v21  ;;  %v326_v51 = vrot.slane %v324_v43, 5  ;;  %v334_v52 = vshrl.u32 %v5053_v33, 16  ;;  %v5089_v21 = vld [vmem:[%s5014_s25 + $0x1c] sm:$0xf]  ;;  %v5097_v27 = vld [vmem:[%s5014_s25 + $0x20] sm:$0x1] }
  0x1c   : > { %v340_v53 = vshll.u32 %v5057_v39, 16  ;;  %v3730_v55 = vcombine.low %v309_v45, %v319_v50  ;;  %v496_v56 = vrot.slane %v495_v46, 4  ;;  %v506_v57 = vrot.slane %v505_v47, 4  ;;  %v253_v35 = vld [vmem:[%s5014_s25 + $0x78] sm:$0xf] }
  0x1d   : > { %v332_v58 = vrot.slane %v330_v48, 5  ;;  %v327_v60 = vor.u32 %v326_v51, %v323_v42  ;;  %v336_v61 = vrot.slane %v334_v52, 4  ;;  %v513_v2 = vshrl.u32 %v250_v44, 16  ;;  %v4846_v42 = vld [vmem:[%s6453_s1 + $0x38] sm:$0xff]  }
  0x1e   : > { %4374 = vmatpush3.bf16.msra.mxu0 %v4842_v9  ;;  %4809 = vmatpush3.bf16.msra.mxu1 %v4842_v9  ;;  %v342_v62 = vrot.slane %v340_v53, 5  ;;  %v501_v0 = vsel %vm5048_vm2, %v496_v56, %v500_v37  ;;  %v511_v1 = vsel %vm5048_vm2, %v506_v57, %v510_v41  ;;  %v516_v3 = vshll.u32 %v250_v44, 16  ;;  %v5109_v41 = vld [vmem:[%s5014_s25 + $0x7c] sm:$0xf]  ;;  %v5123_v57 = vld [vmem:[%s5014_s25 + $0x24] sm:$0xf] }
  0x1f   : > { %4375 = vmatprep.subr.bf16.mxu0 %v4843_v28  ;;  %4802 = vmatprep.subr.bf16.mxu1 %v4843_v28  ;;  %v5078_v7 = vcombine.low %v501_v0, %v511_v1  ;;  %v328_v8 = vrot.slane %v327_v60, 4  ;;  %v337_v9 = vor.u32 %v336_v61, %v332_v58  ;;  %v522_v10 = vshll.u32 %v251_v49, 16  ;;  %v4847_v43 = vld [vmem:[%s6453_s1 + $0xb8] sm:$0xff]   ;;  %v5132_v0 = vld [vmem:[%s5014_s25 + $0x28] sm:$0xf] }
  0x20   : > { %4381 = vmatprep.mubr.bf16.mxu0 %v3730_v55  ;;  %v515_v11 = vrot.slane %v513_v2, 4  ;;  %v518_v12 = vrot.slane %v516_v3, 5  ;;  %v526_v14 = vshrl.u32 %v251_v49, 16  ;;  %v532_v15 = vshll.u32 %v252_v54, 16  ;;  %v255_v55 = vld [vmem:[%s5014_s25 + $0x80] sm:$0x1] }
  0x21   : > { %6495 = vst [vmem:[#allocation3_spill] sm:$0xff] %v5078_v7  ;;  %v333_v18 = vsel %vm5048_vm2, %v328_v8, %v332_v58  ;;  %v338_v19 = vrot.slane %v337_v9, 4  ;;  %v524_v20 = vrot.slane %v522_v10, 5  ;;  %v5093_v22 = vcombine.low %v5041_v23, %v5053_v33  ;;  %4397 = vmatprep.mubr.bf16.mxu1 %v5078_v7  ;;  %v4849_v2 = vld [vmem:[%s6453_s1 + $0xb0] sm:$0xff]   ;;  %v5140_v10 = vld [vmem:[%s5014_s25 + $0x2c] sm:$0x1] }
  0x22   : > { %4376 = vmatpush3.bf16.msra.mxu0 %v4843_v28  ;;  %4810 = vmatpush3.bf16.msra.mxu1 %v4843_v28  ;;  %v519_v24 = vor.u32 %v518_v12, %v515_v11  ;;  %v528_v25 = vrot.slane %v526_v14, 4  ;;  %v534_v26 = vrot.slane %v532_v15, 5  ;;  %v345_v28 = vshrl.u32 %v5081_v16, 16  ;;  %v5143_v11 = vld [vmem:[%s5014_s25 + $0x84] sm:$0xf] }
  0x23   : > { %4377 = vmatprep.subr.bf16.mxu0 %v4844_v59  ;;  %4803 = vmatprep.subr.bf16.mxu1 %v4844_v59  ;;  %v343_v30 = vsel %vm5048_vm2, %v338_v19, %v342_v62  ;;  %v348_v31 = vshll.u32 %v5081_v16, 16  ;;  %v354_v32 = vshll.u32 %v5089_v21, 16  ;;  %v358_v34 = vshrl.u32 %v5089_v21, 16 }
  0x24   : > { %v5106_v36 = vcombine.low %v333_v18, %v343_v30  ;;  %v520_v37 = vrot.slane %v519_v24, 4  ;;  %v529_v38 = vor.u32 %v528_v25, %v524_v20  ;;  %v347_v40 = vrot.slane %v345_v28, 4  ;;  %v5147_v18 = vld [vmem:[%s5014_s25 + $0x88] sm:$0xf] }
  0x25   : > { %v350_v44 = vrot.slane %v348_v31, 5  ;;  %v356_v45 = vrot.slane %v354_v32, 5  ;;  %v360_v46 = vrot.slane %v358_v34, 4  ;;  %v364_v47 = vshll.u32 %v5097_v27, 16  ;;  %v4851_v28 = vld [vmem:[%s6453_s1 + $0xa8] sm:$0xff]  }
  0x26   : > { %4378 = vmatpush3.bf16.msra.mxu0 %v4844_v59  ;;  %4811 = vmatpush3.bf16.msra.mxu1 %v4844_v59  ;;  %6496 = vst [vmem:[#allocation4_spill] sm:$0xff] %v5106_v36  ;;  %v525_v48 = vsel %vm5048_vm2, %v520_v37, %v524_v20  ;;  %v530_v49 = vrot.slane %v529_v38, 4  ;;  %v537_v50 = vshrl.u32 %v253_v35, 16  ;;  %v540_v51 = vshll.u32 %v253_v35, 16  ;;  %v4848_v59 = vld [vmem:[%s6453_s1 + $0x30] sm:$0xff]  }
  0x27   : > { %4379 = vmatprep.subr.bf16.mxu0 %v4845_v17  ;;  %4804 = vmatprep.subr.bf16.mxu1 %v4845_v17  ;;  %v351_v52 = vor.u32 %v350_v44, %v347_v40  ;;  %v361_v53 = vor.u32 %v360_v46, %v356_v45  ;;  %v366_v54 = vrot.slane %v364_v47, 5  ;;  %v546_v56 = vshll.u32 %v5109_v41, 16  ;;  %v5167_v44 = vld [vmem:[%s5014_s25 + $0x8c] sm:$0x1] }
  0x28   : > { %v535_v58 = vsel %vm5048_vm2, %v530_v49, %v534_v26  ;;  %v539_v60 = vrot.slane %v537_v50, 4  ;;  %v542_v61 = vrot.slane %v540_v51, 5  ;;  %v550_v62 = vshrl.u32 %v5109_v41, 16  ;;  %v4850_v26 = vld [vmem:[%s6453_s1 + $0x28] sm:$0xff]   ;;  %v5177_v51 = vld [vmem:[%s5014_s25 + $0x30] sm:$0xf] }
  0x29   : > { %v5134_v1 = vcombine.low %v525_v48, %v535_v58  ;;  %v352_v3 = vrot.slane %v351_v52, 4  ;;  %v362_v8 = vrot.slane %v361_v53, 4  ;;  %v548_v9 = vrot.slane %v546_v56, 5 }
  0x2a   : > { %4380 = vmatpush3.bf16.msra.mxu0 %v4845_v17  ;;  %4812 = vmatpush3.bf16.msra.mxu1 %v4845_v17  ;;  %v543_v12 = vor.u32 %v542_v61, %v539_v60  ;;  %v552_v14 = vrot.slane %v550_v62, 4  ;;  %v556_v15 = vshll.u32 %v255_v55, 16  ;;  %v369_v17 = vshrl.u32 %v5123_v57, 16  ;;  %v4853_v62 = vld [vmem:[%s6453_s1 + $0xa0] sm:$0xff]  }
  0x2b   : > { %6497 = vst [vmem:[#allocation5_spill] sm:$0xff] %v5134_v1  ;;  %4413 = vmatprep.subr.bf16.mxu1 %v4846_v42  ;;  %4461 = vmatprep.subr.bf16.mxu0 %v4847_v43  ;;  %v357_v19 = vsel %vm5048_vm2, %v352_v3, %v356_v45  ;;  %v367_v20 = vsel %vm5048_vm2, %v362_v8, %v366_v54  ;;  %v372_v24 = vshll.u32 %v5123_v57, 16  ;;  %v378_v25 = vshll.u32 %v5132_v0, 16 }
  0x2c   : > { %v5163_v30 = vcombine.low %v357_v19, %v367_v20  ;;  %v544_v31 = vrot.slane %v543_v12, 4  ;;  %v553_v32 = vor.u32 %v552_v14, %v548_v9  ;;  %v558_v34 = vrot.slane %v556_v15, 5  ;;  %v5199_v19 = vld [vmem:[%s5014_s25 + $0x38] sm:$0x1] }
  0x2d   : > { %4382 = vmatmul.mubr.bf16.vlgmr.msra.gmra.mxu0 %v5106_v36  ;;  %4398 = vmatmul.mubr.bf16.vlgmr.msra.gmra.mxu1 %v5134_v1  ;;  %v371_v35 = vrot.slane %v369_v17, 4  ;;  %v374_v37 = vrot.slane %v372_v24, 5  ;;  %v380_v38 = vrot.slane %v378_v25, 5  ;;  %v382_v40 = vshrl.u32 %v5132_v0, 16  ;;  %v5345_v1 = vld [vmem:[%s5014_s25 + $0x58] sm:$0xf] }
  0x2e   : > { %4414 = vmatpush3.bf16.msra.mxu1 %v4846_v42  ;;  %4462 = vmatpush3.bf16.msra.mxu0 %v4847_v43  ;;  %6498 = vst [vmem:[#allocation6_spill] sm:$0xff] %v5163_v30  ;;  %v549_v42 = vsel %vm5048_vm2, %v544_v31, %v548_v9  ;;  %v554_v43 = vrot.slane %v553_v32, 4  ;;  %v388_v45 = vshll.u32 %v5140_v10, 16  ;;  %v561_v46 = vshrl.u32 %v5143_v11, 16 }
  0x2f   : > { %4415 = vmatprep.subr.bf16.mxu1 %v4848_v59  ;;  %4463 = vmatprep.subr.bf16.mxu0 %v4849_v2  ;;  %v375_v47 = vor.u32 %v374_v37, %v371_v35  ;;  %v384_v48 = vrot.slane %v382_v40, 4  ;;  %v564_v49 = vshll.u32 %v5143_v11, 16  ;;  %v570_v50 = vshll.u32 %v5147_v18, 16 }
  0x30   : > { %4385 = vmatprep.mubr.bf16.mxu0 %v5163_v30  ;;  %v559_v52 = vsel %vm5048_vm2, %v554_v43, %v558_v34  ;;  %v390_v53 = vrot.slane %v388_v45, 5  ;;  %v563_v54 = vrot.slane %v561_v46, 4  ;;  %v574_v55 = vshrl.u32 %v5147_v18, 16  ;;  %v5204_v34 = vld [vmem:[%s5014_s25 + $0x90] sm:$0xf] }
  0x31   : > { %v5182_v56 = vcombine.low %v549_v42, %v559_v52  ;;  %v376_v58 = vrot.slane %v375_v47, 4  ;;  %v385_v60 = vor.u32 %v384_v48, %v380_v38  ;;  %v566_v61 = vrot.slane %v564_v49, 5  ;;  %v5210_v42 = vld [vmem:[%s5014_s25 + $0x94] sm:$0xf]  ;;  %v5219_v47 = vld [vmem:[%s5014_s25 + $0x98] sm:$0x1] }
  0x32   : > { %4416 = vmatpush3.bf16.msra.mxu1 %v4848_v59  ;;  %4464 = vmatpush3.bf16.msra.mxu0 %v4849_v2  ;;  %v4852_v59 = vld [vmem:[%s6453_s1 + $0x20] sm:$0xff]   ;;  %v5191_v2 = vld [vmem:[%s5014_s25 + $0x34] sm:$0xf]  ;;  %v572_v3 = vrot.slane %v570_v50, 5  ;;  %v576_v8 = vrot.slane %v574_v55, 4  ;;  %v580_v9 = vshll.u32 %v5167_v44, 16 }
  0x33   : > { %6499 = vst [vmem:[#allocation7_spill] sm:$0xff] %v5182_v56  ;;  %4417 = vmatprep.subr.bf16.mxu1 %v4850_v26  ;;  %4465 = vmatprep.subr.bf16.mxu0 %v4851_v28  ;;  %v393_v12 = vshrl.u32 %v5177_v51, 16  ;;  %v381_v14 = vsel %vm5048_vm2, %v376_v58, %v380_v38  ;;  %v386_v15 = vrot.slane %v385_v60, 4  ;;  %v567_v17 = vor.u32 %v566_v61, %v563_v54  ;;  %v4855_v48 = vld [vmem:[%s6453_s1 + $0x98] sm:$0xff]   ;;  %v5231_v55 = vld [vmem:[%s5014_s25 + $0x40] sm:$0xf] }
  0x34   : > { %4401 = vmatprep.mubr.bf16.mxu1 %v5182_v56  ;;  %v396_v20 = vshll.u32 %v5177_v51, 16  ;;  %v577_v24 = vor.u32 %v576_v8, %v572_v3  ;;  %v582_v25 = vrot.slane %v580_v9, 5  ;;  %v402_v32 = vshll.u32 %v5191_v2, 16  ;;  %v5228_v54 = vld [vmem:[%s5014_s25 + $0x3c] sm:$0xf]  ;;  %v4856_v58 = vld [vmem:[%s6453_s1 + $0x10] sm:$0xff]  }
  0x35   : > { %v395_v31 = vrot.slane %v393_v12, 4  ;;  %v391_v35 = vsel %vm5048_vm2, %v386_v15, %v390_v53  ;;  %v568_v37 = vrot.slane %v567_v17, 4  ;;  %v406_v40 = vshrl.u32 %v5191_v2, 16  ;;  %v4857_v9 = vld [vmem:[%s6453_s1 + $0x90] sm:$0xff]  }
  0x36   : > { %4418 = vmatpush3.bf16.msra.mxu1 %v4850_v26  ;;  %4466 = vmatpush3.bf16.msra.mxu0 %v4851_v28  ;;  %v398_v38 = vrot.slane %v396_v20, 5  ;;  %v4854_v26 = vld [vmem:[%s6453_s1 + $0x18] sm:$0xff]   ;;  %v5215_v28 = vcombine.low %v381_v14, %v391_v35  ;;  %v578_v43 = vrot.slane %v577_v24, 4  ;;  %v404_v45 = vrot.slane %v402_v32, 5 }
  0x37   : > { %4419 = vmatprep.subr.bf16.mxu1 %v4852_v59  ;;  %4467 = vmatprep.subr.bf16.mxu0 %v4853_v62  ;;  %v412_v46 = vshll.u32 %v5199_v19, 16  ;;  %v573_v49 = vsel %vm5048_vm2, %v568_v37, %v572_v3  ;;  %v408_v52 = vrot.slane %v406_v40, 4  ;;  %v585_v53 = vshrl.u32 %v5204_v34, 16  ;;  %v5252_v32 = vld [vmem:[%s5014_s25 + $0x9c] sm:$0xf] }
  0x38   : > { %6500 = vst [vmem:[#allocation8_spill] sm:$0xff] %v5215_v28  ;;  %v399_v50 = vor.u32 %v398_v38, %v395_v31  ;;  %4386 = vmatmul.mubr.bf16.gmra.mxu0 %v5215_v28  ;;  %v583_v60 = vsel %vm5048_vm2, %v578_v43, %v582_v25  ;;  %v588_v3 = vshll.u32 %v5204_v34, 16  ;;  %v594_v8 = vshll.u32 %v5210_v42, 16  ;;  %v5249_v31 = vld [vmem:[%s5014_s25 + $0x44] sm:$0x1] }
  0x39   : > { %v414_v61 = vrot.slane %v412_v46, 5  ;;  %v5244_v12 = vcombine.low %v573_v49, %v583_v60  ;;  %v409_v15 = vor.u32 %v408_v52, %v404_v45  ;;  %v587_v17 = vrot.slane %v585_v53, 4  ;;  %v5260_v40 = vld [vmem:[%s5014_s25 + $0xa0] sm:$0xf] }
  0x3a   : > { %4420 = vmatpush3.bf16.msra.mxu1 %v4852_v59  ;;  %4468 = vmatpush3.bf16.msra.mxu0 %v4853_v62  ;;  %v400_v14 = vrot.slane %v399_v50, 4  ;;  %v590_v20 = vrot.slane %v588_v3, 5  ;;  %v596_v59 = vrot.slane %v594_v8, 5  ;;  %v598_v24 = vshrl.u32 %v5210_v42, 16  ;;  %v4858_v3 = vld [vmem:[%s6453_s1 + $0x8] sm:$0xff]  }
  0x3b   : > { %6501 = vst [vmem:[#allocation9_spill] sm:$0xff] %v5244_v12  ;;  %4421 = vmatprep.subr.bf16.mxu1 %v4854_v26  ;;  %v604_v25 = vshll.u32 %v5219_v47, 16  ;;  %4469 = vmatprep.subr.bf16.mxu0 %v4855_v48  ;;  %v410_v35 = vrot.slane %v409_v15, 4  ;;  %v417_v37 = vshrl.u32 %v5228_v54, 16  ;;  %v420_v38 = vshll.u32 %v5228_v54, 16 }
  0x3c   : > { %4402 = vmatmul.mubr.bf16.gmra.mxu1 %v5244_v12  ;;  %v405_v62 = vsel %vm5048_vm2, %v400_v14, %v404_v45  ;;  %v591_v43 = vor.u32 %v590_v20, %v587_v17  ;;  %v600_v46 = vrot.slane %v598_v24, 4  ;;  %v426_v50 = vshll.u32 %v5231_v55, 16 }
  0x3d   : > { %v606_v49 = vrot.slane %v604_v25, 5  ;;  %v415_v52 = vsel %vm5048_vm2, %v410_v35, %v414_v61  ;;  %v419_v53 = vrot.slane %v417_v37, 4  ;;  %v422_v60 = vrot.slane %v420_v38, 5  ;;  %v5280_v35 = vld [vmem:[%s5014_s25 + $0xa4] sm:$0x1] }
  0x3e   : > { %4422 = vmatpush3.bf16.msra.mxu1 %v4854_v26  ;;  %v430_v45 = vshrl.u32 %v5231_v55, 16  ;;  %4470 = vmatpush3.bf16.msra.mxu0 %v4855_v48  ;;  %v5269_v8 = vcombine.low %v405_v62, %v415_v52  ;;  %v592_v14 = vrot.slane %v591_v43, 4  ;;  %v601_v15 = vor.u32 %v600_v46, %v596_v59  ;;  %v4859_v26 = vld [vmem:[%s6453_s1 + $0x88] sm:$0xff]  }
  0x3f   : > { %4423 = vmatprep.subr.bf16.mxu1 %v4856_v58  ;;  %v428_v17 = vrot.slane %v426_v50, 5  ;;  %4471 = vmatprep.subr.bf16.mxu0 %v4857_v9  ;;  %v423_v61 = vor.u32 %v422_v60, %v419_v53  ;;  %v436_v48 = vshll.u32 %v5249_v31, 16  ;;  %v609_v24 = vshrl.u32 %v5252_v32, 16  ;;  %v5285_v53 = vld [vmem:[%s5014_s25 + $0x48] sm:$0xf] }
  0x40   : > { %6502 = vst [vmem:[#allocation10_spill] sm:$0xff] %v5269_v8  ;;  %v432_v20 = vrot.slane %v430_v45, 4  ;;  %4389 = vmatprep.mubr.bf16.mxu0 %v5269_v8  ;;  %v597_v25 = vsel %vm5048_vm2, %v592_v14, %v596_v59  ;;  %v602_v62 = vrot.slane %v601_v15, 4  ;;  %v612_v37 = vshll.u32 %v5252_v32, 16  ;;  %v4860_v59 = vld [vmem:[%s6453_s1] sm:$0xff]  }
  0x41   : > { %v618_v38 = vshll.u32 %v5260_v40, 16  ;;  %v424_v43 = vrot.slane %v423_v61, 4  ;;  %v438_v50 = vrot.slane %v436_v48, 5  ;;  %v611_v52 = vrot.slane %v609_v24, 4  ;;  %v5294_v15 = vld [vmem:[%s5014_s25 + $0x4c] sm:$0xf] }
  0x42   : > { %4424 = vmatpush3.bf16.msra.mxu1 %v4856_v58  ;;  %v433_v46 = vor.u32 %v432_v20, %v428_v17  ;;  %4472 = vmatpush3.bf16.msra.mxu0 %v4857_v9  ;;  %v607_v60 = vsel %vm5048_vm2, %v602_v62, %v606_v49  ;;  %v614_v45 = vrot.slane %v612_v37, 5  ;;  %v622_v58 = vshrl.u32 %v5260_v40, 16  ;;  %v4861_v9 = vld [vmem:[%s6453_s1 + $0x80] sm:$0xff]   ;;  %v5305_v37 = vld [vmem:[%s5014_s25 + $0x50] sm:$0x1] }
  0x43   : > { %4425 = vmatprep.subr.bf16.mxu1 %v4858_v3  ;;  %v620_v14 = vrot.slane %v618_v38, 5  ;;  %4473 = vmatprep.subr.bf16.mxu0 %v4859_v26  ;;  %v5299_v61 = vcombine.low %v597_v25, %v607_v60  ;;  %v429_v20 = vsel %vm5048_vm2, %v424_v43, %v428_v17  ;;  %v628_v49 = vshll.u32 %v5280_v35, 16 }
  0x44   : > { %v434_v48 = vrot.slane %v433_v46, 4  ;;  %v615_v24 = vor.u32 %v614_v45, %v611_v52  ;;  %v624_v62 = vrot.slane %v622_v58, 4  ;;  %v441_v38 = vshrl.u32 %v5285_v53, 16  ;;  %v5315_v46 = vld [vmem:[%s5014_s25 + $0xa8] sm:$0xf]  ;;  %v5320_v52 = vld [vmem:[%s6453_s1 + $0xf8] sm:$0xff]  }
  0x45   : > { %6503 = vst [vmem:[#allocation11_spill] sm:$0xff] %v5299_v61  ;;  %v444_v63 = vshll.u32 %v5285_v53, 16  ;;  %4405 = vmatprep.mubr.bf16.mxu1 %v5299_v61  ;;  %v630_v60 = vrot.slane %v628_v49, 5  ;;  %v450_v17 = vshll.u32 %v5294_v15, 16  ;;  %v454_v43 = vshrl.u32 %v5294_v15, 16  ;;  %6504 = vst [vmem:[#allocation12_spill] sm:$0xff] %v5315_v46 }
  0x46   : > { %4426 = vmatpush3.bf16.msra.mxu1 %v4858_v3  ;;  %v439_v25 = vsel %vm5048_vm2, %v434_v48, %v438_v50  ;;  %4474 = vmatpush3.bf16.msra.mxu0 %v4859_v26  ;;  %v616_v45 = vrot.slane %v615_v24, 4  ;;  %v625_v58 = vor.u32 %v624_v62, %v620_v14  ;;  %v443_v50 = vrot.slane %v441_v38, 4  ;;  %v5325_v48 = vld [vmem:[%s5014_s25 + $0xac] sm:$0xf]  ;;  %v5330_v49 = vld [vmem:[%s6453_s1 + $0x138] sm:$0xff]  }
  0x47   : > { %v5322_v3 = vcombine.low %v429_v20, %v439_v25  ;;  %6506 = vst [vmem:[#allocation14_spill] sm:$0xff] %v5325_v48  ;;  %4427 = vmatprep.subr.bf16.mxu1 %v4860_v59  ;;  %4475 = vmatprep.subr.bf16.mxu0 %v4861_v9  ;;  %v446_v26 = vrot.slane %v444_v63, 5  ;;  %v452_v13 = vrot.slane %v450_v17, 5  ;;  %v456_v61 = vrot.slane %v454_v43, 4  ;;  %v5334_v20 = vld [vmem:[%s5014_s25 + $0xb0] sm:$0x1] }
  0x48   : > { %v460_v12 = vshll.u32 %v5305_v37, 16  ;;  %6507 = vst [vmem:[#allocation15_spill] sm:$0xff] %v5334_v20  ;;  %v5337_v24 = vld [vmem:[%s5014_s25 + $0x54] sm:$0xf]  ;;  %v621_v62 = vsel %vm5048_vm2, %v616_v45, %v620_v14  ;;  %v626_v38 = vrot.slane %v625_v58, 4  ;;  %v633_v25 = vshrl.u32 %v5315_v46, 16 }
  0x49   : > { %6505 = vst [vmem:[#allocation13_spill] sm:$0xff] %v5322_v3  ;;  %4390 = vmatmul.mubr.bf16.gmra.mxu0 %v5322_v3  ;;  %v636_v56 = vshll.u32 %v5315_v46, 16  ;;  %v447_v63 = vor.u32 %v446_v26, %v443_v50  ;;  %v457_v17 = vor.u32 %v456_v61, %v452_v13  ;;  %v642_v7 = vshll.u32 %v5325_v48, 16  ;;  %v5359_v3 = vld [vmem:[%s5014_s25 + $0xb4] sm:$0xf] }
  0x4a   : > { %4428 = vmatpush3.bf16.msra.mxu1 %v4860_v59  ;;  %v462_v43 = vrot.slane %v460_v12, 5  ;;  %4476 = vmatpush3.bf16.msra.mxu0 %v4861_v9  ;;  %v631_v14 = vsel %vm5048_vm2, %v626_v38, %v630_v60  ;;  %v635_v45 = vrot.slane %v633_v25, 4  ;;  %v646_v59 = vshrl.u32 %v5325_v48, 16  ;;  %v5356_v9 = vld [vmem:[%s5014_s25 + $0x5c] sm:$0x1] }
  0x4b   : > { %4509 = vmatprep.subr.bf16.mxu1 %v5320_v52  ;;  %v638_v58 = vrot.slane %v636_v56, 5  ;;  %4557 = vmatprep.subr.bf16.mxu0 %v5330_v49  ;;  %v5353_v61 = vcombine.low %v621_v62, %v631_v14  ;;  %v448_v12 = vrot.slane %v447_v63, 4  ;;  %v458_v50 = vrot.slane %v457_v17, 4  ;;  %v5364_v60 = vld [vmem:[%s5014_s25 + $0xb8] sm:$0xf] }
  0x4c   : > { %v644_v26 = vrot.slane %v642_v7, 5  ;;  %v648_v28 = vrot.slane %v646_v59, 4  ;;  %v652_v30 = vshll.u32 %v5334_v20, 16  ;;  %v465_v56 = vshrl.u32 %v5337_v24, 16  ;;  %v5377_v20 = vld [vmem:[%s5014_s25 + $0xbc] sm:$0x1] }
  0x4d   : > { %6508 = vst [vmem:[#allocation16_spill] sm:$0xff] %v5353_v61  ;;  %v639_v8 = vor.u32 %v638_v58, %v635_v45  ;;  %4406 = vmatmul.mubr.bf16.gmra.mxu1 %v5353_v61  ;;  %v453_v62 = vsel %vm5048_vm2, %v448_v12, %v452_v13  ;;  %v463_v7 = vsel %vm5048_vm2, %v458_v50, %v462_v43  ;;  %v468_v38 = vshll.u32 %v5337_v24, 16 }
  0x4e   : > { %v474_v25 = vshll.u32 %v5345_v1, 16  ;;  %v5373_v63 = vcombine.low %v453_v62, %v463_v7  ;;  %v649_v14 = vor.u32 %v648_v28, %v644_v26  ;;  %v654_v45 = vrot.slane %v652_v30, 5  ;;  %6510 = vst [vmem:[#allocation18_spill] sm:$0xff] %v5377_v20 }
  0x4f   : > { %v640_v17 = vrot.slane %v639_v8, 4  ;;  %v467_v58 = vrot.slane %v465_v56, 4  ;;  %v470_v59 = vrot.slane %v468_v38, 5  ;;  %v478_v61 = vshrl.u32 %v5345_v1, 16 }
  0x50   : > { %6509 = vst [vmem:[#allocation17_spill] sm:$0xff] %v5373_v63  ;;  %v476_v36 = vrot.slane %v474_v25, 5  ;;  %4393 = vmatprep.mubr.bf16.mxu0 %v5373_v63  ;;  %v650_v43 = vrot.slane %v649_v14, 4  ;;  %v484_v12 = vshll.u32 %v5356_v9, 16  ;;  %v657_v50 = vshrl.u32 %v5359_v3, 16 }
  0x51   : > { %v645_v13 = vsel %vm5048_vm2, %v640_v17, %v644_v26  ;;  %v471_v8 = vor.u32 %v470_v59, %v467_v58  ;;  %v480_v28 = vrot.slane %v478_v61, 4  ;;  %v660_v30 = vshll.u32 %v5359_v3, 16 }
  0x52   : > { %v666_v56 = vshll.u32 %v5364_v60, 16  ;;  %v655_v62 = vsel %vm5048_vm2, %v650_v43, %v654_v45  ;;  %v486_v7 = vrot.slane %v484_v12, 5  ;;  %v659_v38 = vrot.slane %v657_v50, 4 }
  0x53   : > { %v670_v25 = vshrl.u32 %v5364_v60, 16  ;;  %v5389_v63 = vcombine.low %v645_v13, %v655_v62  ;;  %v472_v26 = vrot.slane %v471_v8, 4  ;;  %v481_v17 = vor.u32 %v480_v28, %v476_v36 }
  0x54   : > { %v662_v14 = vrot.slane %v660_v30, 5  ;;  %v668_v46 = vrot.slane %v666_v56, 5  ;;  %v676_v61 = vshll.u32 %v5377_v20, 16  ;;  %v6512_v58 = vmov 0 }
  0x55   : > { %6511 = vst [vmem:[#allocation19_spill] sm:$0xff] %v5389_v63  ;;  %v672_v48 = vrot.slane %v670_v25, 4  ;;  %v6513_v58 = vsel %vm5394_vm5, 4294967295, %v6512_v58  ;;  %v3778_v45 = vrot.slane %v5020_v4, 9  ;;  %4409 = vmatprep.mubr.bf16.mxu1 %v5389_v63  ;;  %v477_v59 = vsel %vm5048_vm2, %v472_v26, %v476_v36 }
  0x56   : > { %6514 = vst [vmem:[#allocation20_spill] sm:$0xff] %v6513_v58  ;;  %v482_v13 = vrot.slane %v481_v17, 4  ;;  %v663_v43 = vor.u32 %v662_v14, %v659_v38  ;;  %v1296_v12 = vrot.slane %v5023_v5, 5  ;;  %v678_v8 = vrot.slane %v676_v61, 5 }
  0x57   : > { %v673_v50 = vor.u32 %v672_v48, %v668_v46  ;;  %v3779_v28 = vrot.slane %v5041_v23, 9  ;;  %v1303_v30 = vrot.slane %v5053_v33, 5  ;;  %v6515_v26 = vrot.slane %v5026_v6, 5 }
  0x58   : > { %v487_v56 = vsel %vm5048_vm2, %v482_v13, %v486_v7  ;;  %v664_v62 = vrot.slane %v663_v43, 4  ;;  %v1297_v25 = vsel %vm5394_vm5, %v3778_v45, %v1296_v12  ;;  %v1298_v63 = vrot.slane %v1296_v12, 4 }
  0x59   : > { %v5409_v20 = vcombine.low %v477_v59, %v487_v56  ;;  %v674_v36 = vrot.slane %v673_v50, 4  ;;  %v1305_v38 = vrot.slane %v1303_v30, 4  ;;  %v5419_v33 = vcombine.low %v5081_v16, %v5089_v21 }
  0x5a   : > { %v669_v48 = vsel %vm5048_vm2, %v664_v62, %v668_v46  ;;  %v1300_v23 = vsel %vm5394_vm5, %v1298_v63, %v6515_v26  ;;  %v3780_v7 = vrot.slane %v5081_v16, 9  ;;  %v3754_v14 = vcombine.low %v5020_v4, %v5023_v5 }
  0x5b   : > { %4394 = vmatmul.mubr.bf16.gmra.mxu0 %v5409_v20  ;;  %v679_v17 = vsel %vm5048_vm2, %v674_v36, %v678_v8  ;;  %v3810_v46 = vcombine.low %v1297_v25, %v1300_v23  ;;  %v1310_v6 = vrot.slane %v5089_v21, 5  ;;  %v1304_v63 = vsel %vm5394_vm5, %v3779_v28, %v1303_v30  ;;  %v4868_v36 = vld [vmem:[%s6453_s1 + $0xf0] sm:$0xff]  }
  0x5c   : > { %v5428_v61 = vcombine.low %v669_v48, %v679_v17  ;;  %v6516_v45 = vrot.slane %v5057_v39, 5  ;;  %v1313_v59 = vrot.slane %v5097_v27, 5  ;;  %v1317_v5 = vrot.slane %v5132_v0, 5  ;;  %v6533_v58 = vld [vmem:[#allocation19_spill] sm:$0xff] }
  0x5d   : > { %4477 = vmatprep.mubr.bf16.mxu0 %v3810_v46  ;;  %v1311_v13 = vsel %vm5394_vm5, %v3780_v7, %v1310_v6  ;;  %v1312_v4 = vrot.slane %v1310_v6, 4  ;;  %v3781_v21 = vrot.slane %v5123_v57, 9  ;;  %v1320_v43 = vrot.slane %v5140_v10, 5  ;;  %v4869_v10 = vld [vmem:[%s6453_s1 + $0x130] sm:$0xff]  }
  0x5e   : > { %v1307_v16 = vsel %vm5394_vm5, %v1305_v38, %v6516_v45  ;;  %4410 = vmatmul.mubr.bf16.gmra.mxu1 %v5428_v61  ;;  %v1324_v39 = vrot.slane %v5191_v2, 5  ;;  %v1319_v50 = vrot.slane %v1317_v5, 4  ;;  %v3782_v8 = vrot.slane %v5177_v51, 9 }
  0x5f   : > { %4429 = vmatprep.mubr.bf16.mxu1 %v3754_v14  ;;  %v5444_v12 = vcombine.low %v1304_v63, %v1307_v16  ;;  %v1314_v27 = vsel %vm5394_vm5, %v1312_v4, %v1313_v59  ;;  %v1327_v56 = vrot.slane %v5199_v19, 5  ;;  %v1331_v62 = vrot.slane %v5231_v55, 5  ;;  %v4873_v14 = vld [vmem:[%s6453_s1 + $0x128] sm:$0xff]  }
  0x60   : > { %v5449_v28 = vcombine.low %v1311_v13, %v1314_v27  ;;  %v1326_v30 = vrot.slane %v1324_v39, 4  ;;  %v1318_v25 = vsel %vm5394_vm5, %v3781_v21, %v1317_v5  ;;  %v3783_v38 = vrot.slane %v5228_v54, 9  ;;  %v4872_v16 = vld [vmem:[%s6453_s1 + $0xe8] sm:$0xff]   ;;  %v5491_v13 = vld [vmem:[%s5014_s25 + $0x64] sm:$0xf] }
  0x61   : > { %v1321_v19 = vsel %vm5394_vm5, %v1319_v50, %v1320_v43  ;;  %v1325_v48 = vsel %vm5394_vm5, %v3782_v8, %v1324_v39  ;;  %v1334_v26 = vrot.slane %v5249_v31, 5  ;;  %v1338_v23 = vrot.slane %v5294_v15, 5 }
  0x62   : > { %v1328_v7 = vsel %vm5394_vm5, %v1326_v30, %v1327_v56  ;;  %v1333_v17 = vrot.slane %v1331_v62, 4  ;;  %v3784_v46 = vrot.slane %v5285_v53, 9  ;;  %v1345_v6 = vrot.slane %v5345_v1, 5  ;;  %v5526_v30 = vld [vmem:[%s5014_s25 + $0x60] sm:$0xf] }
  0x63   : > { %4478 = vmatmul.mubr.bf16.vlgmr.msra.gmra.mxu0 %v5444_v12  ;;  %v1340_v31 = vrot.slane %v1338_v23, 4  ;;  %v1341_v63 = vrot.slane %v5305_v37, 5  ;;  %v5484_v45 = vcombine.low %v1325_v48, %v1328_v7  ;;  %v3785_v59 = vrot.slane %v5337_v24, 9 }
  0x64   : > { %4558 = vmatpush3.bf16.msra.mxu0 %v5330_v49  ;;  %4481 = vmatprep.mubr.bf16.mxu0 %v5449_v28  ;;  %v5482_v49 = vcombine.low %v1318_v25, %v1321_v19  ;;  %v1352_v37 = vrot.slane %v5491_v13, 5  ;;  %v1335_v4 = vsel %vm5394_vm5, %v1333_v17, %v1334_v26  ;;  %v1347_v5 = vrot.slane %v1345_v6, 4 }
  0x65   : > { %4559 = vmatprep.subr.bf16.mxu0 %v4869_v10  ;;  %v1348_v21 = vrot.slane %v5356_v9, 5  ;;  %v5501_v43 = vcombine.low %v5123_v57, %v5132_v0  ;;  %v1339_v39 = vsel %vm5394_vm5, %v3784_v46, %v1338_v23  ;;  %v1342_v27 = vsel %vm5394_vm5, %v1340_v31, %v1341_v63  ;;  %v4876_v0 = vld [vmem:[%s6453_s1 + $0xe0] sm:$0xff]  }
  0x66   : > { %4430 = vmatmul.mubr.bf16.vlgmr.msra.gmra.mxu1 %v5093_v22  ;;  %v5509_v50 = vcombine.low %v5177_v51, %v5191_v2  ;;  %v5513_v8 = vcombine.low %v5228_v54, %v5231_v55  ;;  %v5517_v57 = vcombine.low %v5285_v53, %v5294_v15  ;;  %v4877_v9 = vld [vmem:[%s6453_s1 + $0x120] sm:$0xff]   ;;  %v3786_v51 = vrot.slane %v5526_v30, 9  ;;  %v4930_v53 = vld [vmem:[%s5014_s25 + $0x68] sm:$0x1] }
  0x67   : > { %4510 = vmatpush3.bf16.msra.mxu1 %v5320_v52  ;;  %4433 = vmatprep.mubr.bf16.mxu1 %v5419_v33  ;;  %v1332_v52 = vsel %vm5394_vm5, %v3783_v38, %v1331_v62  ;;  %v5534_v54 = vsel %vm5394_vm5, %v3785_v59, %v1345_v6  ;;  %v1354_v55 = vrot.slane %v1352_v37, 4  ;;  %v1355_v15 = vrot.slane %v4930_v53, 5  ;;  %v4881_v62 = vld [vmem:[%s6453_s1 + $0x118] sm:$0xff]   ;;  %v4884_v53 = vld [vmem:[%s6453_s1 + $0xd0] sm:$0xff]  }
  0x68   : > { %4511 = vmatprep.subr.bf16.mxu1 %v4868_v36  ;;  %4560 = vmatpush3.bf16.msra.mxu0 %v4869_v10  ;;  %v5530_v2 = vcombine.low %v1332_v52, %v1335_v4  ;;  %v5538_v56 = vcombine.low %v1339_v39, %v1342_v27  ;;  %v1349_v10 = vsel %vm5394_vm5, %v1347_v5, %v1348_v21  ;;  %v3789_v19 = vrot.slane %v5143_v11, 9  ;;  %v4880_v6 = vld [vmem:[%s6453_s1 + $0xd8] sm:$0xff]   ;;  %v4885_v4 = vld [vmem:[%s6453_s1 + $0x110] sm:$0xff]   ;;  %v6517_v5 = vld [vmem:[#allocation14_spill] sm:$0xff] }
  0x69   : > { %4561 = vmatprep.subr.bf16.mxu0 %v4873_v14  ;;  %v5547_v25 = vcombine.low %v5143_v11, %v5147_v18  ;;  %v1373_v48 = vrot.slane %v5147_v18, 5  ;;  %v1376_v26 = vrot.slane %v5167_v44, 5  ;;  %v1353_v23 = vsel %vm5394_vm5, %v3786_v51, %v1352_v37  ;;  %v6518_v21 = vld [vmem:[#allocation12_spill] sm:$0xff]  ;;  %v6519_v51 = vld [vmem:[#allocation15_spill] sm:$0xff] }
  0x6a   : > { %v1366_v7 = vrot.slane %v5109_v41, 5  ;;  %v5562_v17 = vcombine.low %v5204_v34, %v5210_v42  ;;  %v1356_v11 = vsel %vm5394_vm5, %v1354_v55, %v1355_v15  ;;  %v1380_v46 = vrot.slane %v5210_v42, 5 }
  0x6b   : > { %4482 = vmatmul.mubr.bf16.gmra.mxu0 %v5482_v49  ;;  %4512 = vmatpush3.bf16.msra.mxu1 %v4868_v36  ;;  %v5550_v36 = vld [vmem:[%s5014_s25 + $0x70] sm:$0xf]  ;;  %v1374_v18 = vsel %vm5394_vm5, %v3789_v19, %v1373_v48  ;;  %v1375_v44 = vrot.slane %v1373_v48, 4  ;;  %v1383_v31 = vrot.slane %v5219_v47, 5  ;;  %v3791_v63 = vrot.slane %v5252_v32, 9 }
  0x6c   : > { %4485 = vmatprep.mubr.bf16.mxu0 %v5484_v45  ;;  %4513 = vmatprep.subr.bf16.mxu1 %v4872_v16  ;;  %v1359_v38 = vrot.slane %v5550_v36, 5  ;;  %v1382_v37 = vrot.slane %v1380_v46, 4  ;;  %v1390_v52 = vrot.slane %v5280_v35, 5  ;;  %v5595_v39 = vcombine.low %v6518_v21, %v6517_v5 }
  0x6d   : > { %4562 = vmatpush3.bf16.msra.mxu0 %v4873_v14  ;;  %v3790_v14 = vrot.slane %v5204_v34, 9  ;;  %v5577_v34 = vcombine.low %v5252_v32, %v5260_v40  ;;  %v1377_v59 = vsel %vm5394_vm5, %v1375_v44, %v1376_v26  ;;  %v3792_v27 = vrot.slane %v6518_v21, 9 }
  0x6e   : > { %4434 = vmatmul.mubr.bf16.gmra.mxu1 %v5501_v43  ;;  %4563 = vmatprep.subr.bf16.mxu0 %v4877_v9  ;;  %v5586_v47 = vcombine.low %v1374_v18, %v1377_v59  ;;  %v1384_v35 = vsel %vm5394_vm5, %v1382_v37, %v1383_v31  ;;  %v1397_v55 = vrot.slane %v6519_v51, 5  ;;  %v5613_v19 = vcombine.low %v5359_v3, %v5364_v60  ;;  %v4932_v31 = vld [vmem:[%s5014_s25 + $0x6c] sm:$0xf]  ;;  %v4933_v59 = vld [vmem:[%s5014_s25 + $0x74] sm:$0x1]  ;;  %v4893_v51 = vld [vmem:[%s6453_s1 + $0x100] sm:$0xff]  }
  0x6f   : > { %4437 = vmatprep.mubr.bf16.mxu1 %v5509_v50  ;;  %4514 = vmatpush3.bf16.msra.mxu1 %v4872_v16  ;;  %v1387_v16 = vrot.slane %v5260_v40, 5  ;;  %v1381_v42 = vsel %vm5394_vm5, %v3790_v14, %v1380_v46  ;;  %v3793_v48 = vrot.slane %v5359_v3, 9  ;;  %v1401_v44 = vrot.slane %v5364_v60, 5  ;;  %v4889_v3 = vld [vmem:[%s6453_s1 + $0x108] sm:$0xff]  }
  0x70   : > { %4515 = vmatprep.subr.bf16.mxu1 %v4876_v0  ;;  %v5607_v15 = vcombine.low %v1381_v42, %v1384_v35  ;;  %v5623_v46 = vcombine.low %v5534_v54, %v1349_v10  ;;  %v1362_v60 = vrot.slane %v4933_v59, 5  ;;  %v5636_v37 = vcombine.low %v1353_v23, %v1356_v11  ;;  %v4935_v35 = vld [vmem:[%s5014_s25 + $0x80] sm:$0x1] }
  0x71   : > { %4564 = vmatpush3.bf16.msra.mxu0 %v4877_v9  ;;  %v1388_v32 = vsel %vm5394_vm5, %v3791_v63, %v1387_v16  ;;  %v1389_v40 = vrot.slane %v1387_v16, 4  ;;  %v1394_v9 = vrot.slane %v6517_v5, 5  ;;  %v3787_v63 = vrot.slane %v4932_v31, 9  ;;  %v4888_v5 = vld [vmem:[%s6453_s1 + $0xc8] sm:$0xff]  }
  0x72   : > { %4565 = vmatprep.subr.bf16.mxu0 %v4881_v62  ;;  %v1402_v54 = vsel %vm5394_vm5, %v3793_v48, %v1401_v44  ;;  %v1403_v10 = vrot.slane %v1401_v44, 4  ;;  %v1368_v21 = vrot.slane %v1366_v7, 4  ;;  %v5653_v11 = vcombine.low %v5337_v24, %v5345_v1  ;;  %v4936_v48 = vld [vmem:[%s5014_s25 + $0x7c] sm:$0xf]  ;;  %v5716_v44 = vld [vmem:[%s5014_s25 + $0xc0] sm:$0xf] }
  0x73   : > { %4486 = vmatmul.mubr.bf16.gmra.mxu0 %v5530_v2  ;;  %4516 = vmatpush3.bf16.msra.mxu1 %v4876_v0  ;;  %v1391_v0 = vsel %vm5394_vm5, %v1389_v40, %v1390_v52  ;;  %v1395_v14 = vsel %vm5394_vm5, %v3792_v27, %v1394_v9  ;;  %v1396_v18 = vrot.slane %v1394_v9, 4  ;;  %v1361_v52 = vrot.slane %v1359_v38, 4 }
  0x74   : > { %4489 = vmatprep.mubr.bf16.mxu0 %v5538_v56  ;;  %4517 = vmatprep.subr.bf16.mxu1 %v4880_v6  ;;  %v5616_v26 = vcombine.low %v1388_v32, %v1391_v0  ;;  %v4934_v32 = vld [vmem:[%s5014_s25 + $0x78] sm:$0xf]  ;;  %v1369_v27 = vrot.slane %v4935_v35, 5  ;;  %v1360_v1 = vsel %vm5394_vm5, %v3787_v63, %v1359_v38  ;;  %v5694_v0 = vcombine.low %v4932_v31, %v5550_v36  ;;  %v5711_v36 = vld [vmem:[%s5014_s25 + $0xc4] sm:$0xf] }
  0x75   : > { %4566 = vmatpush3.bf16.msra.mxu0 %v4881_v62  ;;  %v6520_v62 = vld [vmem:[#allocation18_spill] sm:$0xff]  ;;  %v1398_v42 = vsel %vm5394_vm5, %v1396_v18, %v1397_v55  ;;  %v3788_v40 = vrot.slane %v4934_v32, 9  ;;  %v5663_v55 = vcombine.low %v5526_v30, %v5491_v13  ;;  %v1363_v24 = vsel %vm5394_vm5, %v1361_v52, %v1362_v60  ;;  %v4895_v38 = vld [vmem:[%s6453_s1 + $0x1b8] sm:$0xff]   ;;  %v5719_v31 = vld [vmem:[%s5014_s25 + $0xc8] sm:$0x1] }
  0x76   : > { %4438 = vmatmul.mubr.bf16.gmra.mxu1 %v5513_v8  ;;  %4567 = vmatprep.subr.bf16.mxu0 %v4885_v4  ;;  %v1404_v16 = vrot.slane %v6520_v62, 5  ;;  %v1370_v30 = vsel %vm5394_vm5, %v1368_v21, %v1369_v27  ;;  %v2281_v18 = vrot.slane %v5711_v36, 5  ;;  %v3884_v63 = vrot.slane %v5716_v44, 9  ;;  %v6521_v60 = vld [vmem:[#allocation4_spill] sm:$0xff]  ;;  %v6524_v21 = vld [vmem:[#allocation10_spill] sm:$0xff]  ;;  %v6525_v35 = vld [vmem:[#allocation13_spill] sm:$0xff] }
  0x77   : > { %4441 = vmatprep.mubr.bf16.mxu1 %v5517_v57  ;;  %4518 = vmatpush3.bf16.msra.mxu1 %v4880_v6  ;;  %v5644_v6 = vcombine.low %v1395_v14, %v1398_v42  ;;  %v1367_v13 = vsel %vm5394_vm5, %v3788_v40, %v1366_v7  ;;  %v4894_v7 = vld [vmem:[%s6453_s1 + $0x178] sm:$0xff]   ;;  %v5698_v14 = vcombine.low %v4934_v32, %v4936_v48  ;;  %v2284_v62 = vrot.slane %v5719_v31, 5  ;;  %v6523_v52 = vld [vmem:[#allocation8_spill] sm:$0xff]  ;;  %v4899_v40 = vld [vmem:[%s6453_s1 + $0x1a8] sm:$0xff]  }
  0x78   : > { %4519 = vmatprep.subr.bf16.mxu1 %v4884_v53  ;;  %v1405_v23 = vsel %vm5394_vm5, %v1403_v10, %v1404_v16  ;;  %v5688_v41 = vcombine.low %v1367_v13, %v1370_v30  ;;  %v2282_v16 = vsel %vm5394_vm5, %v3884_v63, %v2281_v18  ;;  %v6522_v10 = vld [vmem:[#allocation6_spill] sm:$0xff]  ;;  %v4896_v32 = vld [vmem:[%s6453_s1 + $0x170] sm:$0xff]   ;;  %v4907_v13 = vld [vmem:[%s6453_s1 + $0x188] sm:$0xff]  }
  0x79   : > { %4568 = vmatpush3.bf16.msra.mxu0 %v4885_v4  ;;  %v5655_v9 = vcombine.low %v1402_v54, %v1405_v23  ;;  %v4892_v4 = vld [vmem:[%s6453_s1 + $0xc0] sm:$0xff]   ;;  %v4897_v54 = vld [vmem:[%s6453_s1 + $0x1b0] sm:$0xff]   ;;  %v4903_v23 = vld [vmem:[%s6453_s1 + $0x198] sm:$0xff]  }
  0x7a   : > { %4569 = vmatprep.subr.bf16.mxu0 %v4889_v3  ;;  %v4900_v27 = vld [vmem:[%s6453_s1 + $0x160] sm:$0xff]   ;;  %v4906_v30 = vld [vmem:[%s6453_s1 + $0x148] sm:$0xff]   ;;  %v6528_v48 = vld [vmem:[#allocation5_spill] sm:$0xff] }
  0x7b   : > { %4490 = vmatmul.mubr.bf16.gmra.mxu0 %v5623_v46  ;;  %4520 = vmatpush3.bf16.msra.mxu1 %v4884_v53  ;;  %v5686_v53 = vcombine.low %v1360_v1, %v1363_v24  ;;  %v4905_v1 = vld [vmem:[%s6453_s1 + $0x190] sm:$0xff]   ;;  %v6526_v24 = vld [vmem:[#allocation17_spill] sm:$0xff] }
  0x7c   : > { %4493 = vmatprep.mubr.bf16.mxu0 %v5636_v37  ;;  %4521 = vmatprep.subr.bf16.mxu1 %v4888_v5  ;;  %v4912_v63 = vld [vmem:[%s6453_s1 + $0x238] sm:$0xff]  }
  0x7d   : > { %4570 = vmatpush3.bf16.msra.mxu0 %v4889_v3  ;;  %v2283_v3 = vrot.slane %v2281_v18, 4  ;;  %v4909_v18 = vld [vmem:[%s6453_s1 + $0x140] sm:$0xff]  }
  0x7e   : > { %4442 = vmatmul.mubr.bf16.gmra.mxu1 %v5653_v11  ;;  %4571 = vmatprep.subr.bf16.mxu0 %v4893_v51 }
  0x7f   : > { %4445 = vmatprep.mubr.bf16.mxu1 %v5663_v55  ;;  %4522 = vmatpush3.bf16.msra.mxu1 %v4888_v5  ;;  %v2285_v59 = vsel %vm5394_vm5, %v2283_v3, %v2284_v62  ;;  %v4901_v5 = vld [vmem:[%s6453_s1 + $0x1a0] sm:$0xff]   ;;  %v4911_v3 = vld [vmem:[%s6453_s1 + $0x1f8] sm:$0xff]   ;;  %v6529_v62 = vld [vmem:[#allocation7_spill] sm:$0xff] }
  0x80   : > { %4523 = vmatprep.subr.bf16.mxu1 %v4892_v4  ;;  %v5729_v42 = vcombine.low %v2282_v16, %v2285_v59  ;;  %v6530_v16 = vld [vmem:[#allocation9_spill] sm:$0xff]  ;;  %v1993_v59 = vshrl.u32 %v5716_v44, 16 }
  0x81   : > { %4572 = vmatpush3.bf16.msra.mxu0 %v4893_v51  ;;  %v4902_v51 = vld [vmem:[%s6453_s1 + $0x158] sm:$0xff]  }
  0x82   : > { %4653 = vmatprep.subr.bf16.mxu0 %v4895_v38 }
  0x83   : > { %4494 = vmatmul.mubr.bf16.gmra.mxu0 %v5686_v53  ;;  %4524 = vmatpush3.bf16.msra.mxu1 %v4892_v4  ;;  %v4904_v4 = vld [vmem:[%s6453_s1 + $0x150] sm:$0xff]  }
  0x84   : > { %4497 = vmatprep.mubr.bf16.mxu0 %v5688_v41  ;;  %4605 = vmatprep.subr.bf16.mxu1 %v4894_v7 }
  0x86   : > { %4446 = vmatmul.mubr.bf16.gmra.mxu1 %v5694_v0 }
  0x87   : > { %4449 = vmatprep.mubr.bf16.mxu1 %v5698_v14 }
  0x8b   : > { %4498 = vmatmul.mubr.bf16.gmra.mxu0 %v5586_v47 }
  0x8c   : > { %4501 = vmatprep.mubr.bf16.mxu0 %v5607_v15 }
  0x8e   : > { %4450 = vmatmul.mubr.bf16.gmra.mxu1 %v5547_v25 }
  0x8f   : > { %4453 = vmatprep.mubr.bf16.mxu1 %v5562_v17 }
  0x93   : > { %4502 = vmatmul.mubr.bf16.gmra.mxu0 %v5616_v26 }
  0x94   : > { %4505 = vmatprep.mubr.bf16.mxu0 %v5644_v6 }
  0x96   : > { %4454 = vmatmul.mubr.bf16.gmra.mxu1 %v5577_v34 }
  0x97   : > { %4457 = vmatprep.mubr.bf16.mxu1 %v5595_v39 }
  0x9b   : > { %4506 = vmatmul.mubr.bf16.gmra.mxu0 %v5655_v9 }
  0x9c   : > { %4573 = vmatprep.mubr.bf16.mxu0 %v6521_v60  ;;  %v1996_v60 = vshll.u32 %v5716_v44, 16 }
  0x9e   : > { %4458 = vmatmul.mubr.bf16.gmra.mxu1 %v5613_v19 }
  0x9f   : > { %4525 = vmatprep.mubr.bf16.mxu1 %v5093_v22  ;;  %v4898_v22 = vld [vmem:[%s6453_s1 + $0x168] sm:$0xff]  }
  0xa3   : > { %4574 = vmatmul.mubr.bf16.vlgmr.msra.gmra.mxu0 %v6522_v10 }
  0xa4   : > { %4654 = vmatpush3.bf16.msra.mxu0 %v4895_v38  ;;  %4577 = vmatprep.mubr.bf16.mxu0 %v6523_v52  ;;  %v4910_v38 = vld [vmem:[%s6453_s1 + $0x180] sm:$0xff]  }
  0xa5   : > { %4655 = vmatprep.subr.bf16.mxu0 %v4897_v54 }
  0xa6   : > { %4526 = vmatmul.mubr.bf16.vlgmr.msra.gmra.mxu1 %v5419_v33 }
  0xa7   : > { %4606 = vmatpush3.bf16.msra.mxu1 %v4894_v7  ;;  %4529 = vmatprep.mubr.bf16.mxu1 %v5501_v43  ;;  %v6527_v7 = vld [vmem:[#allocation3_spill] sm:$0xff] }
  0xa8   : > { %4607 = vmatprep.subr.bf16.mxu1 %v4896_v32  ;;  %4656 = vmatpush3.bf16.msra.mxu0 %v4897_v54  ;;  %v2006_v54 = vshrl.u32 %v5711_v36, 16 }
  0xa9   : > { %4657 = vmatprep.subr.bf16.mxu0 %v4899_v40 }
  0xab   : > { %4578 = vmatmul.mubr.bf16.gmra.mxu0 %v6524_v21  ;;  %4608 = vmatpush3.bf16.msra.mxu1 %v4896_v32  ;;  %v2002_v32 = vshll.u32 %v5711_v36, 16 }
  0xac   : > { %4581 = vmatprep.mubr.bf16.mxu0 %v6525_v35  ;;  %4609 = vmatprep.subr.bf16.mxu1 %v4898_v22 }
  0xad   : > { %4658 = vmatpush3.bf16.msra.mxu0 %v4899_v40  ;;  %v1995_v40 = vrot.slane %v1993_v59, 4 }
  0xae   : > { %4530 = vmatmul.mubr.bf16.gmra.mxu1 %v5509_v50  ;;  %4659 = vmatprep.subr.bf16.mxu0 %v4901_v5 }
  0xaf   : > { %4533 = vmatprep.mubr.bf16.mxu1 %v5513_v8  ;;  %4610 = vmatpush3.bf16.msra.mxu1 %v4898_v22  ;;  %v1998_v22 = vrot.slane %v1996_v60, 5 }
  0xb0   : > { %4611 = vmatprep.subr.bf16.mxu1 %v4900_v27 }
  0xb1   : > { %4660 = vmatpush3.bf16.msra.mxu0 %v4901_v5  ;;  %v2004_v5 = vrot.slane %v2002_v32, 5  ;;  %v4914_v32 = vld [vmem:[%s6453_s1 + $0x230] sm:$0xff]  }
  0xb2   : > { %4661 = vmatprep.subr.bf16.mxu0 %v4903_v23 }
  0xb3   : > { %4582 = vmatmul.mubr.bf16.gmra.mxu0 %v6526_v24  ;;  %4612 = vmatpush3.bf16.msra.mxu1 %v4900_v27  ;;  %v2008_v27 = vrot.slane %v2006_v54, 4  ;;  %v5822_v54 = vcombine.low %v5716_v44, %v5711_v36  ;;  %v4913_v36 = vld [vmem:[%s6453_s1 + $0x1f0] sm:$0xff]  }
  0xb4   : > { %4585 = vmatprep.mubr.bf16.mxu0 %v5409_v20  ;;  %4613 = vmatprep.subr.bf16.mxu1 %v4902_v51 }
  0xb5   : > { %4662 = vmatpush3.bf16.msra.mxu0 %v4903_v23  ;;  %v6531_v23 = vld [vmem:[#allocation11_spill] sm:$0xff] }
  0xb6   : > { %4534 = vmatmul.mubr.bf16.gmra.mxu1 %v5517_v57  ;;  %4663 = vmatprep.subr.bf16.mxu0 %v4905_v1 }
  0xb7   : > { %4537 = vmatprep.mubr.bf16.mxu1 %v5653_v11  ;;  %4614 = vmatpush3.bf16.msra.mxu1 %v4902_v51  ;;  %v6532_v51 = vld [vmem:[#allocation16_spill] sm:$0xff] }
  0xb8   : > { %4615 = vmatprep.subr.bf16.mxu1 %v4904_v4 }
  0xb9   : > { %4664 = vmatpush3.bf16.msra.mxu0 %v4905_v1  ;;  %v1999_v1 = vor.u32 %v1998_v22, %v1995_v40  ;;  %v4922_v22 = vld [vmem:[%s6453_s1 + $0x210] sm:$0xff]  }
  0xba   : > { %4665 = vmatprep.subr.bf16.mxu0 %v4907_v13 }
  0xbb   : > { %4586 = vmatmul.mubr.bf16.gmra.mxu0 %v6527_v7  ;;  %4616 = vmatpush3.bf16.msra.mxu1 %v4904_v4  ;;  %v2009_v4 = vor.u32 %v2008_v27, %v2004_v5  ;;  %v4921_v27 = vld [vmem:[%s6453_s1 + $0x1d0] sm:$0xff]  }
  0xbc   : > { %4589 = vmatprep.mubr.bf16.mxu0 %v6528_v48  ;;  %4617 = vmatprep.subr.bf16.mxu1 %v4906_v30 }
  0xbd   : > { %4666 = vmatpush3.bf16.msra.mxu0 %v4907_v13  ;;  %v2012_v13 = vshll.u32 %v5719_v31, 16 }
  0xbe   : > { %4538 = vmatmul.mubr.bf16.gmra.mxu1 %v5663_v55  ;;  %4667 = vmatprep.subr.bf16.mxu0 %v4910_v38 }
  0xbf   : > { %4541 = vmatprep.mubr.bf16.mxu1 %v5694_v0  ;;  %4618 = vmatpush3.bf16.msra.mxu1 %v4906_v30  ;;  %v2000_v30 = vrot.slane %v1999_v1, 4 }
  0xc0   : > { %4619 = vmatprep.subr.bf16.mxu1 %v4909_v18 }
  0xc1   : > { %4668 = vmatpush3.bf16.msra.mxu0 %v4910_v38  ;;  %v2010_v38 = vrot.slane %v2009_v4, 4  ;;  %v2005_v59 = vsel %vm5048_vm2, %v2000_v30, %v2004_v5  ;;  %v4927_v30 = vld [vmem:[%s6453_s1 + $0x200] sm:$0xff]  }
  0xc2   : > { %4749 = vmatprep.subr.bf16.mxu0 %v4912_v63 }
  0xc3   : > { %4590 = vmatmul.mubr.bf16.gmra.mxu0 %v6529_v62  ;;  %4620 = vmatpush3.bf16.msra.mxu1 %v4909_v18  ;;  %v2014_v18 = vrot.slane %v2012_v13, 5 }
  0xc4   : > { %4593 = vmatprep.mubr.bf16.mxu0 %v6530_v16  ;;  %4701 = vmatprep.subr.bf16.mxu1 %v4911_v3 }
  0xc5   : > { %v2015_v60 = vsel %vm5048_vm2, %v2010_v38, %v2014_v18  ;;  %v4926_v18 = vld [vmem:[%s6453_s1 + $0x1c0] sm:$0xff]  }
  0xc6   : > { %4542 = vmatmul.mubr.bf16.gmra.mxu1 %v5698_v14  ;;  %v5818_v31 = vcombine.low %v2005_v59, %v2015_v60 }
  0xc7   : > { %4545 = vmatprep.mubr.bf16.mxu1 %v5547_v25 }
  0xc8   : > { %6534 = vst [vmem:[#allocation14_spill] sm:$0xff] %v5818_v31 }
  0xcb   : > { %4594 = vmatmul.mubr.bf16.gmra.mxu0 %v6531_v23 }
  0xcc   : > { %4597 = vmatprep.mubr.bf16.mxu0 %v6532_v51 }
  0xce   : > { %4546 = vmatmul.mubr.bf16.gmra.mxu1 %v5562_v17 }
  0xcf   : > { %4549 = vmatprep.mubr.bf16.mxu1 %v5577_v34 }
  0xd3   : > { %4598 = vmatmul.mubr.bf16.gmra.mxu0 %v6533_v58 }
  0xd4   : > { %4601 = vmatprep.mubr.bf16.mxu0 %v5428_v61 }
  0xd6   : > { %4550 = vmatmul.mubr.bf16.gmra.mxu1 %v5595_v39 }
  0xd7   : > { %4553 = vmatprep.mubr.bf16.mxu1 %v5613_v19 }
  0xdb   : > { %4602 = vmatmul.mubr.bf16.gmra.mxu0 %v5818_v31 }
  0xdc   : > { %4669 = vmatprep.mubr.bf16.mxu0 %v5419_v33  ;;  %v4916_v33 = vld [vmem:[%s6453_s1 + $0x228] sm:$0xff]  }
  0xde   : > { %4554 = vmatmul.mubr.bf16.gmra.mxu1 %v5822_v54 }
  0xdf   : > { %4621 = vmatprep.mubr.bf16.mxu1 %v5444_v12  ;;  %v4915_v12 = vld [vmem:[%s6453_s1 + $0x1e8] sm:$0xff]  }
  0xe3   : > { %4670 = vmatmul.mubr.bf16.vlgmr.msra.gmra.mxu0 %v5501_v43  ;;  %v4918_v43 = vld [vmem:[%s6453_s1 + $0x220] sm:$0xff]  }
  0xe4   : > { %4750 = vmatpush3.bf16.msra.mxu0 %v4912_v63  ;;  %4673 = vmatprep.mubr.bf16.mxu0 %v5509_v50  ;;  %v4917_v50 = vld [vmem:[%s6453_s1 + $0x1e0] sm:$0xff]  }
  0xe5   : > { %4751 = vmatprep.subr.bf16.mxu0 %v4914_v32 }
  0xe6   : > { %4622 = vmatmul.mubr.bf16.vlgmr.msra.gmra.mxu1 %v5449_v28 }
  0xe7   : > { %4702 = vmatpush3.bf16.msra.mxu1 %v4911_v3  ;;  %4625 = vmatprep.mubr.bf16.mxu1 %v5482_v49  ;;  %v4919_v3 = vld [vmem:[%s6453_s1 + $0x1d8] sm:$0xff]  }
  0xe8   : > { %4703 = vmatprep.subr.bf16.mxu1 %v4913_v36  ;;  %4752 = vmatpush3.bf16.msra.mxu0 %v4914_v32 }
  0xe9   : > { %4753 = vmatprep.subr.bf16.mxu0 %v4916_v33 }
  0xeb   : > { %4674 = vmatmul.mubr.bf16.gmra.mxu0 %v5513_v8  ;;  %4704 = vmatpush3.bf16.msra.mxu1 %v4913_v36  ;;  %v4920_v8 = vld [vmem:[%s6453_s1 + $0x218] sm:$0xff]  }
  0xec   : > { %4677 = vmatprep.mubr.bf16.mxu0 %v5517_v57  ;;  %4705 = vmatprep.subr.bf16.mxu1 %v4915_v12 }
  0xed   : > { %v5852_v44 = vpop.f32.mrf.mxu0  ;;  %4754 = vmatpush3.bf16.msra.mxu0 %v4916_v33  ;;  %v5855_v63 = vpop.f32.mrf.mxu1 }
  0xee   : > { %4626 = vmatmul.mubr.bf16.gmra.mxu1 %v5484_v45  ;;  %4755 = vmatprep.subr.bf16.mxu0 %v4918_v43 }
  0xef   : > { %4629 = vmatprep.mubr.bf16.mxu1 %v5530_v2  ;;  %4706 = vmatpush3.bf16.msra.mxu1 %v4915_v12  ;;  %v5861_v57 = vpop.f32.mrf.mxu0  ;;  %v5866_v40 = vpop.f32.mrf.mxu1 }
  0xf0   : > { %4707 = vmatprep.subr.bf16.mxu1 %v4917_v50 }
  0xf1   : > { %4756 = vmatpush3.bf16.msra.mxu0 %v4918_v43  ;;  %v5872_v5 = vpop.f32.mrf.mxu0  ;;  %v5879_v1 = vpop.f32.mrf.mxu1 }
  0xf2   : > { %4757 = vmatprep.subr.bf16.mxu0 %v4920_v8 }
  0xf3   : > { %4678 = vmatmul.mubr.bf16.gmra.mxu0 %v5653_v11  ;;  %4708 = vmatpush3.bf16.msra.mxu1 %v4917_v50  ;;  %v4924_v11 = vld [vmem:[%s6453_s1 + $0x208] sm:$0xff]   ;;  %v5885_v4 = vpop.f32.mrf.mxu0  ;;  %v5890_v13 = vpop.f32.mrf.mxu1 }
  0xf4   : > { %4681 = vmatprep.mubr.bf16.mxu0 %v5663_v55  ;;  %4709 = vmatprep.subr.bf16.mxu1 %v4919_v3  ;;  %v4923_v55 = vld [vmem:[%s6453_s1 + $0x1c8] sm:$0xff]  }
  0xf5   : > { %4758 = vmatpush3.bf16.msra.mxu0 %v4920_v8  ;;  %v5942_v8 = vld [vmem:[%s5014_s25 + $0xd0] sm:$0xf] }
  0xf6   : > { %4630 = vmatmul.mubr.bf16.gmra.mxu1 %v5538_v56  ;;  %4759 = vmatprep.subr.bf16.mxu0 %v4922_v22 }
  0xf7   : > { %4633 = vmatprep.mubr.bf16.mxu1 %v5623_v46  ;;  %4710 = vmatpush3.bf16.msra.mxu1 %v4919_v3 }
  0xf8   : > { %4711 = vmatprep.subr.bf16.mxu1 %v4921_v27  ;;  %v5896_v38 = vpop.f32.mrf.mxu0 }
  0xf9   : > { %4760 = vmatpush3.bf16.msra.mxu0 %v4922_v22 }
  0xfa   : > { %4761 = vmatprep.subr.bf16.mxu0 %v4924_v11  ;;  %v5906_v60 = vpop.f32.mrf.mxu0 }
  0xfb   : > { %4682 = vmatmul.mubr.bf16.gmra.mxu0 %v5694_v0  ;;  %4712 = vmatpush3.bf16.msra.mxu1 %v4921_v27 }
  0xfc   : > { %4685 = vmatprep.mubr.bf16.mxu0 %v5698_v14  ;;  %4713 = vmatprep.subr.bf16.mxu1 %v4923_v55  ;;  %v5903_v59 = vpop.f32.mrf.mxu1  ;;  %v5911_v14 = vpop.f32.mrf.mxu0 }
  0xfd   : > { %4762 = vmatpush3.bf16.msra.mxu0 %v4924_v11 }
  0xfe   : > { %4634 = vmatmul.mubr.bf16.gmra.mxu1 %v5636_v37  ;;  %4763 = vmatprep.subr.bf16.mxu0 %v4927_v30  ;;  %v5908_v0 = vpop.f32.mrf.mxu1  ;;  %v5918_v36 = vpop.f32.mrf.mxu0 }
  0xff   : > { %4637 = vmatprep.mubr.bf16.mxu1 %v5686_v53  ;;  %4714 = vmatpush3.bf16.msra.mxu1 %v4923_v55 }
 0x100   : > { %4715 = vmatprep.subr.bf16.mxu1 %v4926_v18  ;;  %v5915_v32 = vpop.f32.mrf.mxu1 }
 0x101   : > { %4764 = vmatpush3.bf16.msra.mxu0 %v4927_v30 }
 0x102   : > { %v5920_v33 = vpop.f32.mrf.mxu1 }
 0x103   : > { %4686 = vmatmul.mubr.bf16.gmra.mxu0 %v5547_v25  ;;  %4716 = vmatpush3.bf16.msra.mxu1 %v4926_v18 }
 0x104   : > { %4689 = vmatprep.mubr.bf16.mxu0 %v5562_v17 }
 0x106   : > { %4638 = vmatmul.mubr.bf16.gmra.mxu1 %v5688_v41 }
 0x107   : > { %4641 = vmatprep.mubr.bf16.mxu1 %v5586_v47 }
 0x109   : > { %v5923_v25 = vpop.f32.mrf.mxu0 }
 0x10b   : > { %4690 = vmatmul.mubr.bf16.gmra.mxu0 %v5577_v34  ;;  %v5930_v12 = vpop.f32.mrf.mxu0  ;;  %v5939_v34 = vld [vmem:[%s5014_s25 + $0xcc] sm:$0xf] }
 0x10c   : > { %4693 = vmatprep.mubr.bf16.mxu0 %v5595_v39  ;;  %v3926_v22 = vcombine.low %v5939_v34, %v5942_v8 }
 0x10d   : > { %v5927_v17 = vpop.f32.mrf.mxu1  ;;  %v5935_v50 = vpop.f32.mrf.mxu0 }
 0x10e   : > { %4642 = vmatmul.mubr.bf16.gmra.mxu1 %v5607_v15  ;;  %6535 = vst [vmem:[#allocation12_spill] sm:$0xff] %v5927_v17 }
 0x10f   : > { %4645 = vmatprep.mubr.bf16.mxu1 %v5616_v26  ;;  %v5932_v43 = vpop.f32.mrf.mxu1  ;;  %v5947_v3 = vpop.f32.mrf.mxu0 }
 0x110   : > { %6536 = vst [vmem:[#allocation15_spill] sm:$0xff] %v5932_v43 }
 0x111   : > { %v5945_v39 = vpop.f32.mrf.mxu1 }
 0x112   : > { %6537 = vst [vmem:[#allocation18_spill] sm:$0xff] %v5945_v39 }
 0x113   : > { %4694 = vmatmul.mubr.bf16.gmra.mxu0 %v5613_v19  ;;  %v5952_v19 = vpop.f32.mrf.mxu1 }
 0x114   : > { %4697 = vmatprep.mubr.bf16.mxu0 %v5822_v54  ;;  %6538 = vst [vmem:[#allocation4_spill] sm:$0xff] %v5952_v19 }
 0x116   : > { %4646 = vmatmul.mubr.bf16.gmra.mxu1 %v5644_v6 }
 0x117   : > { %4649 = vmatprep.mubr.bf16.mxu1 %v5655_v9 }
 0x11b   : > { %v5954_v27 = vpop.f32.mrf.mxu0  ;;  %4698 = vmatmul.mubr.bf16.gmra.mxu0 %v3926_v22 }
 0x11c   : > { %4765 = vmatprep.mubr.bf16.mxu0 %v5449_v28 }
 0x11d   : > { %v5957_v54 = vpop.f32.mrf.mxu0 }
 0x11e   : > { %v5959_v11 = vpop.f32.mrf.mxu1  ;;  %4650 = vmatmul.mubr.bf16.gmra.mxu1 %v5729_v42 }
 0x11f   : > { %6539 = vst [vmem:[#allocation6_spill] sm:$0xff] %v5959_v11  ;;  %v5962_v55 = vpop.f32.mrf.mxu0  ;;  %4717 = vmatprep.mubr.bf16.mxu1 %v6522_v10 }
 0x120   : > { %v5965_v30 = vpop.f32.mrf.mxu1 }
 0x121   : > { %6540 = vst [vmem:[#allocation8_spill] sm:$0xff] %v5965_v30  ;;  %v5967_v18 = vpop.f32.mrf.mxu0 }
 0x122   : > { %v5969_v19 = vpop.f32.mrf.mxu1 }
 0x123   : > { %6541 = vst [vmem:[#allocation10_spill] sm:$0xff] %v5969_v19  ;;  %v4479_v39 = vpop.f32.mrf.mxu0  ;;  %4766 = vmatmul.mubr.bf16.vlgmr.msra.gmra.mxu0 %v5482_v49 }
 0x124   : > { %v5972_v28 = vpop.f32.mrf.mxu1  ;;  %4769 = vmatprep.mubr.bf16.mxu0 %v5484_v45 }
 0x125   : > { %6542 = vst [vmem:[#allocation13_spill] sm:$0xff] %v5972_v28  ;;  %v1569_v22 = vpop.f32.mrf.mxu0 }
 0x126   : > { %v4431_v11 = vpop.f32.mrf.mxu1  ;;  %4718 = vmatmul.mubr.bf16.vlgmr.msra.gmra.mxu1 %v6523_v52 }
 0x127   : > { %v1157_v43 = vadd.f32 %v4431_v11, %v5852_v44  ;;  %v4480_v10 = vpop.f32.mrf.mxu0  ;;  %4721 = vmatprep.mubr.bf16.mxu1 %v6524_v21 }
 0x128   : > { %v1148_v30 = vpop.f32.mrf.mxu1 }
 0x129   : > { %v5978_v31 = vadd.f32 %v4479_v39, %v1157_v43  ;;  %v1149_v19 = vadd.f32 %v1148_v30, %v5861_v57  ;;  %v1572_v17 = vpop.f32.mrf.mxu0 }
 0x12a   : > { %v4432_v49 = vpop.f32.mrf.mxu1 }
 0x12b   : > { %v5981_v29 = vadd.f32 %v1569_v22, %v1149_v19  ;;  %v1160_v45 = vadd.f32 %v4432_v49, %v5872_v5  ;;  %v4483_v28 = vpop.f32.mrf.mxu0  ;;  %4770 = vmatmul.mubr.bf16.gmra.mxu0 %v5530_v2 }
 0x12c   : > { %v1151_v52 = vpop.f32.mrf.mxu1  ;;  %4773 = vmatprep.mubr.bf16.mxu0 %v5538_v56 }
 0x12d   : > { %v5986_v44 = vadd.f32 %v4480_v10, %v1160_v45  ;;  %v1152_v21 = vadd.f32 %v1151_v52, %v5885_v4  ;;  %v1585_v43 = vpop.f32.mrf.mxu0 }
 0x12e   : > { %v4435_v39 = vpop.f32.mrf.mxu1  ;;  %4722 = vmatmul.mubr.bf16.gmra.mxu1 %v6525_v35 }
 0x12f   : > { %v5990_v57 = vadd.f32 %v1572_v17, %v1152_v21  ;;  %v1173_v19 = vadd.f32 %v4435_v39, %v5896_v38  ;;  %v4484_v11 = vpop.f32.mrf.mxu0  ;;  %4725 = vmatprep.mubr.bf16.mxu1 %v6526_v24 }
 0x130   : > { %v1164_v5 = vpop.f32.mrf.mxu1 }
 0x131   : > { %v5994_v2 = vadd.f32 %v4483_v28, %v1173_v19  ;;  %v1165_v56 = vadd.f32 %v1164_v5, %v5906_v60  ;;  %v1588_v30 = vpop.f32.mrf.mxu0 }
 0x132   : > { %v4436_v22 = vpop.f32.mrf.mxu1 }
 0x133   : > { %v5997_v10 = vadd.f32 %v1585_v43, %v1165_v56  ;;  %v1176_v4 = vadd.f32 %v4436_v22, %v5911_v14  ;;  %v4487_v49 = vpop.f32.mrf.mxu0  ;;  %4774 = vmatmul.mubr.bf16.gmra.mxu0 %v5623_v46 }
 0x134   : > { %v1167_v35 = vpop.f32.mrf.mxu1  ;;  %4777 = vmatprep.mubr.bf16.mxu0 %v5636_v37 }
 0x135   : > { %v6002_v38 = vadd.f32 %v4484_v11, %v1176_v4  ;;  %v1168_v24 = vadd.f32 %v1167_v35, %v5918_v36  ;;  %v1601_v17 = vpop.f32.mrf.mxu0 }
 0x136   : > { %v4439_v28 = vpop.f32.mrf.mxu1  ;;  %4726 = vmatmul.mubr.bf16.gmra.mxu1 %v5409_v20 }
 0x137   : > { %v6006_v60 = vadd.f32 %v1588_v30, %v1168_v24  ;;  %v1189_v45 = vadd.f32 %v4439_v28, %v5923_v25  ;;  %v4488_v52 = vpop.f32.mrf.mxu0  ;;  %4729 = vmatprep.mubr.bf16.mxu1 %v6527_v7 }
 0x138   : > { %v1180_v14 = vpop.f32.mrf.mxu1 }
 0x139   : > { %v6010_v46 = vadd.f32 %v4487_v49, %v1189_v45  ;;  %v1181_v37 = vadd.f32 %v1180_v14, %v5930_v12  ;;  %v1604_v21 = vpop.f32.mrf.mxu0  ;;  %v2826_v45 = vshrl.u32 %v5942_v8, 16 }
 0x13a   : > { %v4440_v43 = vpop.f32.mrf.mxu1 }
 0x13b   : > { %v6013_v39 = vadd.f32 %v1601_v17, %v1181_v37  ;;  %v1192_v36 = vadd.f32 %v4440_v43, %v5935_v50  ;;  %v4491_v19 = vpop.f32.mrf.mxu0  ;;  %4778 = vmatmul.mubr.bf16.gmra.mxu0 %v5686_v53  ;;  %v2813_v17 = vshrl.u32 %v5939_v34, 16 }
 0x13c   : > { %v1183_v20 = vpop.f32.mrf.mxu1  ;;  %4781 = vmatprep.mubr.bf16.mxu0 %v5688_v41 }
 0x13d   : > { %v6018_v25 = vadd.f32 %v4488_v52, %v1192_v36  ;;  %v1184_v7 = vadd.f32 %v1183_v20, %v5947_v3  ;;  %v1617_v11 = vpop.f32.mrf.mxu0  ;;  %v2815_v43 = vrot.slane %v2813_v17, 4  ;;  %v2828_v20 = vrot.slane %v2826_v45, 4 }
 0x13e   : > { %v4443_v5 = vpop.f32.mrf.mxu1  ;;  %4730 = vmatmul.mubr.bf16.gmra.mxu1 %v6528_v48 }
 0x13f   : > { %v6022_v12 = vadd.f32 %v1604_v21, %v1184_v7  ;;  %v1205_v56 = vadd.f32 %v4443_v5, %v5954_v27  ;;  %v4492_v30 = vpop.f32.mrf.mxu0  ;;  %4733 = vmatprep.mubr.bf16.mxu1 %v6529_v62 }
 0x140   : > { %v1196_v50 = vpop.f32.mrf.mxu1 }
 0x141   : > { %v6026_v53 = vadd.f32 %v4491_v19, %v1205_v56  ;;  %v1197_v41 = vadd.f32 %v1196_v50, %v5957_v54  ;;  %v1620_v22 = vpop.f32.mrf.mxu0  ;;  %v2816_v54 = vshll.u32 %v5939_v34, 16  ;;  %v276_v56 = vld [vmem:[%s5014_s25 + $0xd4] sm:$0x1] }
 0x142   : > { %v4444_v4 = vpop.f32.mrf.mxu1 }
 0x143   : > { %v6029_v49 = vadd.f32 %v1617_v11, %v1197_v41  ;;  %v1208_v3 = vadd.f32 %v4444_v4, %v5962_v55  ;;  %v4495_v35 = vpop.f32.mrf.mxu0  ;;  %4782 = vmatmul.mubr.bf16.gmra.mxu0 %v5586_v47  ;;  %v2822_v55 = vshll.u32 %v5942_v8, 16 }
 0x144   : > { %v1199_v48 = vpop.f32.mrf.mxu1  ;;  %4785 = vmatprep.mubr.bf16.mxu0 %v5607_v15 }
 0x145   : > { %v6034_v27 = vadd.f32 %v4492_v30, %v1208_v3  ;;  %v1200_v62 = vadd.f32 %v1199_v48, %v5967_v18  ;;  %v1633_v24 = vpop.f32.mrf.mxu0  ;;  %v2824_v19 = vrot.slane %v2822_v55, 5  ;;  %v2832_v3 = vshll.u32 %v276_v56, 16 }
 0x146   : > { %v4447_v28 = vpop.f32.mrf.mxu1  ;;  %4734 = vmatmul.mubr.bf16.gmra.mxu1 %v6530_v16  ;;  %v2818_v16 = vrot.slane %v2816_v54, 5 }
 0x147   : > { %v6042_v47 = vadd.f32 %v1620_v22, %v1200_v62  ;;  %v1221_v15 = vadd.f32 %v4447_v28, %v5855_v63  ;;  %v4496_v52 = vpop.f32.mrf.mxu0  ;;  %4737 = vmatprep.mubr.bf16.mxu1 %v6531_v23  ;;  %v3101_v23 = vrot.slane %v5942_v8, 5  ;;  %v2829_v8 = vor.u32 %v2828_v20, %v2824_v19 }
 0x148   : > { %v1212_v18 = vpop.f32.mrf.mxu1  ;;  %v2819_v22 = vor.u32 %v2818_v16, %v2815_v43  ;;  %v3104_v62 = vrot.slane %v276_v56, 5  ;;  %v2834_v45 = vrot.slane %v2832_v3, 5  ;;  %v6547_v56 = vld [vmem:[#allocation15_spill] sm:$0xff] }
 0x149   : > { %v6046_v14 = vadd.f32 %v4495_v35, %v1221_v15  ;;  %v1213_v37 = vadd.f32 %v1212_v18, %v5866_v40  ;;  %v1636_v21 = vpop.f32.mrf.mxu0  ;;  %v3103_v48 = vrot.slane %v3101_v23, 4 }
 0x14a   : > { %v4448_v36 = vpop.f32.mrf.mxu1  ;;  %v2820_v54 = vrot.slane %v2819_v22, 4  ;;  %v6548_v22 = vld [vmem:[#allocation18_spill] sm:$0xff] }
 0x14b   : > { %v6049_v7 = vadd.f32 %v1633_v24, %v1213_v37  ;;  %v1224_v11 = vadd.f32 %v4448_v36, %v5879_v1  ;;  %v4499_v63 = vpop.f32.mrf.mxu0  ;;  %4786 = vmatmul.mubr.bf16.gmra.mxu0 %v5616_v26 }
 0x14c   : > { %v1215_v5 = vpop.f32.mrf.mxu1  ;;  %4789 = vmatprep.mubr.bf16.mxu0 %v5644_v6  ;;  %v3960_v6 = vrot.slane %v5939_v34, 9  ;;  %v2825_v43 = vsel %vm5048_vm2, %v2820_v54, %v2824_v19 }
 0x14d   : > { %v6056_v40 = vadd.f32 %v4496_v52, %v1224_v11  ;;  %v1216_v30 = vadd.f32 %v1215_v5, %v5890_v13  ;;  %v1649_v50 = vpop.f32.mrf.mxu0  ;;  %v6546_v11 = vld [vmem:[#allocation14_spill] sm:$0xff] }
 0x14e   : > { %v4451_v41 = vpop.f32.mrf.mxu1  ;;  %4738 = vmatmul.mubr.bf16.gmra.mxu1 %v6532_v51  ;;  %v3102_v52 = vsel %vm5394_vm5, %v3960_v6, %v3101_v23  ;;  %v6549_v6 = vld [vmem:[#allocation4_spill] sm:$0xff] }
 0x14f   : > { %v6060_v4 = vadd.f32 %v1636_v21, %v1216_v30  ;;  %v1237_v1 = vadd.f32 %v4451_v41, %v5903_v59  ;;  %v4500_v26 = vpop.f32.mrf.mxu0  ;;  %4741 = vmatprep.mubr.bf16.mxu1 %v6533_v58  ;;  %v2830_v58 = vrot.slane %v2829_v8, 4 }
 0x150   : > { %v1228_v35 = vpop.f32.mrf.mxu1 }
 0x151   : > { %v6065_v13 = vadd.f32 %v4499_v63, %v1237_v1  ;;  %v1229_v24 = vadd.f32 %v1228_v35, %v5908_v0  ;;  %v1652_v51 = vpop.f32.mrf.mxu0  ;;  %v3105_v0 = vsel %vm5394_vm5, %v3103_v48, %v3104_v62  ;;  %v2835_v63 = vsel %vm5048_vm2, %v2830_v58, %v2834_v45  ;;  %v6551_v58 = vld [vmem:[#allocation8_spill] sm:$0xff] }
 0x152   : > { %v4452_v17 = vpop.f32.mrf.mxu1  ;;  %v3977_v23 = vcombine.low %v3102_v52, %v3105_v0  ;;  %v3951_v41 = vcombine.low %v2825_v43, %v2835_v63  ;;  %v6552_v0 = vld [vmem:[#allocation10_spill] sm:$0xff]  ;;  %v6553_v43 = vld [vmem:[#allocation13_spill] sm:$0xff] }
 0x153   : > { %v6068_v28 = vadd.f32 %v1649_v50, %v1229_v24  ;;  %v1240_v59 = vadd.f32 %v4452_v17, %v5915_v32  ;;  %v4503_v55 = vpop.f32.mrf.mxu0  ;;  %4790 = vmatmul.mubr.bf16.gmra.mxu0 %v5655_v9 }
 0x154   : > { %v1231_v34 = vpop.f32.mrf.mxu1  ;;  %4793 = vmatprep.mubr.bf16.mxu0 %v5729_v42  ;;  %v6545_v42 = vld [vmem:[#allocation12_spill] sm:$0xff] }
 0x155   : > { %v6077_v18 = vadd.f32 %v4500_v26, %v1240_v59  ;;  %v1232_v37 = vadd.f32 %v1231_v34, %v5920_v33  ;;  %v1665_v21 = vpop.f32.mrf.mxu0 }
 0x156   : > { %v4455_v32 = vpop.f32.mrf.mxu1  ;;  %4742 = vmatmul.mubr.bf16.gmra.mxu1 %v5428_v61 }
 0x157   : > { %v6083_v16 = vadd.f32 %v1652_v51, %v1232_v37  ;;  %v1253_v36 = vadd.f32 %v4455_v32, %v6545_v42  ;;  %v4504_v20 = vpop.f32.mrf.mxu0  ;;  %4745 = vmatprep.mubr.bf16.mxu1 %v6546_v11  ;;  %v6550_v51 = vld [vmem:[#allocation6_spill] sm:$0xff] }
 0x158   : > { %v1244_v5 = vpop.f32.mrf.mxu1 }
 0x159   : > { %v6089_v33 = vadd.f32 %v4503_v55, %v1253_v36  ;;  %v1245_v30 = vadd.f32 %v1244_v5, %v6547_v56  ;;  %v1668_v61 = vpop.f32.mrf.mxu0 }
 0x15a   : > { %v4456_v50 = vpop.f32.mrf.mxu1 }
 0x15b   : > { %v6092_v19 = vadd.f32 %v1665_v21, %v1245_v30  ;;  %v1256_v1 = vadd.f32 %v4456_v50, %v6548_v22  ;;  %v4507_v26 = vpop.f32.mrf.mxu0  ;;  %4794 = vmatmul.mubr.bf16.gmra.mxu0 %v3977_v23 }
 0x15c   : > { %v1247_v8 = vpop.f32.mrf.mxu1 }
 0x15d   : > { %v6095_v3 = vadd.f32 %v4504_v20, %v1256_v1  ;;  %v1248_v35 = vadd.f32 %v1247_v8, %v6549_v6  ;;  %v1681_v48 = vpop.f32.mrf.mxu0 }
 0x15e   : > { %v4459_v62 = vpop.f32.mrf.mxu1  ;;  %4746 = vmatmul.mubr.bf16.gmra.mxu1 %v3951_v41 }
 0x15f   : > { %v6098_v24 = vadd.f32 %v1668_v61, %v1248_v35  ;;  %v1269_v17 = vadd.f32 %v4459_v62, %v6550_v51  ;;  %v4508_v54 = vpop.f32.mrf.mxu0 }
 0x160   : > { %v1260_v59 = vpop.f32.mrf.mxu1 }
 0x161   : > { %v6101_v55 = vadd.f32 %v4507_v26, %v1269_v17  ;;  %v1261_v45 = vadd.f32 %v1260_v59, %v6551_v58  ;;  %v1684_v34 = vpop.f32.mrf.mxu0 }
 0x162   : > { %v4460_v15 = vpop.f32.mrf.mxu1 }
 0x163   : > { %v6104_v52 = vadd.f32 %v1681_v48, %v1261_v45  ;;  %v1272_v37 = vadd.f32 %v4460_v15, %v6552_v0  ;;  %v4575_v21 = vpop.f32.mrf.mxu0 }
 0x164   : > { %v1263_v32 = vpop.f32.mrf.mxu1 }
 0x165   : > { %v6107_v9 = vadd.f32 %v4508_v54, %v1272_v37  ;;  %v1264_v42 = vadd.f32 %v1263_v32, %v6553_v43  ;;  %v2119_v36 = vpop.f32.mrf.mxu0 }
 0x166   : > { %v4527_v20 = vpop.f32.mrf.mxu1 }
 0x167   : > { %v6110_v11 = vadd.f32 %v1684_v34, %v1264_v42  ;;  %v1962_v63 = vadd.f32 %v4527_v20, %v5978_v31  ;;  %v4576_v23 = vpop.f32.mrf.mxu0 }
 0x168   : > { %v1833_v5 = vpop.f32.mrf.mxu1 }
 0x169   : > { %v6113_v56 = vadd.f32 %v4575_v21, %v1962_v63  ;;  %v1960_v30 = vadd.f32 %v1833_v5, %v5981_v29  ;;  %v2122_v61 = vpop.f32.mrf.mxu0 }
 0x16a   : > { %v4528_v50 = vpop.f32.mrf.mxu1 }
 0x16b   : > { %v6116_v41 = vadd.f32 %v2119_v36, %v1960_v30  ;;  %v1963_v22 = vadd.f32 %v4528_v50, %v5986_v44  ;;  %v4579_v1 = vpop.f32.mrf.mxu0 }
 0x16c   : > { %v1836_v26 = vpop.f32.mrf.mxu1 }
 0x16d   : > { %v6119_v8 = vadd.f32 %v4576_v23, %v1963_v22  ;;  %v1961_v6 = vadd.f32 %v1836_v26, %v5990_v57  ;;  %v2135_v35 = vpop.f32.mrf.mxu0 }
 0x16e   : > { %v4531_v31 = vpop.f32.mrf.mxu1 }
 0x16f   : > { %v6122_v48 = vadd.f32 %v2122_v61, %v1961_v6  ;;  %v1966_v62 = vadd.f32 %v4531_v31, %v5994_v2  ;;  %v4580_v51 = vpop.f32.mrf.mxu0 }
 0x170   : > { %v1849_v29 = vpop.f32.mrf.mxu1 }
 0x171   : > { %v6125_v17 = vadd.f32 %v4579_v1, %v1966_v62  ;;  %v1964_v54 = vadd.f32 %v1849_v29, %v5997_v10  ;;  %v2138_v59 = vpop.f32.mrf.mxu0 }
 0x172   : > { %v4532_v44 = vpop.f32.mrf.mxu1 }
 0x173   : > { %v6128_v58 = vadd.f32 %v2135_v35, %v1964_v54  ;;  %v1967_v45 = vadd.f32 %v4532_v44, %v6002_v38  ;;  %v4583_v34 = vpop.f32.mrf.mxu0 }
 0x174   : > { %v1852_v57 = vpop.f32.mrf.mxu1 }
 0x175   : > { %v6131_v15 = vadd.f32 %v4580_v51, %v1967_v45  ;;  %v1965_v0 = vadd.f32 %v1852_v57, %v6006_v60  ;;  %v2151_v37 = vpop.f32.mrf.mxu0 }
 0x176   : > { %v4535_v2 = vpop.f32.mrf.mxu1 }
 0x177   : > { %v6134_v21 = vadd.f32 %v2138_v59, %v1965_v0  ;;  %v1970_v32 = vadd.f32 %v4535_v2, %v6010_v46  ;;  %v4584_v43 = vpop.f32.mrf.mxu0 }
 0x178   : > { %v1865_v10 = vpop.f32.mrf.mxu1 }
 0x179   : > { %v6137_v42 = vadd.f32 %v4583_v34, %v1970_v32  ;;  %v1968_v36 = vadd.f32 %v1865_v10, %v6013_v39  ;;  %v2154_v20 = vpop.f32.mrf.mxu0 }
 0x17a   : > { %v4536_v38 = vpop.f32.mrf.mxu1 }
 0x17b   : > { %v6140_v63 = vadd.f32 %v2151_v37, %v1968_v36  ;;  %v1971_v23 = vadd.f32 %v4536_v38, %v6018_v25  ;;  %v4587_v5 = vpop.f32.mrf.mxu0 }
 0x17c   : > { %v1868_v60 = vpop.f32.mrf.mxu1 }
 0x17d   : > { %v6143_v30 = vadd.f32 %v4584_v43, %v1971_v23  ;;  %v1969_v61 = vadd.f32 %v1868_v60, %v6022_v12  ;;  %v2167_v50 = vpop.f32.mrf.mxu0 }
 0x17e   : > { %v4539_v46 = vpop.f32.mrf.mxu1 }
 0x17f   : > { %v6146_v22 = vadd.f32 %v2154_v20, %v1969_v61  ;;  %v1974_v1 = vadd.f32 %v4539_v46, %v6026_v53  ;;  %v4588_v26 = vpop.f32.mrf.mxu0 }
 0x180   : > { %v1881_v39 = vpop.f32.mrf.mxu1 }
 0x181   : > { %v6149_v6 = vadd.f32 %v4587_v5, %v1974_v1  ;;  %v1972_v35 = vadd.f32 %v1881_v39, %v6029_v49  ;;  %v2170_v31 = vpop.f32.mrf.mxu0 }
 0x182   : > { %v4540_v25 = vpop.f32.mrf.mxu1 }
 0x183   : > { %v6152_v62 = vadd.f32 %v2167_v50, %v1972_v35  ;;  %v1975_v51 = vadd.f32 %v4540_v25, %v6034_v27  ;;  %v4591_v29 = vpop.f32.mrf.mxu0 }
 0x184   : > { %v1884_v12 = vpop.f32.mrf.mxu1 }
 0x185   : > { %v6155_v54 = vadd.f32 %v4588_v26, %v1975_v51  ;;  %v1973_v59 = vadd.f32 %v1884_v12, %v6042_v47  ;;  %v2183_v44 = vpop.f32.mrf.mxu0 }
 0x186   : > { %v4543_v53 = vpop.f32.mrf.mxu1 }
 0x187   : > { %v6158_v45 = vadd.f32 %v2170_v31, %v1973_v59  ;;  %v1978_v34 = vadd.f32 %v4543_v53, %v6046_v14  ;;  %v4592_v57 = vpop.f32.mrf.mxu0 }
 0x188   : > { %v1897_v49 = vpop.f32.mrf.mxu1 }
 0x189   : > { %v6161_v0 = vadd.f32 %v4591_v29, %v1978_v34  ;;  %v1976_v37 = vadd.f32 %v1897_v49, %v6049_v7  ;;  %v2186_v2 = vpop.f32.mrf.mxu0 }
 0x18a   : > { %v4544_v27 = vpop.f32.mrf.mxu1 }
 0x18b   : > { %v6164_v32 = vadd.f32 %v2183_v44, %v1976_v37  ;;  %v1979_v43 = vadd.f32 %v4544_v27, %v6056_v40  ;;  %v4595_v10 = vpop.f32.mrf.mxu0 }
 0x18c   : > { %v1900_v47 = vpop.f32.mrf.mxu1 }
 0x18d   : > { %v6167_v36 = vadd.f32 %v4592_v57, %v1979_v43  ;;  %v1977_v20 = vadd.f32 %v1900_v47, %v6060_v4  ;;  %v2199_v38 = vpop.f32.mrf.mxu0 }
 0x18e   : > { %v4547_v14 = vpop.f32.mrf.mxu1 }
 0x18f   : > { %v6170_v23 = vadd.f32 %v2186_v2, %v1977_v20  ;;  %v1982_v5 = vadd.f32 %v4547_v14, %v6065_v13  ;;  %v4596_v60 = vpop.f32.mrf.mxu0 }
 0x190   : > { %v1913_v7 = vpop.f32.mrf.mxu1 }
 0x191   : > { %v6173_v61 = vadd.f32 %v4595_v10, %v1982_v5  ;;  %v1980_v50 = vadd.f32 %v1913_v7, %v6068_v28  ;;  %v2202_v46 = vpop.f32.mrf.mxu0 }
 0x192   : > { %v4548_v40 = vpop.f32.mrf.mxu1 }
 0x193   : > { %v6176_v1 = vadd.f32 %v2199_v38, %v1980_v50  ;;  %v1983_v26 = vadd.f32 %v4548_v40, %v6077_v18  ;;  %v4599_v39 = vpop.f32.mrf.mxu0 }
 0x194   : > { %v1916_v4 = vpop.f32.mrf.mxu1 }
 0x195   : > { %v6179_v35 = vadd.f32 %v4596_v60, %v1983_v26  ;;  %v1981_v31 = vadd.f32 %v1916_v4, %v6083_v16  ;;  %v2215_v25 = vpop.f32.mrf.mxu0 }
 0x196   : > { %v4551_v13 = vpop.f32.mrf.mxu1 }
 0x197   : > { %v6182_v51 = vadd.f32 %v2202_v46, %v1981_v31  ;;  %v1986_v29 = vadd.f32 %v4551_v13, %v6089_v33  ;;  %v4600_v12 = vpop.f32.mrf.mxu0 }
 0x198   : > { %v1929_v28 = vpop.f32.mrf.mxu1 }
 0x199   : > { %v6185_v59 = vadd.f32 %v4599_v39, %v1986_v29  ;;  %v1984_v44 = vadd.f32 %v1929_v28, %v6092_v19  ;;  %v2218_v53 = vpop.f32.mrf.mxu0 }
 0x19a   : > { %v4552_v18 = vpop.f32.mrf.mxu1 }
 0x19b   : > { %v6188_v34 = vadd.f32 %v2215_v25, %v1984_v44  ;;  %v1987_v57 = vadd.f32 %v4552_v18, %v6095_v3  ;;  %v4603_v49 = vpop.f32.mrf.mxu0 }
 0x19c   : > { %v1932_v16 = vpop.f32.mrf.mxu1 }
 0x19d   : > { %v6191_v37 = vadd.f32 %v4600_v12, %v1987_v57  ;;  %v1985_v2 = vadd.f32 %v1932_v16, %v6098_v24  ;;  %v2231_v27 = vpop.f32.mrf.mxu0 }
 0x19e   : > { %v4555_v33 = vpop.f32.mrf.mxu1 }
 0x19f   : > { %6554 = vst [vmem:[#allocation17_spill] sm:$0xff] %v6191_v37  ;;  %v6194_v43 = vadd.f32 %v2218_v53, %v1985_v2  ;;  %v1990_v10 = vadd.f32 %v4555_v33, %v6101_v55  ;;  %v4604_v47 = vpop.f32.mrf.mxu0 }
 0x1a0   : > { %v1945_v19 = vpop.f32.mrf.mxu1 }
 0x1a1   : > { %6555 = vst [vmem:[#allocation3_spill] sm:$0xff] %v6194_v43  ;;  %v6197_v20 = vadd.f32 %v4603_v49, %v1990_v10  ;;  %v1988_v38 = vadd.f32 %v1945_v19, %v6104_v52  ;;  %v2234_v14 = vpop.f32.mrf.mxu0 }
 0x1a2   : > { %v4556_v3 = vpop.f32.mrf.mxu1 }
 0x1a3   : > { %v6200_v5 = vadd.f32 %v2231_v27, %v1988_v38  ;;  %v1991_v60 = vadd.f32 %v4556_v3, %v6107_v9  ;;  %v4671_v7 = vpop.f32.mrf.mxu0 }
 0x1a4   : > { %v1948_v24 = vpop.f32.mrf.mxu1 }
 0x1a5   : > { %v6203_v50 = vadd.f32 %v4604_v47, %v1991_v60  ;;  %v1989_v46 = vadd.f32 %v1948_v24, %v6110_v11  ;;  %v2653_v40 = vpop.f32.mrf.mxu0 }
 0x1a6   : > { %v4623_v55 = vpop.f32.mrf.mxu1 }
 0x1a7   : > { %6556 = vst [vmem:[#allocation5_spill] sm:$0xff] %v6203_v50  ;;  %v6206_v26 = vadd.f32 %v2234_v14, %v1989_v46  ;;  %v2518_v39 = vadd.f32 %v4623_v55, %v6113_v56  ;;  %v6209_v4 = vpop.f32.mrf.mxu0 }
 0x1a8   : > { %v2389_v52 = vpop.f32.mrf.mxu1 }
 0x1a9   : > { %6557 = vst [vmem:[#allocation7_spill] sm:$0xff] %v6206_v26  ;;  %v6211_v31 = vadd.f32 %v4671_v7, %v2518_v39  ;;  %v2516_v25 = vadd.f32 %v2389_v52, %v6116_v41  ;;  %v6214_v9 = vpop.f32.mrf.mxu0 }
 0x1aa   : > { %v6216_v13 = vpop.f32.mrf.mxu1 }
 0x1ab   : > { %v6218_v29 = vadd.f32 %v2653_v40, %v2516_v25  ;;  %v4675_v11 = vpop.f32.mrf.mxu0 }
 0x1ac   : > { %v6220_v12 = vpop.f32.mrf.mxu1 }
 0x1ad   : > { %v2669_v28 = vpop.f32.mrf.mxu0 }
 0x1ae   : > { %v4627_v44 = vpop.f32.mrf.mxu1 }
 0x1af   : > { %v2522_v56 = vadd.f32 %v4627_v44, %v6125_v17  ;;  %v6223_v53 = vpop.f32.mrf.mxu0 }
 0x1b0   : > { %v2405_v18 = vpop.f32.mrf.mxu1 }
 0x1b1   : > { %v6225_v57 = vadd.f32 %v4675_v11, %v2522_v56  ;;  %v2520_v41 = vadd.f32 %v2405_v18, %v6128_v58  ;;  %v6228_v49 = vpop.f32.mrf.mxu0 }
 0x1b2   : > { %v6230_v16 = vpop.f32.mrf.mxu1 }
 0x1b3   : > { %v6232_v2 = vadd.f32 %v2669_v28, %v2520_v41  ;;  %v4679_v27 = vpop.f32.mrf.mxu0 }
 0x1b4   : > { %v6234_v33 = vpop.f32.mrf.mxu1 }
 0x1b5   : > { %v2685_v10 = vpop.f32.mrf.mxu0 }
 0x1b6   : > { %v4631_v47 = vpop.f32.mrf.mxu1 }
 0x1b7   : > { %v2526_v17 = vadd.f32 %v4631_v47, %v6137_v42  ;;  %v6237_v19 = vpop.f32.mrf.mxu0 }
 0x1b8   : > { %v2421_v38 = vpop.f32.mrf.mxu1 }
 0x1b9   : > { %v6239_v14 = vadd.f32 %v4679_v27, %v2526_v17  ;;  %v2524_v58 = vadd.f32 %v2421_v38, %v6140_v63  ;;  %v6242_v3 = vpop.f32.mrf.mxu0 }
 0x1ba   : > { %v6244_v60 = vpop.f32.mrf.mxu1 }
 0x1bb   : > { %v6246_v7 = vadd.f32 %v2685_v10, %v2524_v58  ;;  %v4683_v24 = vpop.f32.mrf.mxu0 }
 0x1bc   : > { %v6248_v46 = vpop.f32.mrf.mxu1 }
 0x1bd   : > { %v2701_v40 = vpop.f32.mrf.mxu0 }
 0x1be   : > { %v4635_v55 = vpop.f32.mrf.mxu1 }
 0x1bf   : > { %v2530_v42 = vadd.f32 %v4635_v55, %v6149_v6  ;;  %v6251_v39 = vpop.f32.mrf.mxu0 }
 0x1c0   : > { %v2437_v52 = vpop.f32.mrf.mxu1 }
 0x1c1   : > { %v6253_v25 = vadd.f32 %v4683_v24, %v2530_v42  ;;  %v2528_v63 = vadd.f32 %v2437_v52, %v6152_v62  ;;  %v6256_v11 = vpop.f32.mrf.mxu0 }
 0x1c2   : > { %v6258_v28 = vpop.f32.mrf.mxu1 }
 0x1c3   : > { %v6260_v44 = vadd.f32 %v2701_v40, %v2528_v63  ;;  %v4687_v56 = vpop.f32.mrf.mxu0 }
 0x1c4   : > { %v6262_v18 = vpop.f32.mrf.mxu1 }
 0x1c5   : > { %v2717_v41 = vpop.f32.mrf.mxu0 }
 0x1c6   : > { %v4639_v27 = vpop.f32.mrf.mxu1 }
 0x1c7   : > { %v2534_v6 = vadd.f32 %v4639_v27, %v6161_v0  ;;  %v6265_v10 = vpop.f32.mrf.mxu0 }
 0x1c8   : > { %v2453_v47 = vpop.f32.mrf.mxu1 }
 0x1c9   : > { %v6267_v17 = vadd.f32 %v4687_v56, %v2534_v6  ;;  %v2532_v62 = vadd.f32 %v2453_v47, %v6164_v32  ;;  %v6270_v38 = vpop.f32.mrf.mxu0 }
 0x1ca   : > { %v6272_v58 = vpop.f32.mrf.mxu1 }
 0x1cb   : > { %v6274_v24 = vadd.f32 %v2717_v41, %v2532_v62  ;;  %v4691_v40 = vpop.f32.mrf.mxu0 }
 0x1cc   : > { %v6276_v55 = vpop.f32.mrf.mxu1 }
 0x1cd   : > { %v2733_v42 = vpop.f32.mrf.mxu0 }
 0x1ce   : > { %v4643_v52 = vpop.f32.mrf.mxu1 }
 0x1cf   : > { %v2538_v0 = vadd.f32 %v4643_v52, %v6173_v61  ;;  %v6279_v63 = vpop.f32.mrf.mxu0 }
 0x1d0   : > { %6558 = vst [vmem:[#allocation9_spill] sm:$0xff] %v6279_v63  ;;  %v2469_v27 = vpop.f32.mrf.mxu1 }
 0x1d1   : > { %v6281_v56 = vadd.f32 %v4691_v40, %v2538_v0  ;;  %v2536_v32 = vadd.f32 %v2469_v27, %v6176_v1  ;;  %v6284_v6 = vpop.f32.mrf.mxu0 }
 0x1d2   : > { %6559 = vst [vmem:[#allocation11_spill] sm:$0xff] %v6284_v6  ;;  %v6286_v47 = vpop.f32.mrf.mxu1 }
 0x1d3   : > { %v6288_v41 = vadd.f32 %v2733_v42, %v2536_v32  ;;  %v4695_v62 = vpop.f32.mrf.mxu0 }
 0x1d4   : > { %v6290_v26 = vpop.f32.mrf.mxu1 }
 0x1d5   : > { %6560 = vst [vmem:[#allocation16_spill] sm:$0xff] %v6288_v41  ;;  %v2749_v50 = vpop.f32.mrf.mxu0 }
 0x1d6   : > { %v4647_v43 = vpop.f32.mrf.mxu1 }
 0x1d7   : > { %v2542_v61 = vadd.f32 %v4647_v43, %v6185_v59  ;;  %v6293_v52 = vpop.f32.mrf.mxu0 }
 0x1d8   : > { %6561 = vst [vmem:[#allocation19_spill] sm:$0xff] %v6293_v52  ;;  %v2485_v37 = vpop.f32.mrf.mxu1 }
 0x1d9   : > { %v6295_v40 = vadd.f32 %v4695_v62, %v2542_v61  ;;  %v2540_v1 = vadd.f32 %v2485_v37, %v6188_v34  ;;  %v6298_v0 = vpop.f32.mrf.mxu0 }
 0x1da   : > { %6562 = vst [vmem:[#allocation20_spill] sm:$0xff] %v6298_v0  ;;  %v6300_v27 = vpop.f32.mrf.mxu1 }
 0x1db   : > { %v6302_v42 = vadd.f32 %v2749_v50, %v2540_v1  ;;  %v4699_v32 = vpop.f32.mrf.mxu0 }
 0x1dc   : > { %v6304_v6 = vpop.f32.mrf.mxu1 }
 0x1dd   : > { %6563 = vst [vmem:[#allocation2_spill] sm:$0xff] %v6302_v42  ;;  %v2765_v41 = vpop.f32.mrf.mxu0  ;;  %v2519_v42 = vadd.f32 %v6216_v13, %v6119_v8  ;;  %v6330_v8 = vld [vmem:[%s6454_s2] ss:$0 sm:$0xff] }
 0x1de   : > { %v4651_v63 = vpop.f32.mrf.mxu1 }
 0x1df   : > { %v2546_v59 = vadd.f32 %v4651_v63, %v6197_v20  ;;  %v6307_v43 = vpop.f32.mrf.mxu0 }
 0x1e0   : > { %6564 = vst [vmem:[#allocation12_spill] sm:$0xff] %v6307_v43  ;;  %v2501_v52 = vpop.f32.mrf.mxu1 }
 0x1e1   : > { %v6309_v62 = vadd.f32 %v4699_v32, %v2546_v59  ;;  %v2544_v34 = vadd.f32 %v2501_v52, %v6200_v5  ;;  %v6312_v37 = vpop.f32.mrf.mxu0  ;;  %v2517_v32 = vadd.f32 %v6220_v12, %v6122_v48 }
 0x1e2   : > { %6566 = vst [vmem:[#allocation15_spill] sm:$0xff] %v6312_v37  ;;  %v6314_v61 = vpop.f32.mrf.mxu1  ;;  %v2783_v37 = vadd.f32 %v6209_v4, %v2519_v42 }
 0x1e3   : > { %6565 = vst [vmem:[#allocation14_spill] sm:$0xff] %v6309_v62  ;;  %v6316_v50 = vadd.f32 %v2765_v41, %v2544_v34  ;;  %v4767_v1 = vpop.f32.mrf.mxu0 }
 0x1e4   : > { %v6318_v0 = vpop.f32.mrf.mxu1 }
 0x1e5   : > { %6567 = vst [vmem:[#allocation18_spill] sm:$0xff] %v6316_v50  ;;  %6568 = vst [vmem:[#allocation4_spill] sm:$0xff] %v6318_v0  ;;  %v3209_v20 = vpop.f32.mrf.mxu0  ;;  %v2781_v50 = vadd.f32 %v6214_v9, %v2517_v32 }
 0x1e6   : > { %v4719_v63 = vpop.f32.mrf.mxu1 }
 0x1e7   : > { %v3068_v59 = vadd.f32 %v4719_v63, %v6211_v31  ;;  %v4768_v5 = vpop.f32.mrf.mxu0 }
 0x1e8   : > { %v2939_v52 = vpop.f32.mrf.mxu1 }
 0x1e9   : > { %v3338_v43 = vadd.f32 %v4767_v1, %v3068_v59  ;;  %v3066_v41 = vadd.f32 %v2939_v52, %v6218_v29  ;;  %v3212_v34 = vpop.f32.mrf.mxu0  ;;  %v2523_v29 = vadd.f32 %v6230_v16, %v6131_v15  ;;  %v2521_v59 = vadd.f32 %v6234_v33, %v6134_v21 }
 0x1ea   : > { %v4720_v13 = vpop.f32.mrf.mxu1 }
 0x1eb   : > { %v3336_v48 = vadd.f32 %v3209_v20, %v3066_v41  ;;  %v3069_v12 = vadd.f32 %v4720_v13, %v2783_v37  ;;  %v4771_v31 = vpop.f32.mrf.mxu0  ;;  %v3377_v62 = vadd.f32 %v6330_v8, %v3338_v43  ;;  %v2787_v21 = vadd.f32 %v6223_v53, %v2523_v29 }
 0x1ec   : > { %v2942_v63 = vpop.f32.mrf.mxu1  ;;  %v2785_v33 = vadd.f32 %v6228_v49, %v2521_v59  ;;  %v2527_v53 = vadd.f32 %v6244_v60, %v6143_v30 }
 0x1ed   : > { %v3339_v4 = vadd.f32 %v4768_v5, %v3069_v12  ;;  %v3067_v42 = vadd.f32 %v2942_v63, %v2781_v50  ;;  %v3225_v1 = vpop.f32.mrf.mxu0  ;;  %v3375_v0 = vadd.f32 %v6330_v8, %v3336_v48  ;;  %v3409_v5 = vmax.f32 %v3377_v62, 0.0 }
 0x1ee   : > { %v4723_v52 = vpop.f32.mrf.mxu1 }
 0x1ef   : > { %v3378_v9 = vadd.f32 %v6330_v8, %v3339_v4  ;;  %v3337_v37 = vadd.f32 %v3212_v34, %v3067_v42  ;;  %v3072_v20 = vadd.f32 %v4723_v52, %v6225_v57  ;;  %v4772_v32 = vpop.f32.mrf.mxu0  ;;  %v3407_v62 = vmax.f32 %v3375_v0, 0.0 }
 0x1f0   : > { %v2955_v43 = vpop.f32.mrf.mxu1 }
 0x1f1   : > { %v3410_v50 = vmax.f32 %v3378_v9, 0.0  ;;  %v3376_v41 = vadd.f32 %v6330_v8, %v3337_v37  ;;  %v3070_v15 = vadd.f32 %v2955_v43, %v6232_v2  ;;  %v3228_v16 = vpop.f32.mrf.mxu0  ;;  %v3342_v57 = vadd.f32 %v4771_v31, %v3072_v20 }
 0x1f2   : > { %v4724_v34 = vpop.f32.mrf.mxu1  ;;  %v2525_v20 = vadd.f32 %v6248_v46, %v6146_v22  ;;  %v2791_v43 = vadd.f32 %v6237_v19, %v2527_v53  ;;  %v2531_v19 = vadd.f32 %v6258_v28, %v6155_v54  ;;  %v2529_v53 = vadd.f32 %v6262_v18, %v6158_v45 }
 0x1f3   : > { %v4062_v13 = vpack.c.bf16 %v3410_v50, %v3409_v5  ;;  %v3408_v48 = vmax.f32 %v3376_v41, 0.0  ;;  %v3340_v12 = vadd.f32 %v3225_v1, %v3070_v15  ;;  %v4775_v63 = vpop.f32.mrf.mxu0  ;;  %v3073_v2 = vadd.f32 %v4724_v34, %v2787_v21 }
 0x1f4   : > { %v2958_v4 = vpop.f32.mrf.mxu1  ;;  %v3381_v59 = vadd.f32 %v6330_v8, %v3342_v57  ;;  %v2789_v46 = vadd.f32 %v6242_v3, %v2525_v20  ;;  %v2795_v28 = vadd.f32 %v6251_v39, %v2531_v19 }
 0x1f5   : > { %4134 = vst [vmem:[%s6349_s8 + $0x8] sm:$0xff] %v4062_v13   ;;  %v4057_v49 = vpack.c.bf16 %v3408_v48, %v3407_v62  ;;  %v3071_v42 = vadd.f32 %v2958_v4, %v2785_v33  ;;  %v3241_v29 = vpop.f32.mrf.mxu0  ;;  %v3343_v52 = vadd.f32 %v4772_v32, %v3073_v2  ;;  %v3379_v0 = vadd.f32 %v6330_v8, %v3340_v12 }
 0x1f6   : > { %v4727_v31 = vpop.f32.mrf.mxu1  ;;  %v3413_v15 = vmax.f32 %v3381_v59, 0.0 }
 0x1f7   : > { %4058 = vst [vmem:[%s6349_s8] sm:$0xff] %v4057_v49   ;;  %v3341_v9 = vadd.f32 %v3228_v16, %v3071_v42  ;;  %v3076_v1 = vadd.f32 %v4727_v31, %v6239_v14  ;;  %v4776_v37 = vpop.f32.mrf.mxu0  ;;  %v3382_v30 = vadd.f32 %v6330_v8, %v3343_v52  ;;  %v3411_v14 = vmax.f32 %v3379_v0, 0.0 }
 0x1f8   : > { %v2971_v60 = vpop.f32.mrf.mxu1 }
 0x1f9   : > { %v3380_v5 = vadd.f32 %v6330_v8, %v3341_v9  ;;  %v3346_v50 = vadd.f32 %v4775_v63, %v3076_v1  ;;  %v3074_v32 = vadd.f32 %v2971_v60, %v6246_v7  ;;  %v3244_v41 = vpop.f32.mrf.mxu0  ;;  %v3414_v16 = vmax.f32 %v3382_v30, 0.0 }
 0x1fa   : > { %v4728_v21 = vpop.f32.mrf.mxu1 }
 0x1fb   : > { %v3412_v33 = vmax.f32 %v3380_v5, 0.0  ;;  %v3077_v57 = vadd.f32 %v4728_v21, %v2791_v43  ;;  %v4779_v22 = vpop.f32.mrf.mxu0  ;;  %v4072_v34 = vpack.c.bf16 %v3414_v16, %v3413_v15  ;;  %v3344_v62 = vadd.f32 %v3241_v29, %v3074_v32 }
 0x1fc   : > { %v2974_v13 = vpop.f32.mrf.mxu1  ;;  %v3385_v7 = vadd.f32 %v6330_v8, %v3346_v50  ;;  %v2535_v15 = vadd.f32 %v6272_v58, %v6167_v36 }
 0x1fd   : > { %v4067_v48 = vpack.c.bf16 %v3412_v33, %v3411_v14  ;;  %v3347_v12 = vadd.f32 %v4776_v37, %v3077_v57  ;;  %v3257_v63 = vpop.f32.mrf.mxu0  ;;  %4136 = vst [vmem:[%s6349_s8 + $0x18] sm:$0xff] %v4072_v34   ;;  %v3075_v2 = vadd.f32 %v2974_v13, %v2789_v46  ;;  %v3383_v42 = vadd.f32 %v6330_v8, %v3344_v62 }
 0x1fe   : > { %v4731_v4 = vpop.f32.mrf.mxu1  ;;  %v3417_v52 = vmax.f32 %v3385_v7, 0.0  ;;  %v2793_v37 = vadd.f32 %v6256_v11, %v2529_v53  ;;  %v2533_v11 = vadd.f32 %v6276_v55, %v6170_v23  ;;  %v2799_v55 = vadd.f32 %v6265_v10, %v2535_v15 }
 0x1ff   : > { %4135 = vst [vmem:[%s6349_s8 + $0x10] sm:$0xff] %v4067_v48   ;;  %v3386_v3 = vadd.f32 %v6330_v8, %v3347_v12  ;;  %v3080_v49 = vadd.f32 %v4731_v4, %v6253_v25  ;;  %v4780_v54 = vpop.f32.mrf.mxu0  ;;  %v3345_v29 = vadd.f32 %v3244_v41, %v3075_v2  ;;  %v3415_v60 = vmax.f32 %v3383_v42, 0.0 }
 0x200   : > { %v2987_v59 = vpop.f32.mrf.mxu1  ;;  %v2797_v13 = vadd.f32 %v6270_v38, %v2533_v11 }
 0x201   : > { %v3418_v31 = vmax.f32 %v3386_v3, 0.0  ;;  %v3350_v0 = vadd.f32 %v4779_v22, %v3080_v49  ;;  %v3078_v9 = vadd.f32 %v2987_v59, %v6260_v44  ;;  %v3260_v1 = vpop.f32.mrf.mxu0  ;;  %v3384_v45 = vadd.f32 %v6330_v8, %v3345_v29 }
 0x202   : > { %v4732_v18 = vpop.f32.mrf.mxu1  ;;  %v2539_v49 = vadd.f32 %v6286_v47, %v6179_v35 }
 0x203   : > { %v4082_v25 = vpack.c.bf16 %v3418_v31, %v3417_v52  ;;  %v3348_v20 = vadd.f32 %v3257_v63, %v3078_v9  ;;  %v3081_v30 = vadd.f32 %v4732_v18, %v2795_v28  ;;  %v4783_v39 = vpop.f32.mrf.mxu0  ;;  %v3416_v43 = vmax.f32 %v3384_v45, 0.0  ;;  %v6569_v9 = vld [vmem:[#allocation9_spill] sm:$0xff] }
 0x204   : > { %v2990_v5 = vpop.f32.mrf.mxu1  ;;  %v3389_v50 = vadd.f32 %v6330_v8, %v3350_v0  ;;  %v2537_v0 = vadd.f32 %v6290_v26, %v6182_v51  ;;  %v6571_v26 = vld [vmem:[#allocation11_spill] sm:$0xff] }
 0x205   : > { %4138 = vst [vmem:[%s6349_s8 + $0x28] sm:$0xff] %v4082_v25   ;;  %v3351_v32 = vadd.f32 %v4780_v54, %v3081_v30  ;;  %v3079_v41 = vadd.f32 %v2990_v5, %v2793_v37  ;;  %v3273_v44 = vpop.f32.mrf.mxu0  ;;  %v4077_v16 = vpack.c.bf16 %v3416_v43, %v3415_v60  ;;  %v3387_v14 = vadd.f32 %v6330_v8, %v3348_v20  ;;  %v6570_v37 = vld [vmem:[#allocation16_spill] sm:$0xff] }
 0x206   : > { %v4735_v21 = vpop.f32.mrf.mxu1  ;;  %v3421_v34 = vmax.f32 %v3389_v50, 0.0  ;;  %v2801_v50 = vadd.f32 %v6571_v26, %v2537_v0  ;;  %v6578_v0 = vld [vmem:[#allocation7_spill] sm:$0xff] }
 0x207   : > { %v3390_v33 = vadd.f32 %v6330_v8, %v3351_v32  ;;  %v3349_v57 = vadd.f32 %v3260_v1, %v3079_v41  ;;  %v3084_v22 = vadd.f32 %v4735_v21, %v6267_v17  ;;  %v4784_v46 = vpop.f32.mrf.mxu0  ;;  %4137 = vst [vmem:[%s6349_s8 + $0x20] sm:$0xff] %v4077_v16   ;;  %v3419_v12 = vmax.f32 %v3387_v14, 0.0  ;;  %v6572_v32 = vld [vmem:[#allocation17_spill] sm:$0xff] }
 0x208   : > { %v3003_v19 = vpop.f32.mrf.mxu1  ;;  %v2803_v1 = vadd.f32 %v6569_v9, %v2539_v49  ;;  %v2543_v41 = vadd.f32 %v6300_v27, %v6572_v32 }
 0x209   : > { %v3422_v62 = vmax.f32 %v3390_v33, 0.0  ;;  %v3388_v36 = vadd.f32 %v6330_v8, %v3349_v57  ;;  %v3082_v58 = vadd.f32 %v3003_v19, %v6274_v24  ;;  %v3276_v23 = vpop.f32.mrf.mxu0  ;;  %v3354_v48 = vadd.f32 %v4783_v39, %v3084_v22 }
 0x20a   : > { %v4736_v7 = vpop.f32.mrf.mxu1 }
 0x20b   : > { %v4092_v17 = vpack.c.bf16 %v3422_v62, %v3421_v34  ;;  %v3420_v63 = vmax.f32 %v3388_v36, 0.0  ;;  %v3352_v2 = vadd.f32 %v3273_v44, %v3082_v58  ;;  %v4787_v4 = vpop.f32.mrf.mxu0  ;;  %v3085_v53 = vadd.f32 %v4736_v7, %v2799_v55  ;;  %v6574_v36 = vld [vmem:[#allocation19_spill] sm:$0xff] }
 0x20c   : > { %v3006_v3 = vpop.f32.mrf.mxu1  ;;  %v3393_v10 = vadd.f32 %v6330_v8, %v3354_v48  ;;  %v2807_v58 = vadd.f32 %v6574_v36, %v2543_v41 }
 0x20d   : > { %4140 = vst [vmem:[%s6349_s8 + $0x38] sm:$0xff] %v4092_v17   ;;  %v4087_v24 = vpack.c.bf16 %v3420_v63, %v3419_v12  ;;  %v3083_v54 = vadd.f32 %v3006_v3, %v2797_v13  ;;  %v3289_v28 = vpop.f32.mrf.mxu0  ;;  %v3355_v38 = vadd.f32 %v4784_v46, %v3085_v53  ;;  %v3391_v29 = vadd.f32 %v6330_v8, %v3352_v2  ;;  %v6573_v46 = vld [vmem:[#allocation3_spill] sm:$0xff]  ;;  %v6575_v17 = vld [vmem:[#allocation2_spill] sm:$0xff]  ;;  %v6576_v53 = vld [vmem:[#allocation20_spill] sm:$0xff] }
 0x20e   : > { %v4739_v42 = vpop.f32.mrf.mxu1  ;;  %v3425_v30 = vmax.f32 %v3393_v10, 0.0  ;;  %v2541_v19 = vadd.f32 %v6304_v6, %v6573_v46 }
 0x20f   : > { %4139 = vst [vmem:[%s6349_s8 + $0x30] sm:$0xff] %v4087_v24   ;;  %v3353_v59 = vadd.f32 %v3276_v23, %v3083_v54  ;;  %v3088_v52 = vadd.f32 %v4739_v42, %v6281_v56  ;;  %v4788_v31 = vpop.f32.mrf.mxu0  ;;  %v3394_v35 = vadd.f32 %v6330_v8, %v3355_v38  ;;  %v3423_v56 = vmax.f32 %v3391_v29, 0.0 }
 0x210   : > { %v3019_v47 = vpop.f32.mrf.mxu1  ;;  %v2805_v3 = vadd.f32 %v6576_v53, %v2541_v19 }
 0x211   : > { %v3392_v45 = vadd.f32 %v6330_v8, %v3353_v59  ;;  %v3358_v18 = vadd.f32 %v4787_v4, %v3088_v52  ;;  %v3086_v25 = vadd.f32 %v3019_v47, %v6570_v37  ;;  %v3292_v20 = vpop.f32.mrf.mxu0  ;;  %v3426_v39 = vmax.f32 %v3394_v35, 0.0  ;;  %v6577_v52 = vld [vmem:[#allocation5_spill] sm:$0xff]  ;;  %v6579_v35 = vld [vmem:[#allocation4_spill] sm:$0xff] }
 0x212   : > { %v4740_v60 = vpop.f32.mrf.mxu1  ;;  %v2545_v47 = vadd.f32 %v6579_v35, %v6578_v0 }
 0x213   : > { %v3424_v43 = vmax.f32 %v3392_v45, 0.0  ;;  %v3089_v5 = vadd.f32 %v4740_v60, %v2803_v1  ;;  %v4791_v51 = vpop.f32.mrf.mxu0  ;;  %v4102_v44 = vpack.c.bf16 %v3426_v39, %v3425_v30  ;;  %v3356_v15 = vadd.f32 %v3289_v28, %v3086_v25 }
 0x214   : > { %v3022_v11 = vpop.f32.mrf.mxu1  ;;  %v3397_v21 = vadd.f32 %v6330_v8, %v3358_v18 }
 0x215   : > { %v4097_v16 = vpack.c.bf16 %v3424_v43, %v3423_v56  ;;  %v3359_v14 = vadd.f32 %v4788_v31, %v3089_v5  ;;  %v3305_v33 = vpop.f32.mrf.mxu0  ;;  %4142 = vst [vmem:[%s6349_s8 + $0x48] sm:$0xff] %v4102_v44   ;;  %v3087_v57 = vadd.f32 %v3022_v11, %v2801_v50  ;;  %v3395_v23 = vadd.f32 %v6330_v8, %v3356_v15  ;;  %v6581_v43 = vld [vmem:[#allocation18_spill] sm:$0xff]  ;;  %v6583_v50 = vld [vmem:[#allocation15_spill] sm:$0xff] }
 0x216   : > { %v4743_v22 = vpop.f32.mrf.mxu1  ;;  %v3429_v48 = vmax.f32 %v3397_v21, 0.0  ;;  %v2547_v31 = vadd.f32 %v6314_v61, %v6577_v52  ;;  %v2809_v32 = vadd.f32 %v6583_v50, %v2545_v47 }
 0x217   : > { %4141 = vst [vmem:[%s6349_s8 + $0x40] sm:$0xff] %v4097_v16   ;;  %v3398_v34 = vadd.f32 %v6330_v8, %v3359_v14  ;;  %v3092_v62 = vadd.f32 %v4743_v22, %v6295_v40  ;;  %v4792_v27 = vpop.f32.mrf.mxu0  ;;  %v3357_v55 = vadd.f32 %v3292_v20, %v3087_v57  ;;  %v3427_v28 = vmax.f32 %v3395_v23, 0.0  ;;  %v6580_v20 = vld [vmem:[#allocation14_spill] sm:$0xff] }
 0x218   : > { %v3035_v13 = vpop.f32.mrf.mxu1 }
 0x219   : > { %v3430_v7 = vmax.f32 %v3398_v34, 0.0  ;;  %v3362_v12 = vadd.f32 %v4791_v51, %v3092_v62  ;;  %v3090_v63 = vadd.f32 %v3035_v13, %v6575_v17  ;;  %v3308_v2 = vpop.f32.mrf.mxu0  ;;  %v3396_v6 = vadd.f32 %v6330_v8, %v3357_v55  ;;  %v6582_v51 = vld [vmem:[#allocation12_spill] sm:$0xff] }
 0x21a   : > { %v4744_v4 = vpop.f32.mrf.mxu1  ;;  %v2811_v26 = vadd.f32 %v6582_v51, %v2547_v31 }
 0x21b   : > { %v4112_v40 = vpack.c.bf16 %v3430_v7, %v3429_v48  ;;  %v3360_v49 = vadd.f32 %v3305_v33, %v3090_v63  ;;  %v3093_v24 = vadd.f32 %v4744_v4, %v2807_v58  ;;  %v4795_v54 = vpop.f32.mrf.mxu0  ;;  %v3428_v10 = vmax.f32 %v3396_v6, 0.0 }
 0x21c   : > { %v3038_v38 = vpop.f32.mrf.mxu1  ;;  %v3401_v42 = vadd.f32 %v6330_v8, %v3362_v12 }
 0x21d   : > { %4144 = vst [vmem:[%s6349_s8 + $0x58] sm:$0xff] %v4112_v40   ;;  %v3363_v29 = vadd.f32 %v4792_v27, %v3093_v24  ;;  %v3091_v59 = vadd.f32 %v3038_v38, %v2805_v3  ;;  %v4107_v9 = vpack.c.bf16 %v3428_v10, %v3427_v28  ;;  %v3321_v45 = vpop.f32.mrf.mxu0  ;;  %v3399_v18 = vadd.f32 %v6330_v8, %v3360_v49 }
 0x21e   : > { %v4747_v1 = vpop.f32.mrf.mxu1  ;;  %v3433_v60 = vmax.f32 %v3401_v42, 0.0 }
 0x21f   : > { %v3402_v37 = vadd.f32 %v6330_v8, %v3363_v29  ;;  %v3361_v25 = vadd.f32 %v3308_v2, %v3091_v59  ;;  %v3096_v30 = vadd.f32 %v4747_v1, %v6580_v20  ;;  %4143 = vst [vmem:[%s6349_s8 + $0x50] sm:$0xff] %v4107_v9   ;;  %v4796_v15 = vpop.f32.mrf.mxu0  ;;  %v3431_v11 = vmax.f32 %v3399_v18, 0.0 }
 0x220   : > { %v3051_v39 = vpop.f32.mrf.mxu1 }
 0x221   : > { %v3434_v56 = vmax.f32 %v3402_v37, 0.0  ;;  %v3400_v61 = vadd.f32 %v6330_v8, %v3361_v25  ;;  %v3094_v5 = vadd.f32 %v3051_v39, %v6581_v43  ;;  %v3366_v41 = vadd.f32 %v4795_v54, %v3096_v30  ;;  %v3324_v62 = vpop.f32.mrf.mxu0 }
 0x222   : > { %v4748_v44 = vpop.f32.mrf.mxu1 }
 0x223   : > { %v4122_v16 = vpack.c.bf16 %v3434_v56, %v3433_v60  ;;  %v3432_v21 = vmax.f32 %v3400_v61, 0.0  ;;  %v3364_v14 = vadd.f32 %v3321_v45, %v3094_v5  ;;  %v3097_v33 = vadd.f32 %v4748_v44, %v2811_v26 }
 0x224   : > { %v3054_v57 = vpop.f32.mrf.mxu1  ;;  %v3405_v19 = vadd.f32 %v6330_v8, %v3366_v41 }
 0x225   : > { %4146 = vst [vmem:[%s6349_s8 + $0x68] sm:$0xff] %v4122_v16   ;;  %v4117_v22 = vpack.c.bf16 %v3432_v21, %v3431_v11  ;;  %v3095_v46 = vadd.f32 %v3054_v57, %v2809_v32  ;;  %v3367_v34 = vadd.f32 %v4796_v15, %v3097_v33  ;;  %v3403_v27 = vadd.f32 %v6330_v8, %v3364_v14 }
 0x226   : > { %v3437_v55 = vmax.f32 %v3405_v19, 0.0 }
 0x227   : > { %4145 = vst [vmem:[%s6349_s8 + $0x60] sm:$0xff] %v4117_v22   ;;  %v3365_v36 = vadd.f32 %v3324_v62, %v3095_v46  ;;  %v3406_v58 = vadd.f32 %v6330_v8, %v3367_v34  ;;  %v3435_v48 = vmax.f32 %v3403_v27, 0.0 }
 0x229   : > { %v3404_v23 = vadd.f32 %v6330_v8, %v3365_v36  ;;  %v3438_v13 = vmax.f32 %v3406_v58, 0.0 }
 0x22b   : > { %v3436_v7 = vmax.f32 %v3404_v23, 0.0  ;;  %v4132_v12 = vpack.c.bf16 %v3438_v13, %v3437_v55 }
 0x22d   : > { %v4127_v17 = vpack.c.bf16 %v3436_v7, %v3435_v48  ;;  %4148 = vst [vmem:[%s6349_s8 + $0x78] sm:$0xff] %v4132_v12  }
 0x22f   : > { %4147 = vst [vmem:[%s6349_s8 + $0x70] sm:$0xff] %v4127_v17  }
 0x230 PF: > { %s13_s14 = sadd.s32 1, %s4959_s14   ;;  %s6584_s12 = smov %s4955_s13 }
 0x231   : > { %p10_p5 = scmp.ge.s32.totalorder %s13_s14, 4   ;;  %s6585_s13 = smov %s6587_s15 }
 0x233   :  { %12 = sbr.rel (!%p10_p5) target bundleno = 2 (0x2), region = 76 }

</bundles_post_ra>
